<compile_context>
chip_gen: v7x
topology: tpu7x:2x2x1
jax: 0.10.0
libtpu: 0.0.40
codegen_flags: <defaults>
</compile_context>

<pallas_src>
import functools
import math

import jax
import jax.numpy as jnp
from jax.experimental import pallas as pl
from jax.experimental.pallas import tpu as pltpu

_VMEM = pltpu.MemorySpace.VMEM


def _const_index_map(ndim):
    def index_map(b):
        return (0,) * ndim
    return index_map


# ------------------------- fused Pallas kernel -------------------------

def _decoder_duration_kernel(
    x_ref,        # (S_enc, E)  tgt (enc_feat row-major) for this batch element
    mem_ref,      # (S_dec, E)  memory = dec_feat + scaled PE
    dpe_ref,      # (E, S_dec)  (dec_feat + PE)^T  -> RHS of final matmul
    w_sa_q, w_sa_k, w_sa_v, b_sa_q, b_sa_k, b_sa_v, w_sa_o, b_sa_o,
    w_ca_q, w_ca_k, w_ca_v, b_ca_q, b_ca_k, b_ca_v, w_ca_o, b_ca_o,
    w_ff1, b_ff1, w_ff2, b_ff2,
    ln_g, ln_b,   # (L, 3, 1, E)
    o_ref,        # (S_enc, S_dec)
):
    f32, bf16 = jnp.float32, jnp.bfloat16
    L, H = w_sa_q.shape[0], w_sa_q.shape[1]

    def layernorm(x, g, b):   # eps = 1e-5 (PyTorch default); f32 math
        mu = jnp.mean(x, axis=-1, keepdims=True)
        var = jnp.mean(jnp.square(x - mu), axis=-1, keepdims=True)
        return (x - mu) * jax.lax.rsqrt(var + 1e-5) * g + b

    def softmax(s):           # last-dim softmax, f32; EUP reciprocal for denom
        s = s - jnp.max(s, axis=-1, keepdims=True)
        p = jnp.exp(s)
        return p * pl.reciprocal(jnp.sum(p, axis=-1, keepdims=True), approx=True)

    def mha(xq, k_heads, v_heads, wq, bq, wo, bo, l):
        # xq: (Sq, E) f32.  k_heads/v_heads: per-head (Sk, Dh) bf16.
        # Per-head weight slabs: no lane sub-slicing, no concatenate; head
        # outputs accumulate directly through the per-head out-proj slab.
        xq_b = xq.astype(bf16)
        acc = None
        for h in range(H):
            q = (jnp.dot(xq_b, wq[l, h], preferred_element_type=f32)
                 + bq[l, h]).astype(bf16)            # 1/sqrt(Dh) folded in
            s = jnp.einsum('qd,kd->qk', q, k_heads[h],
                           preferred_element_type=f32)
            p = softmax(s).astype(bf16)
            o = jnp.dot(p, v_heads[h], preferred_element_type=f32).astype(bf16)
            c = jnp.dot(o, wo[l, h], preferred_element_type=f32)
            acc = c if acc is None else acc + c
        return acc + bo[l]

    tgt = x_ref[...]                      # (S_enc, E) f32
    mem_b = mem_ref[...].astype(bf16)     # (S_dec, E)

    # Cross-attention K/V depend only on `mem` (constant across layers):
    # project once for ALL layers, outside the serialized layer loop.
    k_ca = [[(jnp.dot(mem_b, w_ca_k[l, h], preferred_element_type=f32)
              + b_ca_k[l, h]).astype(bf16) for h in range(H)] for l in range(L)]
    v_ca = [[(jnp.dot(mem_b, w_ca_v[l, h], preferred_element_type=f32)
              + b_ca_v[l, h]).astype(bf16) for h in range(H)] for l in range(L)]

    for l in range(L):                    # small static layer count -> unrolled
        xb = tgt.astype(bf16)
        k_sa = [(jnp.dot(xb, w_sa_k[l, h], preferred_element_type=f32)
                 + b_sa_k[l, h]).astype(bf16) for h in range(H)]
        v_sa = [(jnp.dot(xb, w_sa_v[l, h], preferred_element_type=f32)
                 + b_sa_v[l, h]).astype(bf16) for h in range(H)]
        sa = mha(tgt, k_sa, v_sa, w_sa_q, b_sa_q, w_sa_o, b_sa_o, l)
        x1 = layernorm(tgt + sa, ln_g[l, 0], ln_b[l, 0])
        ca = mha(x1, k_ca[l], v_ca[l], w_ca_q, b_ca_q, w_ca_o, b_ca_o, l)
        x2 = layernorm(x1 + ca, ln_g[l, 1], ln_b[l, 1])
        h1 = jnp.maximum(jnp.dot(x2.astype(bf16), w_ff1[l],
                                 preferred_element_type=f32) + b_ff1[l], 0.0)
        h2 = jnp.dot(h1.astype(bf16), w_ff2[l],
                     preferred_element_type=f32) + b_ff2[l]
        tgt = layernorm(x2 + h2, ln_g[l, 2], ln_b[l, 2])

    # frames_to_segment_assignment for this batch element:
    #   out[t, s] = sum_e aligned[t, e] * (dec + pe)[s, e]
    # dpe arrives pre-transposed (E, S_dec) so the RHS is already (K, N).
    o_ref[...] = jnp.dot(tgt.astype(bf16), dpe_ref[...].astype(bf16),
                         preferred_element_type=f32)


# ------------------------- wrapper -------------------------

def sinusoidal_pe(seq_len, embed_dim):
    """Fairseq SinusoidalPositionalEmbedding(padding_idx=0) applied to an
    all-ones (1, seq_len) input: positions 1..seq_len. Returns (1, S, E)."""
    half = embed_dim // 2
    scale = math.log(10000.0) / (half - 1)
    freqs = jnp.exp(jnp.arange(half, dtype=jnp.float32) * -scale)
    pos = jnp.arange(1, seq_len + 1, dtype=jnp.float32)
    ang = pos[:, None] * freqs[None, :]
    pe = jnp.concatenate([jnp.sin(ang), jnp.cos(ang)], axis=1)   # (S, E)
    return pe[None, :, :]


@functools.partial(jax.jit, static_argnames=("nhead", "add_tgt_pe_dec_dur"))
def decoder_duration_forward(params, enc_feat, dec_feat, *, nhead,
                             add_tgt_pe_dec_dur=1.0):
    """enc_feat: (B, E, S_enc); dec_feat: (S_dec, B, E) (train mode).
    Returns frames_to_segment_assignment: (B, S_enc, S_dec)."""
    B, E, S_enc = enc_feat.shape
    S_dec = dec_feat.shape[0]
    assert params['w_sa_q'].shape[1] == nhead

    x = jnp.transpose(enc_feat, (0, 2, 1))          # (B, S_enc, E)   tgt
    pe = sinusoidal_pe(S_dec, E)                    # (1, S_dec, E)
    dec_bse = jnp.transpose(dec_feat, (1, 0, 2))    # (B, S_dec, E)
    mem = dec_bse + pe * add_tgt_pe_dec_dur         # dropout_dur2 = identity
    # The PyTorch bmm uses the UNscaled PE (tgt_pe, not tgt_pe_dur) -- keep it.
    # Pre-transposed to (B, E, S_dec): final matmul RHS already in (K, N) form.
    dpe = jnp.transpose(dec_bse + pe, (0, 2, 1))

    def batch_spec(shape):        # squeeze batch dim: one element per grid step
        return pl.BlockSpec((None,) + tuple(shape[1:]), lambda b: (b, 0, 0),
                            memory_space=_VMEM)

    def rep_spec(arr):            # full array, VMEM-resident, constant over grid
        return pl.BlockSpec(tuple(arr.shape), _const_index_map(arr.ndim),
                            memory_space=_VMEM)

    weight_names = ('w_sa_q', 'w_sa_k', 'w_sa_v', 'b_sa_q', 'b_sa_k', 'b_sa_v',
                    'w_sa_o', 'b_sa_o',
                    'w_ca_q', 'w_ca_k', 'w_ca_v', 'b_ca_q', 'b_ca_k', 'b_ca_v',
                    'w_ca_o', 'b_ca_o',
                    'w_ff1', 'b_ff1', 'w_ff2', 'b_ff2', 'ln_g', 'ln_b')
    weights = [params[n] for n in weight_names]

    return pl.pallas_call(
        _decoder_duration_kernel,
        out_shape=jax.ShapeDtypeStruct((B, S_enc, S_dec), jnp.float32),
        grid=(B,),
        in_specs=[batch_spec(x.shape), batch_spec(mem.shape),
                  batch_spec(dpe.shape)] + [rep_spec(w) for w in weights],
        out_specs=pl.BlockSpec((None, S_enc, S_dec), lambda b: (b, 0, 0),
                               memory_space=_VMEM),
        compiler_params=pltpu.CompilerParams(
            dimension_semantics=("parallel",),
            vmem_limit_bytes=32 * 1024 * 1024),
    )(x, mem, dpe, *weights)


def init_params(key, E, FF, num_layers, nhead):
    """Per-head, pre-transposed, pre-scaled parameter slabs.

    Mapping from PyTorch nn.TransformerDecoderLayer (layer l):
      in_proj_weight (3E, E): split q/k/v, per head the (Dh, E) row block,
        transposed to (E, Dh)                       -> w_{sa,ca}_{q,k,v}[l, h]
      in_proj_bias (3E,): per head (1, Dh)          -> b_{sa,ca}_{q,k,v}[l, h]
      out_proj.weight (E, E): per head column block, transposed to (Dh, E)
                                                    -> w_{sa,ca}_o[l, h]
      linear1 / linear2 weights: transposed to (Din, Dout).
    The 1/sqrt(Dh) attention scale is folded into the Q weights/biases.
    MXU weight slabs are bfloat16; biases and LayerNorm params stay float32.
    """
    H, Dh = nhead, E // nhead
    scale = 1.0 / math.sqrt(Dh)
    s = 0.05
    bf = jnp.bfloat16
    ks = iter(jax.random.split(key, 24))

    def rnd(shape):
        return s * jax.random.normal(next(ks), shape, jnp.float32)

    p = {}
    for pref in ('sa', 'ca'):
        p[f'w_{pref}_q'] = (rnd((num_layers, H, E, Dh)) * scale).astype(bf)
        p[f'b_{pref}_q'] = rnd((num_layers, H, 1, Dh)) * scale
        p[f'w_{pref}_k'] = rnd((num_layers, H, E, Dh)).astype(bf)
        p[f'b_{pref}_k'] = rnd((num_layers, H, 1, Dh))
        p[f'w_{pref}_v'] = rnd((num_layers, H, E, Dh)).astype(bf)
        p[f'b_{pref}_v'] = rnd((num_layers, H, 1, Dh))
        p[f'w_{pref}_o'] = rnd((num_layers, H, Dh, E)).astype(bf)
        p[f'b_{pref}_o'] = rnd((num_layers, 1, E))
    p['w_ff1'] = rnd((num_layers, E, FF)).astype(bf)
    p['b_ff1'] = rnd((num_layers, 1, FF))
    p['w_ff2'] = rnd((num_layers, FF, E)).astype(bf)
    p['b_ff2'] = rnd((num_layers, 1, E))
    p['ln_g'] = jnp.ones((num_layers, 3, 1, E), jnp.float32)
    p['ln_b'] = jnp.zeros((num_layers, 3, 1, E), jnp.float32)
    return p


# TODO(synk): remove_duplicates() (data-dependent Python/dict control flow),
# the 'uvast_decoder' decoder branch, and training-mode dropout masks are not
# translated; this is the 'pytorch_decoder' forward path with eval dropout.

if __name__ == "__main__":
    B, E, S_enc, S_dec = 2, 32, 16, 8
    NHEAD, FF, NUM_LAYERS = 4, 64, 2

    key = jax.random.PRNGKey(0)
    k1, k2, k3 = jax.random.split(key, 3)
    enc_feat = jax.random.normal(k1, (B, E, S_enc), jnp.float32)   # 'B E S'
    dec_feat = jax.random.normal(k2, (S_dec, B, E), jnp.float32)   # 'S B E'
    params = init_params(k3, E, FF, NUM_LAYERS, NHEAD)

    out = decoder_duration_forward(params, enc_feat, dec_feat, nhead=NHEAD,
                                   add_tgt_pe_dec_dur=1.0)
    out = jax.block_until_ready(out)
    assert out.shape == (B, S_enc, S_dec), out.shape
    assert bool(jnp.all(jnp.isfinite(out)))
    print("KERNEL_OK")
</pallas_src>

<mosaic_0001>
module attributes {stable_mosaic.version = 11 : i64} {
  func.func @_decoder_duration_kernel(%arg0: i32, %arg1: memref<1x16x32xf32, #tpu.memory_space<vmem>>, %arg2: memref<1x8x32xf32, #tpu.memory_space<vmem>>, %arg3: memref<1x32x8xf32, #tpu.memory_space<vmem>>, %arg4: memref<2x4x32x8xbf16, #tpu.memory_space<vmem>>, %arg5: memref<2x4x32x8xbf16, #tpu.memory_space<vmem>>, %arg6: memref<2x4x32x8xbf16, #tpu.memory_space<vmem>>, %arg7: memref<2x4x1x8xf32, #tpu.memory_space<vmem>>, %arg8: memref<2x4x1x8xf32, #tpu.memory_space<vmem>>, %arg9: memref<2x4x1x8xf32, #tpu.memory_space<vmem>>, %arg10: memref<2x4x8x32xbf16, #tpu.memory_space<vmem>>, %arg11: memref<2x1x32xf32, #tpu.memory_space<vmem>>, %arg12: memref<2x4x32x8xbf16, #tpu.memory_space<vmem>>, %arg13: memref<2x4x32x8xbf16, #tpu.memory_space<vmem>>, %arg14: memref<2x4x32x8xbf16, #tpu.memory_space<vmem>>, %arg15: memref<2x4x1x8xf32, #tpu.memory_space<vmem>>, %arg16: memref<2x4x1x8xf32, #tpu.memory_space<vmem>>, %arg17: memref<2x4x1x8xf32, #tpu.memory_space<vmem>>, %arg18: memref<2x4x8x32xbf16, #tpu.memory_space<vmem>>, %arg19: memref<2x1x32xf32, #tpu.memory_space<vmem>>, %arg20: memref<2x32x64xbf16, #tpu.memory_space<vmem>>, %arg21: memref<2x1x64xf32, #tpu.memory_space<vmem>>, %arg22: memref<2x64x32xbf16, #tpu.memory_space<vmem>>, %arg23: memref<2x1x32xf32, #tpu.memory_space<vmem>>, %arg24: memref<2x3x1x32xf32, #tpu.memory_space<vmem>>, %arg25: memref<2x3x1x32xf32, #tpu.memory_space<vmem>>, %arg26: memref<1x16x8xf32, #tpu.memory_space<vmem>>) attributes {dimension_semantics = [#tpu.dimension_semantics<parallel>], iteration_bounds = array<i64: 2>, scalar_prefetch = 0 : i64, scratch_operands = 0 : i64, tpu.core_type = #tpu.core_type<tc>, window_params = [{transform_indices = @transform_0, window_bounds = array<i64: 1, 16, 32>}, {transform_indices = @transform_1, window_bounds = array<i64: 1, 8, 32>}, {transform_indices = @transform_2, window_bounds = array<i64: 1, 32, 8>}, {pipeline_mode = #tpu.pipeline_mode<synchronous>, transform_indices = @transform_3, window_bounds = array<i64: 2, 4, 32, 8>}, {pipeline_mode = #tpu.pipeline_mode<synchronous>, transform_indices = @transform_4, window_bounds = array<i64: 2, 4, 32, 8>}, {pipeline_mode = #tpu.pipeline_mode<synchronous>, transform_indices = @transform_5, window_bounds = array<i64: 2, 4, 32, 8>}, {pipeline_mode = #tpu.pipeline_mode<synchronous>, transform_indices = @transform_6, window_bounds = array<i64: 2, 4, 1, 8>}, {pipeline_mode = #tpu.pipeline_mode<synchronous>, transform_indices = @transform_7, window_bounds = array<i64: 2, 4, 1, 8>}, {pipeline_mode = #tpu.pipeline_mode<synchronous>, transform_indices = @transform_8, window_bounds = array<i64: 2, 4, 1, 8>}, {pipeline_mode = #tpu.pipeline_mode<synchronous>, transform_indices = @transform_9, window_bounds = array<i64: 2, 4, 8, 32>}, {pipeline_mode = #tpu.pipeline_mode<synchronous>, transform_indices = @transform_10, window_bounds = array<i64: 2, 1, 32>}, {pipeline_mode = #tpu.pipeline_mode<synchronous>, transform_indices = @transform_11, window_bounds = array<i64: 2, 4, 32, 8>}, {pipeline_mode = #tpu.pipeline_mode<synchronous>, transform_indices = @transform_12, window_bounds = array<i64: 2, 4, 32, 8>}, {pipeline_mode = #tpu.pipeline_mode<synchronous>, transform_indices = @transform_13, window_bounds = array<i64: 2, 4, 32, 8>}, {pipeline_mode = #tpu.pipeline_mode<synchronous>, transform_indices = @transform_14, window_bounds = array<i64: 2, 4, 1, 8>}, {pipeline_mode = #tpu.pipeline_mode<synchronous>, transform_indices = @transform_15, window_bounds = array<i64: 2, 4, 1, 8>}, {pipeline_mode = #tpu.pipeline_mode<synchronous>, transform_indices = @transform_16, window_bounds = array<i64: 2, 4, 1, 8>}, {pipeline_mode = #tpu.pipeline_mode<synchronous>, transform_indices = @transform_17, window_bounds = array<i64: 2, 4, 8, 32>}, {pipeline_mode = #tpu.pipeline_mode<synchronous>, transform_indices = @transform_18, window_bounds = array<i64: 2, 1, 32>}, {pipeline_mode = #tpu.pipeline_mode<synchronous>, transform_indices = @transform_19, window_bounds = array<i64: 2, 32, 64>}, {pipeline_mode = #tpu.pipeline_mode<synchronous>, transform_indices = @transform_20, window_bounds = array<i64: 2, 1, 64>}, {pipeline_mode = #tpu.pipeline_mode<synchronous>, transform_indices = @transform_21, window_bounds = array<i64: 2, 64, 32>}, {pipeline_mode = #tpu.pipeline_mode<synchronous>, transform_indices = @transform_22, window_bounds = array<i64: 2, 1, 32>}, {pipeline_mode = #tpu.pipeline_mode<synchronous>, transform_indices = @transform_23, window_bounds = array<i64: 2, 3, 1, 32>}, {pipeline_mode = #tpu.pipeline_mode<synchronous>, transform_indices = @transform_24, window_bounds = array<i64: 2, 3, 1, 32>}, {transform_indices = @transform_25, window_bounds = array<i64: 1, 16, 8>}]} {
    %c0 = arith.constant 0 : index
    %c0_0 = arith.constant 0 : index
    %c0_1 = arith.constant 0 : index
    %0 = vector.load %arg1[%c0, %c0_0, %c0_1] : memref<1x16x32xf32, #tpu.memory_space<vmem>>, vector<1x16x32xf32>
    %1 = vector.shape_cast %0 : vector<1x16x32xf32> to vector<16x32xf32>
    %c0_2 = arith.constant 0 : index
    %c0_3 = arith.constant 0 : index
    %c0_4 = arith.constant 0 : index
    %2 = vector.load %arg2[%c0_2, %c0_3, %c0_4] : memref<1x8x32xf32, #tpu.memory_space<vmem>>, vector<1x8x32xf32>
    %3 = vector.shape_cast %2 : vector<1x8x32xf32> to vector<8x32xf32>
    %4 = arith.truncf %3 : vector<8x32xf32> to vector<8x32xbf16>
    %c0_5 = arith.constant 0 : index
    %c0_6 = arith.constant 0 : index
    %c0_7 = arith.constant 0 : index
    %c0_8 = arith.constant 0 : index
    %5 = vector.load %arg13[%c0_5, %c0_6, %c0_7, %c0_8] : memref<2x4x32x8xbf16, #tpu.memory_space<vmem>>, vector<1x1x32x8xbf16>
    %6 = vector.shape_cast %5 : vector<1x1x32x8xbf16> to vector<32x8xbf16>
    %cst = arith.constant dense<0.000000e+00> : vector<8x8xf32>
    %7 = tpu.matmul %4, %6, %cst {dimension_numbers = #tpu.dot_dimension_numbers<[1], [0], [0], [1], [0, 0, 1, 1], [], []>} : vector<8x32xbf16>, vector<32x8xbf16>, vector<8x8xf32> -> vector<8x8xf32>
    %c0_9 = arith.constant 0 : index
    %c0_10 = arith.constant 0 : index
    %c0_11 = arith.constant 0 : index
    %c0_12 = arith.constant 0 : index
    %8 = vector.load %arg16[%c0_9, %c0_10, %c0_11, %c0_12] : memref<2x4x1x8xf32, #tpu.memory_space<vmem>>, vector<1x1x1x8xf32>
    %9 = vector.shape_cast %8 : vector<1x1x1x8xf32> to vector<1x8xf32>
    %10 = vector.broadcast %9 : vector<1x8xf32> to vector<8x8xf32>
    %11 = arith.addf %7, %10 : vector<8x8xf32>
    %12 = arith.truncf %11 : vector<8x8xf32> to vector<8x8xbf16>
    %c0_13 = arith.constant 0 : index
    %c1 = arith.constant 1 : index
    %c0_14 = arith.constant 0 : index
    %c0_15 = arith.constant 0 : index
    %13 = vector.load %arg13[%c0_13, %c1, %c0_14, %c0_15] : memref<2x4x32x8xbf16, #tpu.memory_space<vmem>>, vector<1x1x32x8xbf16>
    %14 = vector.shape_cast %13 : vector<1x1x32x8xbf16> to vector<32x8xbf16>
    %cst_16 = arith.constant dense<0.000000e+00> : vector<8x8xf32>
    %15 = tpu.matmul %4, %14, %cst_16 {dimension_numbers = #tpu.dot_dimension_numbers<[1], [0], [0], [1], [0, 0, 1, 1], [], []>} : vector<8x32xbf16>, vector<32x8xbf16>, vector<8x8xf32> -> vector<8x8xf32>
    %c0_17 = arith.constant 0 : index
    %c1_18 = arith.constant 1 : index
    %c0_19 = arith.constant 0 : index
    %c0_20 = arith.constant 0 : index
    %16 = vector.load %arg16[%c0_17, %c1_18, %c0_19, %c0_20] : memref<2x4x1x8xf32, #tpu.memory_space<vmem>>, vector<1x1x1x8xf32>
    %17 = vector.shape_cast %16 : vector<1x1x1x8xf32> to vector<1x8xf32>
    %18 = vector.broadcast %17 : vector<1x8xf32> to vector<8x8xf32>
    %19 = arith.addf %15, %18 : vector<8x8xf32>
    %20 = arith.truncf %19 : vector<8x8xf32> to vector<8x8xbf16>
    %c0_21 = arith.constant 0 : index
    %c2 = arith.constant 2 : index
    %c0_22 = arith.constant 0 : index
    %c0_23 = arith.constant 0 : index
    %21 = vector.load %arg13[%c0_21, %c2, %c0_22, %c0_23] : memref<2x4x32x8xbf16, #tpu.memory_space<vmem>>, vector<1x1x32x8xbf16>
    %22 = vector.shape_cast %21 : vector<1x1x32x8xbf16> to vector<32x8xbf16>
    %cst_24 = arith.constant dense<0.000000e+00> : vector<8x8xf32>
    %23 = tpu.matmul %4, %22, %cst_24 {dimension_numbers = #tpu.dot_dimension_numbers<[1], [0], [0], [1], [0, 0, 1, 1], [], []>} : vector<8x32xbf16>, vector<32x8xbf16>, vector<8x8xf32> -> vector<8x8xf32>
    %c0_25 = arith.constant 0 : index
    %c2_26 = arith.constant 2 : index
    %c0_27 = arith.constant 0 : index
    %c0_28 = arith.constant 0 : index
    %24 = vector.load %arg16[%c0_25, %c2_26, %c0_27, %c0_28] : memref<2x4x1x8xf32, #tpu.memory_space<vmem>>, vector<1x1x1x8xf32>
    %25 = vector.shape_cast %24 : vector<1x1x1x8xf32> to vector<1x8xf32>
    %26 = vector.broadcast %25 : vector<1x8xf32> to vector<8x8xf32>
    %27 = arith.addf %23, %26 : vector<8x8xf32>
    %28 = arith.truncf %27 : vector<8x8xf32> to vector<8x8xbf16>
    %c0_29 = arith.constant 0 : index
    %c3 = arith.constant 3 : index
    %c0_30 = arith.constant 0 : index
    %c0_31 = arith.constant 0 : index
    %29 = vector.load %arg13[%c0_29, %c3, %c0_30, %c0_31] : memref<2x4x32x8xbf16, #tpu.memory_space<vmem>>, vector<1x1x32x8xbf16>
    %30 = vector.shape_cast %29 : vector<1x1x32x8xbf16> to vector<32x8xbf16>
    %cst_32 = arith.constant dense<0.000000e+00> : vector<8x8xf32>
    %31 = tpu.matmul %4, %30, %cst_32 {dimension_numbers = #tpu.dot_dimension_numbers<[1], [0], [0], [1], [0, 0, 1, 1], [], []>} : vector<8x32xbf16>, vector<32x8xbf16>, vector<8x8xf32> -> vector<8x8xf32>
    %c0_33 = arith.constant 0 : index
    %c3_34 = arith.constant 3 : index
    %c0_35 = arith.constant 0 : index
    %c0_36 = arith.constant 0 : index
    %32 = vector.load %arg16[%c0_33, %c3_34, %c0_35, %c0_36] : memref<2x4x1x8xf32, #tpu.memory_space<vmem>>, vector<1x1x1x8xf32>
    %33 = vector.shape_cast %32 : vector<1x1x1x8xf32> to vector<1x8xf32>
    %34 = vector.broadcast %33 : vector<1x8xf32> to vector<8x8xf32>
    %35 = arith.addf %31, %34 : vector<8x8xf32>
    %36 = arith.truncf %35 : vector<8x8xf32> to vector<8x8xbf16>
    %c1_37 = arith.constant 1 : index
    %c0_38 = arith.constant 0 : index
    %c0_39 = arith.constant 0 : index
    %c0_40 = arith.constant 0 : index
    %37 = vector.load %arg13[%c1_37, %c0_38, %c0_39, %c0_40] : memref<2x4x32x8xbf16, #tpu.memory_space<vmem>>, vector<1x1x32x8xbf16>
    %38 = vector.shape_cast %37 : vector<1x1x32x8xbf16> to vector<32x8xbf16>
    %cst_41 = arith.constant dense<0.000000e+00> : vector<8x8xf32>
    %39 = tpu.matmul %4, %38, %cst_41 {dimension_numbers = #tpu.dot_dimension_numbers<[1], [0], [0], [1], [0, 0, 1, 1], [], []>} : vector<8x32xbf16>, vector<32x8xbf16>, vector<8x8xf32> -> vector<8x8xf32>
    %c1_42 = arith.constant 1 : index
    %c0_43 = arith.constant 0 : index
    %c0_44 = arith.constant 0 : index
    %c0_45 = arith.constant 0 : index
    %40 = vector.load %arg16[%c1_42, %c0_43, %c0_44, %c0_45] : memref<2x4x1x8xf32, #tpu.memory_space<vmem>>, vector<1x1x1x8xf32>
    %41 = vector.shape_cast %40 : vector<1x1x1x8xf32> to vector<1x8xf32>
    %42 = vector.broadcast %41 : vector<1x8xf32> to vector<8x8xf32>
    %43 = arith.addf %39, %42 : vector<8x8xf32>
    %44 = arith.truncf %43 : vector<8x8xf32> to vector<8x8xbf16>
    %c1_46 = arith.constant 1 : index
    %c1_47 = arith.constant 1 : index
    %c0_48 = arith.constant 0 : index
    %c0_49 = arith.constant 0 : index
    %45 = vector.load %arg13[%c1_46, %c1_47, %c0_48, %c0_49] : memref<2x4x32x8xbf16, #tpu.memory_space<vmem>>, vector<1x1x32x8xbf16>
    %46 = vector.shape_cast %45 : vector<1x1x32x8xbf16> to vector<32x8xbf16>
    %cst_50 = arith.constant dense<0.000000e+00> : vector<8x8xf32>
    %47 = tpu.matmul %4, %46, %cst_50 {dimension_numbers = #tpu.dot_dimension_numbers<[1], [0], [0], [1], [0, 0, 1, 1], [], []>} : vector<8x32xbf16>, vector<32x8xbf16>, vector<8x8xf32> -> vector<8x8xf32>
    %c1_51 = arith.constant 1 : index
    %c1_52 = arith.constant 1 : index
    %c0_53 = arith.constant 0 : index
    %c0_54 = arith.constant 0 : index
    %48 = vector.load %arg16[%c1_51, %c1_52, %c0_53, %c0_54] : memref<2x4x1x8xf32, #tpu.memory_space<vmem>>, vector<1x1x1x8xf32>
    %49 = vector.shape_cast %48 : vector<1x1x1x8xf32> to vector<1x8xf32>
    %50 = vector.broadcast %49 : vector<1x8xf32> to vector<8x8xf32>
    %51 = arith.addf %47, %50 : vector<8x8xf32>
    %52 = arith.truncf %51 : vector<8x8xf32> to vector<8x8xbf16>
    %c1_55 = arith.constant 1 : index
    %c2_56 = arith.constant 2 : index
    %c0_57 = arith.constant 0 : index
    %c0_58 = arith.constant 0 : index
    %53 = vector.load %arg13[%c1_55, %c2_56, %c0_57, %c0_58] : memref<2x4x32x8xbf16, #tpu.memory_space<vmem>>, vector<1x1x32x8xbf16>
    %54 = vector.shape_cast %53 : vector<1x1x32x8xbf16> to vector<32x8xbf16>
    %cst_59 = arith.constant dense<0.000000e+00> : vector<8x8xf32>
    %55 = tpu.matmul %4, %54, %cst_59 {dimension_numbers = #tpu.dot_dimension_numbers<[1], [0], [0], [1], [0, 0, 1, 1], [], []>} : vector<8x32xbf16>, vector<32x8xbf16>, vector<8x8xf32> -> vector<8x8xf32>
    %c1_60 = arith.constant 1 : index
    %c2_61 = arith.constant 2 : index
    %c0_62 = arith.constant 0 : index
    %c0_63 = arith.constant 0 : index
    %56 = vector.load %arg16[%c1_60, %c2_61, %c0_62, %c0_63] : memref<2x4x1x8xf32, #tpu.memory_space<vmem>>, vector<1x1x1x8xf32>
    %57 = vector.shape_cast %56 : vector<1x1x1x8xf32> to vector<1x8xf32>
    %58 = vector.broadcast %57 : vector<1x8xf32> to vector<8x8xf32>
    %59 = arith.addf %55, %58 : vector<8x8xf32>
    %60 = arith.truncf %59 : vector<8x8xf32> to vector<8x8xbf16>
    %c1_64 = arith.constant 1 : index
    %c3_65 = arith.constant 3 : index
    %c0_66 = arith.constant 0 : index
    %c0_67 = arith.constant 0 : index
    %61 = vector.load %arg13[%c1_64, %c3_65, %c0_66, %c0_67] : memref<2x4x32x8xbf16, #tpu.memory_space<vmem>>, vector<1x1x32x8xbf16>
    %62 = vector.shape_cast %61 : vector<1x1x32x8xbf16> to vector<32x8xbf16>
    %cst_68 = arith.constant dense<0.000000e+00> : vector<8x8xf32>
    %63 = tpu.matmul %4, %62, %cst_68 {dimension_numbers = #tpu.dot_dimension_numbers<[1], [0], [0], [1], [0, 0, 1, 1], [], []>} : vector<8x32xbf16>, vector<32x8xbf16>, vector<8x8xf32> -> vector<8x8xf32>
    %c1_69 = arith.constant 1 : index
    %c3_70 = arith.constant 3 : index
    %c0_71 = arith.constant 0 : index
    %c0_72 = arith.constant 0 : index
    %64 = vector.load %arg16[%c1_69, %c3_70, %c0_71, %c0_72] : memref<2x4x1x8xf32, #tpu.memory_space<vmem>>, vector<1x1x1x8xf32>
    %65 = vector.shape_cast %64 : vector<1x1x1x8xf32> to vector<1x8xf32>
    %66 = vector.broadcast %65 : vector<1x8xf32> to vector<8x8xf32>
    %67 = arith.addf %63, %66 : vector<8x8xf32>
    %68 = arith.truncf %67 : vector<8x8xf32> to vector<8x8xbf16>
    %c0_73 = arith.constant 0 : index
    %c0_74 = arith.constant 0 : index
    %c0_75 = arith.constant 0 : index
    %c0_76 = arith.constant 0 : index
    %69 = vector.load %arg14[%c0_73, %c0_74, %c0_75, %c0_76] : memref<2x4x32x8xbf16, #tpu.memory_space<vmem>>, vector<1x1x32x8xbf16>
    %70 = vector.shape_cast %69 : vector<1x1x32x8xbf16> to vector<32x8xbf16>
    %cst_77 = arith.constant dense<0.000000e+00> : vector<8x8xf32>
    %71 = tpu.matmul %4, %70, %cst_77 {dimension_numbers = #tpu.dot_dimension_numbers<[1], [0], [0], [1], [0, 0, 1, 1], [], []>} : vector<8x32xbf16>, vector<32x8xbf16>, vector<8x8xf32> -> vector<8x8xf32>
    %c0_78 = arith.constant 0 : index
    %c0_79 = arith.constant 0 : index
    %c0_80 = arith.constant 0 : index
    %c0_81 = arith.constant 0 : index
    %72 = vector.load %arg17[%c0_78, %c0_79, %c0_80, %c0_81] : memref<2x4x1x8xf32, #tpu.memory_space<vmem>>, vector<1x1x1x8xf32>
    %73 = vector.shape_cast %72 : vector<1x1x1x8xf32> to vector<1x8xf32>
    %74 = vector.broadcast %73 : vector<1x8xf32> to vector<8x8xf32>
    %75 = arith.addf %71, %74 : vector<8x8xf32>
    %76 = arith.truncf %75 : vector<8x8xf32> to vector<8x8xbf16>
    %c0_82 = arith.constant 0 : index
    %c1_83 = arith.constant 1 : index
    %c0_84 = arith.constant 0 : index
    %c0_85 = arith.constant 0 : index
    %77 = vector.load %arg14[%c0_82, %c1_83, %c0_84, %c0_85] : memref<2x4x32x8xbf16, #tpu.memory_space<vmem>>, vector<1x1x32x8xbf16>
    %78 = vector.shape_cast %77 : vector<1x1x32x8xbf16> to vector<32x8xbf16>
    %cst_86 = arith.constant dense<0.000000e+00> : vector<8x8xf32>
    %79 = tpu.matmul %4, %78, %cst_86 {dimension_numbers = #tpu.dot_dimension_numbers<[1], [0], [0], [1], [0, 0, 1, 1], [], []>} : vector<8x32xbf16>, vector<32x8xbf16>, vector<8x8xf32> -> vector<8x8xf32>
    %c0_87 = arith.constant 0 : index
    %c1_88 = arith.constant 1 : index
    %c0_89 = arith.constant 0 : index
    %c0_90 = arith.constant 0 : index
    %80 = vector.load %arg17[%c0_87, %c1_88, %c0_89, %c0_90] : memref<2x4x1x8xf32, #tpu.memory_space<vmem>>, vector<1x1x1x8xf32>
    %81 = vector.shape_cast %80 : vector<1x1x1x8xf32> to vector<1x8xf32>
    %82 = vector.broadcast %81 : vector<1x8xf32> to vector<8x8xf32>
    %83 = arith.addf %79, %82 : vector<8x8xf32>
    %84 = arith.truncf %83 : vector<8x8xf32> to vector<8x8xbf16>
    %c0_91 = arith.constant 0 : index
    %c2_92 = arith.constant 2 : index
    %c0_93 = arith.constant 0 : index
    %c0_94 = arith.constant 0 : index
    %85 = vector.load %arg14[%c0_91, %c2_92, %c0_93, %c0_94] : memref<2x4x32x8xbf16, #tpu.memory_space<vmem>>, vector<1x1x32x8xbf16>
    %86 = vector.shape_cast %85 : vector<1x1x32x8xbf16> to vector<32x8xbf16>
    %cst_95 = arith.constant dense<0.000000e+00> : vector<8x8xf32>
    %87 = tpu.matmul %4, %86, %cst_95 {dimension_numbers = #tpu.dot_dimension_numbers<[1], [0], [0], [1], [0, 0, 1, 1], [], []>} : vector<8x32xbf16>, vector<32x8xbf16>, vector<8x8xf32> -> vector<8x8xf32>
    %c0_96 = arith.constant 0 : index
    %c2_97 = arith.constant 2 : index
    %c0_98 = arith.constant 0 : index
    %c0_99 = arith.constant 0 : index
    %88 = vector.load %arg17[%c0_96, %c2_97, %c0_98, %c0_99] : memref<2x4x1x8xf32, #tpu.memory_space<vmem>>, vector<1x1x1x8xf32>
    %89 = vector.shape_cast %88 : vector<1x1x1x8xf32> to vector<1x8xf32>
    %90 = vector.broadcast %89 : vector<1x8xf32> to vector<8x8xf32>
    %91 = arith.addf %87, %90 : vector<8x8xf32>
    %92 = arith.truncf %91 : vector<8x8xf32> to vector<8x8xbf16>
    %c0_100 = arith.constant 0 : index
    %c3_101 = arith.constant 3 : index
    %c0_102 = arith.constant 0 : index
    %c0_103 = arith.constant 0 : index
    %93 = vector.load %arg14[%c0_100, %c3_101, %c0_102, %c0_103] : memref<2x4x32x8xbf16, #tpu.memory_space<vmem>>, vector<1x1x32x8xbf16>
    %94 = vector.shape_cast %93 : vector<1x1x32x8xbf16> to vector<32x8xbf16>
    %cst_104 = arith.constant dense<0.000000e+00> : vector<8x8xf32>
    %95 = tpu.matmul %4, %94, %cst_104 {dimension_numbers = #tpu.dot_dimension_numbers<[1], [0], [0], [1], [0, 0, 1, 1], [], []>} : vector<8x32xbf16>, vector<32x8xbf16>, vector<8x8xf32> -> vector<8x8xf32>
    %c0_105 = arith.constant 0 : index
    %c3_106 = arith.constant 3 : index
    %c0_107 = arith.constant 0 : index
    %c0_108 = arith.constant 0 : index
    %96 = vector.load %arg17[%c0_105, %c3_106, %c0_107, %c0_108] : memref<2x4x1x8xf32, #tpu.memory_space<vmem>>, vector<1x1x1x8xf32>
    %97 = vector.shape_cast %96 : vector<1x1x1x8xf32> to vector<1x8xf32>
    %98 = vector.broadcast %97 : vector<1x8xf32> to vector<8x8xf32>
    %99 = arith.addf %95, %98 : vector<8x8xf32>
    %100 = arith.truncf %99 : vector<8x8xf32> to vector<8x8xbf16>
    %c1_109 = arith.constant 1 : index
    %c0_110 = arith.constant 0 : index
    %c0_111 = arith.constant 0 : index
    %c0_112 = arith.constant 0 : index
    %101 = vector.load %arg14[%c1_109, %c0_110, %c0_111, %c0_112] : memref<2x4x32x8xbf16, #tpu.memory_space<vmem>>, vector<1x1x32x8xbf16>
    %102 = vector.shape_cast %101 : vector<1x1x32x8xbf16> to vector<32x8xbf16>
    %cst_113 = arith.constant dense<0.000000e+00> : vector<8x8xf32>
    %103 = tpu.matmul %4, %102, %cst_113 {dimension_numbers = #tpu.dot_dimension_numbers<[1], [0], [0], [1], [0, 0, 1, 1], [], []>} : vector<8x32xbf16>, vector<32x8xbf16>, vector<8x8xf32> -> vector<8x8xf32>
    %c1_114 = arith.constant 1 : index
    %c0_115 = arith.constant 0 : index
    %c0_116 = arith.constant 0 : index
    %c0_117 = arith.constant 0 : index
    %104 = vector.load %arg17[%c1_114, %c0_115, %c0_116, %c0_117] : memref<2x4x1x8xf32, #tpu.memory_space<vmem>>, vector<1x1x1x8xf32>
    %105 = vector.shape_cast %104 : vector<1x1x1x8xf32> to vector<1x8xf32>
    %106 = vector.broadcast %105 : vector<1x8xf32> to vector<8x8xf32>
    %107 = arith.addf %103, %106 : vector<8x8xf32>
    %108 = arith.truncf %107 : vector<8x8xf32> to vector<8x8xbf16>
    %c1_118 = arith.constant 1 : index
    %c1_119 = arith.constant 1 : index
    %c0_120 = arith.constant 0 : index
    %c0_121 = arith.constant 0 : index
    %109 = vector.load %arg14[%c1_118, %c1_119, %c0_120, %c0_121] : memref<2x4x32x8xbf16, #tpu.memory_space<vmem>>, vector<1x1x32x8xbf16>
    %110 = vector.shape_cast %109 : vector<1x1x32x8xbf16> to vector<32x8xbf16>
    %cst_122 = arith.constant dense<0.000000e+00> : vector<8x8xf32>
    %111 = tpu.matmul %4, %110, %cst_122 {dimension_numbers = #tpu.dot_dimension_numbers<[1], [0], [0], [1], [0, 0, 1, 1], [], []>} : vector<8x32xbf16>, vector<32x8xbf16>, vector<8x8xf32> -> vector<8x8xf32>
    %c1_123 = arith.constant 1 : index
    %c1_124 = arith.constant 1 : index
    %c0_125 = arith.constant 0 : index
    %c0_126 = arith.constant 0 : index
    %112 = vector.load %arg17[%c1_123, %c1_124, %c0_125, %c0_126] : memref<2x4x1x8xf32, #tpu.memory_space<vmem>>, vector<1x1x1x8xf32>
    %113 = vector.shape_cast %112 : vector<1x1x1x8xf32> to vector<1x8xf32>
    %114 = vector.broadcast %113 : vector<1x8xf32> to vector<8x8xf32>
    %115 = arith.addf %111, %114 : vector<8x8xf32>
    %116 = arith.truncf %115 : vector<8x8xf32> to vector<8x8xbf16>
    %c1_127 = arith.constant 1 : index
    %c2_128 = arith.constant 2 : index
    %c0_129 = arith.constant 0 : index
    %c0_130 = arith.constant 0 : index
    %117 = vector.load %arg14[%c1_127, %c2_128, %c0_129, %c0_130] : memref<2x4x32x8xbf16, #tpu.memory_space<vmem>>, vector<1x1x32x8xbf16>
    %118 = vector.shape_cast %117 : vector<1x1x32x8xbf16> to vector<32x8xbf16>
    %cst_131 = arith.constant dense<0.000000e+00> : vector<8x8xf32>
    %119 = tpu.matmul %4, %118, %cst_131 {dimension_numbers = #tpu.dot_dimension_numbers<[1], [0], [0], [1], [0, 0, 1, 1], [], []>} : vector<8x32xbf16>, vector<32x8xbf16>, vector<8x8xf32> -> vector<8x8xf32>
    %c1_132 = arith.constant 1 : index
    %c2_133 = arith.constant 2 : index
    %c0_134 = arith.constant 0 : index
    %c0_135 = arith.constant 0 : index
    %120 = vector.load %arg17[%c1_132, %c2_133, %c0_134, %c0_135] : memref<2x4x1x8xf32, #tpu.memory_space<vmem>>, vector<1x1x1x8xf32>
    %121 = vector.shape_cast %120 : vector<1x1x1x8xf32> to vector<1x8xf32>
    %122 = vector.broadcast %121 : vector<1x8xf32> to vector<8x8xf32>
    %123 = arith.addf %119, %122 : vector<8x8xf32>
    %124 = arith.truncf %123 : vector<8x8xf32> to vector<8x8xbf16>
    %c1_136 = arith.constant 1 : index
    %c3_137 = arith.constant 3 : index
    %c0_138 = arith.constant 0 : index
    %c0_139 = arith.constant 0 : index
    %125 = vector.load %arg14[%c1_136, %c3_137, %c0_138, %c0_139] : memref<2x4x32x8xbf16, #tpu.memory_space<vmem>>, vector<1x1x32x8xbf16>
    %126 = vector.shape_cast %125 : vector<1x1x32x8xbf16> to vector<32x8xbf16>
    %cst_140 = arith.constant dense<0.000000e+00> : vector<8x8xf32>
    %127 = tpu.matmul %4, %126, %cst_140 {dimension_numbers = #tpu.dot_dimension_numbers<[1], [0], [0], [1], [0, 0, 1, 1], [], []>} : vector<8x32xbf16>, vector<32x8xbf16>, vector<8x8xf32> -> vector<8x8xf32>
    %c1_141 = arith.constant 1 : index
    %c3_142 = arith.constant 3 : index
    %c0_143 = arith.constant 0 : index
    %c0_144 = arith.constant 0 : index
    %128 = vector.load %arg17[%c1_141, %c3_142, %c0_143, %c0_144] : memref<2x4x1x8xf32, #tpu.memory_space<vmem>>, vector<1x1x1x8xf32>
    %129 = vector.shape_cast %128 : vector<1x1x1x8xf32> to vector<1x8xf32>
    %130 = vector.broadcast %129 : vector<1x8xf32> to vector<8x8xf32>
    %131 = arith.addf %127, %130 : vector<8x8xf32>
    %132 = arith.truncf %131 : vector<8x8xf32> to vector<8x8xbf16>
    %133 = arith.truncf %1 : vector<16x32xf32> to vector<16x32xbf16>
    %c0_145 = arith.constant 0 : index
    %c0_146 = arith.constant 0 : index
    %c0_147 = arith.constant 0 : index
    %c0_148 = arith.constant 0 : index
    %134 = vector.load %arg5[%c0_145, %c0_146, %c0_147, %c0_148] : memref<2x4x32x8xbf16, #tpu.memory_space<vmem>>, vector<1x1x32x8xbf16>
    %135 = vector.shape_cast %134 : vector<1x1x32x8xbf16> to vector<32x8xbf16>
    %cst_149 = arith.constant dense<0.000000e+00> : vector<16x8xf32>
    %136 = tpu.matmul %133, %135, %cst_149 {dimension_numbers = #tpu.dot_dimension_numbers<[1], [0], [0], [1], [0, 0, 1, 1], [], []>} : vector<16x32xbf16>, vector<32x8xbf16>, vector<16x8xf32> -> vector<16x8xf32>
    %c0_150 = arith.constant 0 : index
    %c0_151 = arith.constant 0 : index
    %c0_152 = arith.constant 0 : index
    %c0_153 = arith.constant 0 : index
    %137 = vector.load %arg8[%c0_150, %c0_151, %c0_152, %c0_153] : memref<2x4x1x8xf32, #tpu.memory_space<vmem>>, vector<1x1x1x8xf32>
    %138 = vector.shape_cast %137 : vector<1x1x1x8xf32> to vector<1x8xf32>
    %139 = vector.broadcast %138 : vector<1x8xf32> to vector<16x8xf32>
    %140 = arith.addf %136, %139 : vector<16x8xf32>
    %141 = arith.truncf %140 : vector<16x8xf32> to vector<16x8xbf16>
    %c0_154 = arith.constant 0 : index
    %c1_155 = arith.constant 1 : index
    %c0_156 = arith.constant 0 : index
    %c0_157 = arith.constant 0 : index
    %142 = vector.load %arg5[%c0_154, %c1_155, %c0_156, %c0_157] : memref<2x4x32x8xbf16, #tpu.memory_space<vmem>>, vector<1x1x32x8xbf16>
    %143 = vector.shape_cast %142 : vector<1x1x32x8xbf16> to vector<32x8xbf16>
    %cst_158 = arith.constant dense<0.000000e+00> : vector<16x8xf32>
    %144 = tpu.matmul %133, %143, %cst_158 {dimension_numbers = #tpu.dot_dimension_numbers<[1], [0], [0], [1], [0, 0, 1, 1], [], []>} : vector<16x32xbf16>, vector<32x8xbf16>, vector<16x8xf32> -> vector<16x8xf32>
    %c0_159 = arith.constant 0 : index
    %c1_160 = arith.constant 1 : index
    %c0_161 = arith.constant 0 : index
    %c0_162 = arith.constant 0 : index
    %145 = vector.load %arg8[%c0_159, %c1_160, %c0_161, %c0_162] : memref<2x4x1x8xf32, #tpu.memory_space<vmem>>, vector<1x1x1x8xf32>
    %146 = vector.shape_cast %145 : vector<1x1x1x8xf32> to vector<1x8xf32>
    %147 = vector.broadcast %146 : vector<1x8xf32> to vector<16x8xf32>
    %148 = arith.addf %144, %147 : vector<16x8xf32>
    %149 = arith.truncf %148 : vector<16x8xf32> to vector<16x8xbf16>
    %c0_163 = arith.constant 0 : index
    %c2_164 = arith.constant 2 : index
    %c0_165 = arith.constant 0 : index
    %c0_166 = arith.constant 0 : index
    %150 = vector.load %arg5[%c0_163, %c2_164, %c0_165, %c0_166] : memref<2x4x32x8xbf16, #tpu.memory_space<vmem>>, vector<1x1x32x8xbf16>
    %151 = vector.shape_cast %150 : vector<1x1x32x8xbf16> to vector<32x8xbf16>
    %cst_167 = arith.constant dense<0.000000e+00> : vector<16x8xf32>
    %152 = tpu.matmul %133, %151, %cst_167 {dimension_numbers = #tpu.dot_dimension_numbers<[1], [0], [0], [1], [0, 0, 1, 1], [], []>} : vector<16x32xbf16>, vector<32x8xbf16>, vector<16x8xf32> -> vector<16x8xf32>
    %c0_168 = arith.constant 0 : index
    %c2_169 = arith.constant 2 : index
    %c0_170 = arith.constant 0 : index
    %c0_171 = arith.constant 0 : index
    %153 = vector.load %arg8[%c0_168, %c2_169, %c0_170, %c0_171] : memref<2x4x1x8xf32, #tpu.memory_space<vmem>>, vector<1x1x1x8xf32>
    %154 = vector.shape_cast %153 : vector<1x1x1x8xf32> to vector<1x8xf32>
    %155 = vector.broadcast %154 : vector<1x8xf32> to vector<16x8xf32>
    %156 = arith.addf %152, %155 : vector<16x8xf32>
    %157 = arith.truncf %156 : vector<16x8xf32> to vector<16x8xbf16>
    %c0_172 = arith.constant 0 : index
    %c3_173 = arith.constant 3 : index
    %c0_174 = arith.constant 0 : index
    %c0_175 = arith.constant 0 : index
    %158 = vector.load %arg5[%c0_172, %c3_173, %c0_174, %c0_175] : memref<2x4x32x8xbf16, #tpu.memory_space<vmem>>, vector<1x1x32x8xbf16>
    %159 = vector.shape_cast %158 : vector<1x1x32x8xbf16> to vector<32x8xbf16>
    %cst_176 = arith.constant dense<0.000000e+00> : vector<16x8xf32>
    %160 = tpu.matmul %133, %159, %cst_176 {dimension_numbers = #tpu.dot_dimension_numbers<[1], [0], [0], [1], [0, 0, 1, 1], [], []>} : vector<16x32xbf16>, vector<32x8xbf16>, vector<16x8xf32> -> vector<16x8xf32>
    %c0_177 = arith.constant 0 : index
    %c3_178 = arith.constant 3 : index
    %c0_179 = arith.constant 0 : index
    %c0_180 = arith.constant 0 : index
    %161 = vector.load %arg8[%c0_177, %c3_178, %c0_179, %c0_180] : memref<2x4x1x8xf32, #tpu.memory_space<vmem>>, vector<1x1x1x8xf32>
    %162 = vector.shape_cast %161 : vector<1x1x1x8xf32> to vector<1x8xf32>
    %163 = vector.broadcast %162 : vector<1x8xf32> to vector<16x8xf32>
    %164 = arith.addf %160, %163 : vector<16x8xf32>
    %165 = arith.truncf %164 : vector<16x8xf32> to vector<16x8xbf16>
    %c0_181 = arith.constant 0 : index
    %c0_182 = arith.constant 0 : index
    %c0_183 = arith.constant 0 : index
    %c0_184 = arith.constant 0 : index
    %166 = vector.load %arg6[%c0_181, %c0_182, %c0_183, %c0_184] : memref<2x4x32x8xbf16, #tpu.memory_space<vmem>>, vector<1x1x32x8xbf16>
    %167 = vector.shape_cast %166 : vector<1x1x32x8xbf16> to vector<32x8xbf16>
    %cst_185 = arith.constant dense<0.000000e+00> : vector<16x8xf32>
    %168 = tpu.matmul %133, %167, %cst_185 {dimension_numbers = #tpu.dot_dimension_numbers<[1], [0], [0], [1], [0, 0, 1, 1], [], []>} : vector<16x32xbf16>, vector<32x8xbf16>, vector<16x8xf32> -> vector<16x8xf32>
    %c0_186 = arith.constant 0 : index
    %c0_187 = arith.constant 0 : index
    %c0_188 = arith.constant 0 : index
    %c0_189 = arith.constant 0 : index
    %169 = vector.load %arg9[%c0_186, %c0_187, %c0_188, %c0_189] : memref<2x4x1x8xf32, #tpu.memory_space<vmem>>, vector<1x1x1x8xf32>
    %170 = vector.shape_cast %169 : vector<1x1x1x8xf32> to vector<1x8xf32>
    %171 = vector.broadcast %170 : vector<1x8xf32> to vector<16x8xf32>
    %172 = arith.addf %168, %171 : vector<16x8xf32>
    %173 = arith.truncf %172 : vector<16x8xf32> to vector<16x8xbf16>
    %c0_190 = arith.constant 0 : index
    %c1_191 = arith.constant 1 : index
    %c0_192 = arith.constant 0 : index
    %c0_193 = arith.constant 0 : index
    %174 = vector.load %arg6[%c0_190, %c1_191, %c0_192, %c0_193] : memref<2x4x32x8xbf16, #tpu.memory_space<vmem>>, vector<1x1x32x8xbf16>
    %175 = vector.shape_cast %174 : vector<1x1x32x8xbf16> to vector<32x8xbf16>
    %cst_194 = arith.constant dense<0.000000e+00> : vector<16x8xf32>
    %176 = tpu.matmul %133, %175, %cst_194 {dimension_numbers = #tpu.dot_dimension_numbers<[1], [0], [0], [1], [0, 0, 1, 1], [], []>} : vector<16x32xbf16>, vector<32x8xbf16>, vector<16x8xf32> -> vector<16x8xf32>
    %c0_195 = arith.constant 0 : index
    %c1_196 = arith.constant 1 : index
    %c0_197 = arith.constant 0 : index
    %c0_198 = arith.constant 0 : index
    %177 = vector.load %arg9[%c0_195, %c1_196, %c0_197, %c0_198] : memref<2x4x1x8xf32, #tpu.memory_space<vmem>>, vector<1x1x1x8xf32>
    %178 = vector.shape_cast %177 : vector<1x1x1x8xf32> to vector<1x8xf32>
    %179 = vector.broadcast %178 : vector<1x8xf32> to vector<16x8xf32>
    %180 = arith.addf %176, %179 : vector<16x8xf32>
    %181 = arith.truncf %180 : vector<16x8xf32> to vector<16x8xbf16>
    %c0_199 = arith.constant 0 : index
    %c2_200 = arith.constant 2 : index
    %c0_201 = arith.constant 0 : index
    %c0_202 = arith.constant 0 : index
    %182 = vector.load %arg6[%c0_199, %c2_200, %c0_201, %c0_202] : memref<2x4x32x8xbf16, #tpu.memory_space<vmem>>, vector<1x1x32x8xbf16>
    %183 = vector.shape_cast %182 : vector<1x1x32x8xbf16> to vector<32x8xbf16>
    %cst_203 = arith.constant dense<0.000000e+00> : vector<16x8xf32>
    %184 = tpu.matmul %133, %183, %cst_203 {dimension_numbers = #tpu.dot_dimension_numbers<[1], [0], [0], [1], [0, 0, 1, 1], [], []>} : vector<16x32xbf16>, vector<32x8xbf16>, vector<16x8xf32> -> vector<16x8xf32>
    %c0_204 = arith.constant 0 : index
    %c2_205 = arith.constant 2 : index
    %c0_206 = arith.constant 0 : index
    %c0_207 = arith.constant 0 : index
    %185 = vector.load %arg9[%c0_204, %c2_205, %c0_206, %c0_207] : memref<2x4x1x8xf32, #tpu.memory_space<vmem>>, vector<1x1x1x8xf32>
    %186 = vector.shape_cast %185 : vector<1x1x1x8xf32> to vector<1x8xf32>
    %187 = vector.broadcast %186 : vector<1x8xf32> to vector<16x8xf32>
    %188 = arith.addf %184, %187 : vector<16x8xf32>
    %189 = arith.truncf %188 : vector<16x8xf32> to vector<16x8xbf16>
    %c0_208 = arith.constant 0 : index
    %c3_209 = arith.constant 3 : index
    %c0_210 = arith.constant 0 : index
    %c0_211 = arith.constant 0 : index
    %190 = vector.load %arg6[%c0_208, %c3_209, %c0_210, %c0_211] : memref<2x4x32x8xbf16, #tpu.memory_space<vmem>>, vector<1x1x32x8xbf16>
    %191 = vector.shape_cast %190 : vector<1x1x32x8xbf16> to vector<32x8xbf16>
    %cst_212 = arith.constant dense<0.000000e+00> : vector<16x8xf32>
    %192 = tpu.matmul %133, %191, %cst_212 {dimension_numbers = #tpu.dot_dimension_numbers<[1], [0], [0], [1], [0, 0, 1, 1], [], []>} : vector<16x32xbf16>, vector<32x8xbf16>, vector<16x8xf32> -> vector<16x8xf32>
    %c0_213 = arith.constant 0 : index
    %c3_214 = arith.constant 3 : index
    %c0_215 = arith.constant 0 : index
    %c0_216 = arith.constant 0 : index
    %193 = vector.load %arg9[%c0_213, %c3_214, %c0_215, %c0_216] : memref<2x4x1x8xf32, #tpu.memory_space<vmem>>, vector<1x1x1x8xf32>
    %194 = vector.shape_cast %193 : vector<1x1x1x8xf32> to vector<1x8xf32>
    %195 = vector.broadcast %194 : vector<1x8xf32> to vector<16x8xf32>
    %196 = arith.addf %192, %195 : vector<16x8xf32>
    %197 = arith.truncf %196 : vector<16x8xf32> to vector<16x8xbf16>
    %198 = arith.truncf %1 : vector<16x32xf32> to vector<16x32xbf16>
    %c0_217 = arith.constant 0 : index
    %c0_218 = arith.constant 0 : index
    %c0_219 = arith.constant 0 : index
    %c0_220 = arith.constant 0 : index
    %199 = vector.load %arg4[%c0_217, %c0_218, %c0_219, %c0_220] : memref<2x4x32x8xbf16, #tpu.memory_space<vmem>>, vector<1x1x32x8xbf16>
    %200 = vector.shape_cast %199 : vector<1x1x32x8xbf16> to vector<32x8xbf16>
    %cst_221 = arith.constant dense<0.000000e+00> : vector<16x8xf32>
    %201 = tpu.matmul %198, %200, %cst_221 {dimension_numbers = #tpu.dot_dimension_numbers<[1], [0], [0], [1], [0, 0, 1, 1], [], []>} : vector<16x32xbf16>, vector<32x8xbf16>, vector<16x8xf32> -> vector<16x8xf32>
    %c0_222 = arith.constant 0 : index
    %c0_223 = arith.constant 0 : index
    %c0_224 = arith.constant 0 : index
    %c0_225 = arith.constant 0 : index
    %202 = vector.load %arg7[%c0_222, %c0_223, %c0_224, %c0_225] : memref<2x4x1x8xf32, #tpu.memory_space<vmem>>, vector<1x1x1x8xf32>
    %203 = vector.shape_cast %202 : vector<1x1x1x8xf32> to vector<1x8xf32>
    %204 = vector.broadcast %203 : vector<1x8xf32> to vector<16x8xf32>
    %205 = arith.addf %201, %204 : vector<16x8xf32>
    %206 = arith.truncf %205 : vector<16x8xf32> to vector<16x8xbf16>
    "tpu.trace_start"() <{level = 10 : i32, message = "qd,kd->qk"}> : () -> ()
    %cst_226 = arith.constant dense<0.000000e+00> : vector<16x16xf32>
    %207 = tpu.matmul %206, %141, %cst_226 {dimension_numbers = #tpu.dot_dimension_numbers<[1], [1], [0], [0], [0, 0, 1, 0], [], []>} : vector<16x8xbf16>, vector<16x8xbf16>, vector<16x16xf32> -> vector<16x16xf32>
    "tpu.trace_stop"() : () -> ()
    %cst_227 = arith.constant dense<0xFF800000> : vector<16xf32>
    %208 = vector.multi_reduction <maximumf>, %207, %cst_227 [1] : vector<16x16xf32> to vector<16xf32>
    %209 = vector.shape_cast %208 : vector<16xf32> to vector<16x1xf32>
    %210 = vector.broadcast %209 : vector<16x1xf32> to vector<16x16xf32>
    %211 = arith.subf %207, %210 : vector<16x16xf32>
    %212 = math.exp %211 : vector<16x16xf32>
    %cst_228 = arith.constant dense<0.000000e+00> : vector<16xf32>
    %213 = vector.multi_reduction <add>, %212, %cst_228 [1] : vector<16x16xf32> to vector<16xf32>
    %214 = vector.shape_cast %213 : vector<16xf32> to vector<16x1xf32>
    %215 = tpu.reciprocal %214 {approx = true} : vector<16x1xf32> -> vector<16x1xf32>
    %216 = vector.broadcast %215 : vector<16x1xf32> to vector<16x16xf32>
    %217 = arith.mulf %212, %216 : vector<16x16xf32>
    %218 = arith.truncf %217 : vector<16x16xf32> to vector<16x16xbf16>
    %cst_229 = arith.constant dense<0.000000e+00> : vector<16x8xf32>
    %219 = tpu.matmul %218, %173, %cst_229 {dimension_numbers = #tpu.dot_dimension_numbers<[1], [0], [0], [1], [0, 0, 1, 1], [], []>} : vector<16x16xbf16>, vector<16x8xbf16>, vector<16x8xf32> -> vector<16x8xf32>
    %220 = arith.truncf %219 : vector<16x8xf32> to vector<16x8xbf16>
    %c0_230 = arith.constant 0 : index
    %c0_231 = arith.constant 0 : index
    %c0_232 = arith.constant 0 : index
    %c0_233 = arith.constant 0 : index
    %221 = vector.load %arg10[%c0_230, %c0_231, %c0_232, %c0_233] : memref<2x4x8x32xbf16, #tpu.memory_space<vmem>>, vector<1x1x8x32xbf16>
    %222 = vector.shape_cast %221 : vector<1x1x8x32xbf16> to vector<8x32xbf16>
    %cst_234 = arith.constant dense<0.000000e+00> : vector<16x32xf32>
    %223 = tpu.matmul %220, %222, %cst_234 {dimension_numbers = #tpu.dot_dimension_numbers<[1], [0], [0], [1], [0, 0, 1, 1], [], []>} : vector<16x8xbf16>, vector<8x32xbf16>, vector<16x32xf32> -> vector<16x32xf32>
    %c0_235 = arith.constant 0 : index
    %c1_236 = arith.constant 1 : index
    %c0_237 = arith.constant 0 : index
    %c0_238 = arith.constant 0 : index
    %224 = vector.load %arg4[%c0_235, %c1_236, %c0_237, %c0_238] : memref<2x4x32x8xbf16, #tpu.memory_space<vmem>>, vector<1x1x32x8xbf16>
    %225 = vector.shape_cast %224 : vector<1x1x32x8xbf16> to vector<32x8xbf16>
    %cst_239 = arith.constant dense<0.000000e+00> : vector<16x8xf32>
    %226 = tpu.matmul %198, %225, %cst_239 {dimension_numbers = #tpu.dot_dimension_numbers<[1], [0], [0], [1], [0, 0, 1, 1], [], []>} : vector<16x32xbf16>, vector<32x8xbf16>, vector<16x8xf32> -> vector<16x8xf32>
    %c0_240 = arith.constant 0 : index
    %c1_241 = arith.constant 1 : index
    %c0_242 = arith.constant 0 : index
    %c0_243 = arith.constant 0 : index
    %227 = vector.load %arg7[%c0_240, %c1_241, %c0_242, %c0_243] : memref<2x4x1x8xf32, #tpu.memory_space<vmem>>, vector<1x1x1x8xf32>
    %228 = vector.shape_cast %227 : vector<1x1x1x8xf32> to vector<1x8xf32>
    %229 = vector.broadcast %228 : vector<1x8xf32> to vector<16x8xf32>
    %230 = arith.addf %226, %229 : vector<16x8xf32>
    %231 = arith.truncf %230 : vector<16x8xf32> to vector<16x8xbf16>
    "tpu.trace_start"() <{level = 10 : i32, message = "qd,kd->qk"}> : () -> ()
    %cst_244 = arith.constant dense<0.000000e+00> : vector<16x16xf32>
    %232 = tpu.matmul %231, %149, %cst_244 {dimension_numbers = #tpu.dot_dimension_numbers<[1], [1], [0], [0], [0, 0, 1, 0], [], []>} : vector<16x8xbf16>, vector<16x8xbf16>, vector<16x16xf32> -> vector<16x16xf32>
    "tpu.trace_stop"() : () -> ()
    %cst_245 = arith.constant dense<0xFF800000> : vector<16xf32>
    %233 = vector.multi_reduction <maximumf>, %232, %cst_245 [1] : vector<16x16xf32> to vector<16xf32>
    %234 = vector.shape_cast %233 : vector<16xf32> to vector<16x1xf32>
    %235 = vector.broadcast %234 : vector<16x1xf32> to vector<16x16xf32>
    %236 = arith.subf %232, %235 : vector<16x16xf32>
    %237 = math.exp %236 : vector<16x16xf32>
    %cst_246 = arith.constant dense<0.000000e+00> : vector<16xf32>
    %238 = vector.multi_reduction <add>, %237, %cst_246 [1] : vector<16x16xf32> to vector<16xf32>
    %239 = vector.shape_cast %238 : vector<16xf32> to vector<16x1xf32>
    %240 = tpu.reciprocal %239 {approx = true} : vector<16x1xf32> -> vector<16x1xf32>
    %241 = vector.broadcast %240 : vector<16x1xf32> to vector<16x16xf32>
    %242 = arith.mulf %237, %241 : vector<16x16xf32>
    %243 = arith.truncf %242 : vector<16x16xf32> to vector<16x16xbf16>
    %cst_247 = arith.constant dense<0.000000e+00> : vector<16x8xf32>
    %244 = tpu.matmul %243, %181, %cst_247 {dimension_numbers = #tpu.dot_dimension_numbers<[1], [0], [0], [1], [0, 0, 1, 1], [], []>} : vector<16x16xbf16>, vector<16x8xbf16>, vector<16x8xf32> -> vector<16x8xf32>
    %245 = arith.truncf %244 : vector<16x8xf32> to vector<16x8xbf16>
    %c0_248 = arith.constant 0 : index
    %c1_249 = arith.constant 1 : index
    %c0_250 = arith.constant 0 : index
    %c0_251 = arith.constant 0 : index
    %246 = vector.load %arg10[%c0_248, %c1_249, %c0_250, %c0_251] : memref<2x4x8x32xbf16, #tpu.memory_space<vmem>>, vector<1x1x8x32xbf16>
    %247 = vector.shape_cast %246 : vector<1x1x8x32xbf16> to vector<8x32xbf16>
    %cst_252 = arith.constant dense<0.000000e+00> : vector<16x32xf32>
    %248 = tpu.matmul %245, %247, %cst_252 {dimension_numbers = #tpu.dot_dimension_numbers<[1], [0], [0], [1], [0, 0, 1, 1], [], []>} : vector<16x8xbf16>, vector<8x32xbf16>, vector<16x32xf32> -> vector<16x32xf32>
    %249 = arith.addf %223, %248 : vector<16x32xf32>
    %c0_253 = arith.constant 0 : index
    %c2_254 = arith.constant 2 : index
    %c0_255 = arith.constant 0 : index
    %c0_256 = arith.constant 0 : index
    %250 = vector.load %arg4[%c0_253, %c2_254, %c0_255, %c0_256] : memref<2x4x32x8xbf16, #tpu.memory_space<vmem>>, vector<1x1x32x8xbf16>
    %251 = vector.shape_cast %250 : vector<1x1x32x8xbf16> to vector<32x8xbf16>
    %cst_257 = arith.constant dense<0.000000e+00> : vector<16x8xf32>
    %252 = tpu.matmul %198, %251, %cst_257 {dimension_numbers = #tpu.dot_dimension_numbers<[1], [0], [0], [1], [0, 0, 1, 1], [], []>} : vector<16x32xbf16>, vector<32x8xbf16>, vector<16x8xf32> -> vector<16x8xf32>
    %c0_258 = arith.constant 0 : index
    %c2_259 = arith.constant 2 : index
    %c0_260 = arith.constant 0 : index
    %c0_261 = arith.constant 0 : index
    %253 = vector.load %arg7[%c0_258, %c2_259, %c0_260, %c0_261] : memref<2x4x1x8xf32, #tpu.memory_space<vmem>>, vector<1x1x1x8xf32>
    %254 = vector.shape_cast %253 : vector<1x1x1x8xf32> to vector<1x8xf32>
    %255 = vector.broadcast %254 : vector<1x8xf32> to vector<16x8xf32>
    %256 = arith.addf %252, %255 : vector<16x8xf32>
    %257 = arith.truncf %256 : vector<16x8xf32> to vector<16x8xbf16>
    "tpu.trace_start"() <{level = 10 : i32, message = "qd,kd->qk"}> : () -> ()
    %cst_262 = arith.constant dense<0.000000e+00> : vector<16x16xf32>
    %258 = tpu.matmul %257, %157, %cst_262 {dimension_numbers = #tpu.dot_dimension_numbers<[1], [1], [0], [0], [0, 0, 1, 0], [], []>} : vector<16x8xbf16>, vector<16x8xbf16>, vector<16x16xf32> -> vector<16x16xf32>
    "tpu.trace_stop"() : () -> ()
    %cst_263 = arith.constant dense<0xFF800000> : vector<16xf32>
    %259 = vector.multi_reduction <maximumf>, %258, %cst_263 [1] : vector<16x16xf32> to vector<16xf32>
    %260 = vector.shape_cast %259 : vector<16xf32> to vector<16x1xf32>
    %261 = vector.broadcast %260 : vector<16x1xf32> to vector<16x16xf32>
    %262 = arith.subf %258, %261 : vector<16x16xf32>
    %263 = math.exp %262 : vector<16x16xf32>
    %cst_264 = arith.constant dense<0.000000e+00> : vector<16xf32>
    %264 = vector.multi_reduction <add>, %263, %cst_264 [1] : vector<16x16xf32> to vector<16xf32>
    %265 = vector.shape_cast %264 : vector<16xf32> to vector<16x1xf32>
    %266 = tpu.reciprocal %265 {approx = true} : vector<16x1xf32> -> vector<16x1xf32>
    %267 = vector.broadcast %266 : vector<16x1xf32> to vector<16x16xf32>
    %268 = arith.mulf %263, %267 : vector<16x16xf32>
    %269 = arith.truncf %268 : vector<16x16xf32> to vector<16x16xbf16>
    %cst_265 = arith.constant dense<0.000000e+00> : vector<16x8xf32>
    %270 = tpu.matmul %269, %189, %cst_265 {dimension_numbers = #tpu.dot_dimension_numbers<[1], [0], [0], [1], [0, 0, 1, 1], [], []>} : vector<16x16xbf16>, vector<16x8xbf16>, vector<16x8xf32> -> vector<16x8xf32>
    %271 = arith.truncf %270 : vector<16x8xf32> to vector<16x8xbf16>
    %c0_266 = arith.constant 0 : index
    %c2_267 = arith.constant 2 : index
    %c0_268 = arith.constant 0 : index
    %c0_269 = arith.constant 0 : index
    %272 = vector.load %arg10[%c0_266, %c2_267, %c0_268, %c0_269] : memref<2x4x8x32xbf16, #tpu.memory_space<vmem>>, vector<1x1x8x32xbf16>
    %273 = vector.shape_cast %272 : vector<1x1x8x32xbf16> to vector<8x32xbf16>
    %cst_270 = arith.constant dense<0.000000e+00> : vector<16x32xf32>
    %274 = tpu.matmul %271, %273, %cst_270 {dimension_numbers = #tpu.dot_dimension_numbers<[1], [0], [0], [1], [0, 0, 1, 1], [], []>} : vector<16x8xbf16>, vector<8x32xbf16>, vector<16x32xf32> -> vector<16x32xf32>
    %275 = arith.addf %249, %274 : vector<16x32xf32>
    %c0_271 = arith.constant 0 : index
    %c3_272 = arith.constant 3 : index
    %c0_273 = arith.constant 0 : index
    %c0_274 = arith.constant 0 : index
    %276 = vector.load %arg4[%c0_271, %c3_272, %c0_273, %c0_274] : memref<2x4x32x8xbf16, #tpu.memory_space<vmem>>, vector<1x1x32x8xbf16>
    %277 = vector.shape_cast %276 : vector<1x1x32x8xbf16> to vector<32x8xbf16>
    %cst_275 = arith.constant dense<0.000000e+00> : vector<16x8xf32>
    %278 = tpu.matmul %198, %277, %cst_275 {dimension_numbers = #tpu.dot_dimension_numbers<[1], [0], [0], [1], [0, 0, 1, 1], [], []>} : vector<16x32xbf16>, vector<32x8xbf16>, vector<16x8xf32> -> vector<16x8xf32>
    %c0_276 = arith.constant 0 : index
    %c3_277 = arith.constant 3 : index
    %c0_278 = arith.constant 0 : index
    %c0_279 = arith.constant 0 : index
    %279 = vector.load %arg7[%c0_276, %c3_277, %c0_278, %c0_279] : memref<2x4x1x8xf32, #tpu.memory_space<vmem>>, vector<1x1x1x8xf32>
    %280 = vector.shape_cast %279 : vector<1x1x1x8xf32> to vector<1x8xf32>
    %281 = vector.broadcast %280 : vector<1x8xf32> to vector<16x8xf32>
    %282 = arith.addf %278, %281 : vector<16x8xf32>
    %283 = arith.truncf %282 : vector<16x8xf32> to vector<16x8xbf16>
    "tpu.trace_start"() <{level = 10 : i32, message = "qd,kd->qk"}> : () -> ()
    %cst_280 = arith.constant dense<0.000000e+00> : vector<16x16xf32>
    %284 = tpu.matmul %283, %165, %cst_280 {dimension_numbers = #tpu.dot_dimension_numbers<[1], [1], [0], [0], [0, 0, 1, 0], [], []>} : vector<16x8xbf16>, vector<16x8xbf16>, vector<16x16xf32> -> vector<16x16xf32>
    "tpu.trace_stop"() : () -> ()
    %cst_281 = arith.constant dense<0xFF800000> : vector<16xf32>
    %285 = vector.multi_reduction <maximumf>, %284, %cst_281 [1] : vector<16x16xf32> to vector<16xf32>
    %286 = vector.shape_cast %285 : vector<16xf32> to vector<16x1xf32>
    %287 = vector.broadcast %286 : vector<16x1xf32> to vector<16x16xf32>
    %288 = arith.subf %284, %287 : vector<16x16xf32>
    %289 = math.exp %288 : vector<16x16xf32>
    %cst_282 = arith.constant dense<0.000000e+00> : vector<16xf32>
    %290 = vector.multi_reduction <add>, %289, %cst_282 [1] : vector<16x16xf32> to vector<16xf32>
    %291 = vector.shape_cast %290 : vector<16xf32> to vector<16x1xf32>
    %292 = tpu.reciprocal %291 {approx = true} : vector<16x1xf32> -> vector<16x1xf32>
    %293 = vector.broadcast %292 : vector<16x1xf32> to vector<16x16xf32>
    %294 = arith.mulf %289, %293 : vector<16x16xf32>
    %295 = arith.truncf %294 : vector<16x16xf32> to vector<16x16xbf16>
    %cst_283 = arith.constant dense<0.000000e+00> : vector<16x8xf32>
    %296 = tpu.matmul %295, %197, %cst_283 {dimension_numbers = #tpu.dot_dimension_numbers<[1], [0], [0], [1], [0, 0, 1, 1], [], []>} : vector<16x16xbf16>, vector<16x8xbf16>, vector<16x8xf32> -> vector<16x8xf32>
    %297 = arith.truncf %296 : vector<16x8xf32> to vector<16x8xbf16>
    %c0_284 = arith.constant 0 : index
    %c3_285 = arith.constant 3 : index
    %c0_286 = arith.constant 0 : index
    %c0_287 = arith.constant 0 : index
    %298 = vector.load %arg10[%c0_284, %c3_285, %c0_286, %c0_287] : memref<2x4x8x32xbf16, #tpu.memory_space<vmem>>, vector<1x1x8x32xbf16>
    %299 = vector.shape_cast %298 : vector<1x1x8x32xbf16> to vector<8x32xbf16>
    %cst_288 = arith.constant dense<0.000000e+00> : vector<16x32xf32>
    %300 = tpu.matmul %297, %299, %cst_288 {dimension_numbers = #tpu.dot_dimension_numbers<[1], [0], [0], [1], [0, 0, 1, 1], [], []>} : vector<16x8xbf16>, vector<8x32xbf16>, vector<16x32xf32> -> vector<16x32xf32>
    %301 = arith.addf %275, %300 : vector<16x32xf32>
    %c0_289 = arith.constant 0 : index
    %c0_290 = arith.constant 0 : index
    %c0_291 = arith.constant 0 : index
    %302 = vector.load %arg11[%c0_289, %c0_290, %c0_291] : memref<2x1x32xf32, #tpu.memory_space<vmem>>, vector<1x1x32xf32>
    %303 = vector.shape_cast %302 : vector<1x1x32xf32> to vector<1x32xf32>
    %304 = vector.broadcast %303 : vector<1x32xf32> to vector<16x32xf32>
    %305 = arith.addf %301, %304 : vector<16x32xf32>
    %306 = arith.addf %1, %305 : vector<16x32xf32>
    %c0_292 = arith.constant 0 : index
    %c0_293 = arith.constant 0 : index
    %c0_294 = arith.constant 0 : index
    %c0_295 = arith.constant 0 : index
    %307 = vector.load %arg24[%c0_292, %c0_293, %c0_294, %c0_295] : memref<2x3x1x32xf32, #tpu.memory_space<vmem>>, vector<1x1x1x32xf32>
    %308 = vector.shape_cast %307 : vector<1x1x1x32xf32> to vector<1x32xf32>
    %c0_296 = arith.constant 0 : index
    %c0_297 = arith.constant 0 : index
    %c0_298 = arith.constant 0 : index
    %c0_299 = arith.constant 0 : index
    %309 = vector.load %arg25[%c0_296, %c0_297, %c0_298, %c0_299] : memref<2x3x1x32xf32, #tpu.memory_space<vmem>>, vector<1x1x1x32xf32>
    %310 = vector.shape_cast %309 : vector<1x1x1x32xf32> to vector<1x32xf32>
    %cst_300 = arith.constant dense<0.000000e+00> : vector<16xf32>
    %311 = vector.multi_reduction <add>, %306, %cst_300 [1] : vector<16x32xf32> to vector<16xf32>
    %312 = vector.shape_cast %311 : vector<16xf32> to vector<16x1xf32>
    %cst_301 = arith.constant 3.200000e+01 : f32
    %313 = vector.broadcast %cst_301 : f32 to vector<16x1xf32>
    %314 = arith.divf %312, %313 : vector<16x1xf32>
    %315 = vector.broadcast %314 : vector<16x1xf32> to vector<16x32xf32>
    %316 = arith.subf %306, %315 : vector<16x32xf32>
    %317 = arith.mulf %316, %316 : vector<16x32xf32>
    %cst_302 = arith.constant dense<0.000000e+00> : vector<16xf32>
    %318 = vector.multi_reduction <add>, %317, %cst_302 [1] : vector<16x32xf32> to vector<16xf32>
    %319 = vector.shape_cast %318 : vector<16xf32> to vector<16x1xf32>
    %cst_303 = arith.constant 3.200000e+01 : f32
    %320 = vector.broadcast %cst_303 : f32 to vector<16x1xf32>
    %321 = arith.divf %319, %320 : vector<16x1xf32>
    %322 = vector.broadcast %314 : vector<16x1xf32> to vector<16x32xf32>
    %323 = arith.subf %306, %322 : vector<16x32xf32>
    %cst_304 = arith.constant 9.99999974E-6 : f32
    %324 = vector.broadcast %cst_304 : f32 to vector<16x1xf32>
    %325 = arith.addf %321, %324 : vector<16x1xf32>
    %326 = math.rsqrt %325 : vector<16x1xf32>
    %327 = vector.broadcast %326 : vector<16x1xf32> to vector<16x32xf32>
    %328 = arith.mulf %323, %327 : vector<16x32xf32>
    %329 = vector.broadcast %308 : vector<1x32xf32> to vector<16x32xf32>
    %330 = arith.mulf %328, %329 : vector<16x32xf32>
    %331 = vector.broadcast %310 : vector<1x32xf32> to vector<16x32xf32>
    %332 = arith.addf %330, %331 : vector<16x32xf32>
    %333 = arith.truncf %332 : vector<16x32xf32> to vector<16x32xbf16>
    %c0_305 = arith.constant 0 : index
    %c0_306 = arith.constant 0 : index
    %c0_307 = arith.constant 0 : index
    %c0_308 = arith.constant 0 : index
    %334 = vector.load %arg12[%c0_305, %c0_306, %c0_307, %c0_308] : memref<2x4x32x8xbf16, #tpu.memory_space<vmem>>, vector<1x1x32x8xbf16>
    %335 = vector.shape_cast %334 : vector<1x1x32x8xbf16> to vector<32x8xbf16>
    %cst_309 = arith.constant dense<0.000000e+00> : vector<16x8xf32>
    %336 = tpu.matmul %333, %335, %cst_309 {dimension_numbers = #tpu.dot_dimension_numbers<[1], [0], [0], [1], [0, 0, 1, 1], [], []>} : vector<16x32xbf16>, vector<32x8xbf16>, vector<16x8xf32> -> vector<16x8xf32>
    %c0_310 = arith.constant 0 : index
    %c0_311 = arith.constant 0 : index
    %c0_312 = arith.constant 0 : index
    %c0_313 = arith.constant 0 : index
    %337 = vector.load %arg15[%c0_310, %c0_311, %c0_312, %c0_313] : memref<2x4x1x8xf32, #tpu.memory_space<vmem>>, vector<1x1x1x8xf32>
    %338 = vector.shape_cast %337 : vector<1x1x1x8xf32> to vector<1x8xf32>
    %339 = vector.broadcast %338 : vector<1x8xf32> to vector<16x8xf32>
    %340 = arith.addf %336, %339 : vector<16x8xf32>
    %341 = arith.truncf %340 : vector<16x8xf32> to vector<16x8xbf16>
    "tpu.trace_start"() <{level = 10 : i32, message = "qd,kd->qk"}> : () -> ()
    %cst_314 = arith.constant dense<0.000000e+00> : vector<16x8xf32>
    %342 = tpu.matmul %341, %12, %cst_314 {dimension_numbers = #tpu.dot_dimension_numbers<[1], [1], [0], [0], [0, 0, 1, 0], [], []>} : vector<16x8xbf16>, vector<8x8xbf16>, vector<16x8xf32> -> vector<16x8xf32>
    "tpu.trace_stop"() : () -> ()
    %cst_315 = arith.constant dense<0xFF800000> : vector<16xf32>
    %343 = vector.multi_reduction <maximumf>, %342, %cst_315 [1] : vector<16x8xf32> to vector<16xf32>
    %344 = vector.shape_cast %343 : vector<16xf32> to vector<16x1xf32>
    %345 = vector.broadcast %344 : vector<16x1xf32> to vector<16x8xf32>
    %346 = arith.subf %342, %345 : vector<16x8xf32>
    %347 = math.exp %346 : vector<16x8xf32>
    %cst_316 = arith.constant dense<0.000000e+00> : vector<16xf32>
    %348 = vector.multi_reduction <add>, %347, %cst_316 [1] : vector<16x8xf32> to vector<16xf32>
    %349 = vector.shape_cast %348 : vector<16xf32> to vector<16x1xf32>
    %350 = tpu.reciprocal %349 {approx = true} : vector<16x1xf32> -> vector<16x1xf32>
    %351 = vector.broadcast %350 : vector<16x1xf32> to vector<16x8xf32>
    %352 = arith.mulf %347, %351 : vector<16x8xf32>
    %353 = arith.truncf %352 : vector<16x8xf32> to vector<16x8xbf16>
    %cst_317 = arith.constant dense<0.000000e+00> : vector<16x8xf32>
    %354 = tpu.matmul %353, %76, %cst_317 {dimension_numbers = #tpu.dot_dimension_numbers<[1], [0], [0], [1], [0, 0, 1, 1], [], []>} : vector<16x8xbf16>, vector<8x8xbf16>, vector<16x8xf32> -> vector<16x8xf32>
    %355 = arith.truncf %354 : vector<16x8xf32> to vector<16x8xbf16>
    %c0_318 = arith.constant 0 : index
    %c0_319 = arith.constant 0 : index
    %c0_320 = arith.constant 0 : index
    %c0_321 = arith.constant 0 : index
    %356 = vector.load %arg18[%c0_318, %c0_319, %c0_320, %c0_321] : memref<2x4x8x32xbf16, #tpu.memory_space<vmem>>, vector<1x1x8x32xbf16>
    %357 = vector.shape_cast %356 : vector<1x1x8x32xbf16> to vector<8x32xbf16>
    %cst_322 = arith.constant dense<0.000000e+00> : vector<16x32xf32>
    %358 = tpu.matmul %355, %357, %cst_322 {dimension_numbers = #tpu.dot_dimension_numbers<[1], [0], [0], [1], [0, 0, 1, 1], [], []>} : vector<16x8xbf16>, vector<8x32xbf16>, vector<16x32xf32> -> vector<16x32xf32>
    %c0_323 = arith.constant 0 : index
    %c1_324 = arith.constant 1 : index
    %c0_325 = arith.constant 0 : index
    %c0_326 = arith.constant 0 : index
    %359 = vector.load %arg12[%c0_323, %c1_324, %c0_325, %c0_326] : memref<2x4x32x8xbf16, #tpu.memory_space<vmem>>, vector<1x1x32x8xbf16>
    %360 = vector.shape_cast %359 : vector<1x1x32x8xbf16> to vector<32x8xbf16>
    %cst_327 = arith.constant dense<0.000000e+00> : vector<16x8xf32>
    %361 = tpu.matmul %333, %360, %cst_327 {dimension_numbers = #tpu.dot_dimension_numbers<[1], [0], [0], [1], [0, 0, 1, 1], [], []>} : vector<16x32xbf16>, vector<32x8xbf16>, vector<16x8xf32> -> vector<16x8xf32>
    %c0_328 = arith.constant 0 : index
    %c1_329 = arith.constant 1 : index
    %c0_330 = arith.constant 0 : index
    %c0_331 = arith.constant 0 : index
    %362 = vector.load %arg15[%c0_328, %c1_329, %c0_330, %c0_331] : memref<2x4x1x8xf32, #tpu.memory_space<vmem>>, vector<1x1x1x8xf32>
    %363 = vector.shape_cast %362 : vector<1x1x1x8xf32> to vector<1x8xf32>
    %364 = vector.broadcast %363 : vector<1x8xf32> to vector<16x8xf32>
    %365 = arith.addf %361, %364 : vector<16x8xf32>
    %366 = arith.truncf %365 : vector<16x8xf32> to vector<16x8xbf16>
    "tpu.trace_start"() <{level = 10 : i32, message = "qd,kd->qk"}> : () -> ()
    %cst_332 = arith.constant dense<0.000000e+00> : vector<16x8xf32>
    %367 = tpu.matmul %366, %20, %cst_332 {dimension_numbers = #tpu.dot_dimension_numbers<[1], [1], [0], [0], [0, 0, 1, 0], [], []>} : vector<16x8xbf16>, vector<8x8xbf16>, vector<16x8xf32> -> vector<16x8xf32>
    "tpu.trace_stop"() : () -> ()
    %cst_333 = arith.constant dense<0xFF800000> : vector<16xf32>
    %368 = vector.multi_reduction <maximumf>, %367, %cst_333 [1] : vector<16x8xf32> to vector<16xf32>
    %369 = vector.shape_cast %368 : vector<16xf32> to vector<16x1xf32>
    %370 = vector.broadcast %369 : vector<16x1xf32> to vector<16x8xf32>
    %371 = arith.subf %367, %370 : vector<16x8xf32>
    %372 = math.exp %371 : vector<16x8xf32>
    %cst_334 = arith.constant dense<0.000000e+00> : vector<16xf32>
    %373 = vector.multi_reduction <add>, %372, %cst_334 [1] : vector<16x8xf32> to vector<16xf32>
    %374 = vector.shape_cast %373 : vector<16xf32> to vector<16x1xf32>
    %375 = tpu.reciprocal %374 {approx = true} : vector<16x1xf32> -> vector<16x1xf32>
    %376 = vector.broadcast %375 : vector<16x1xf32> to vector<16x8xf32>
    %377 = arith.mulf %372, %376 : vector<16x8xf32>
    %378 = arith.truncf %377 : vector<16x8xf32> to vector<16x8xbf16>
    %cst_335 = arith.constant dense<0.000000e+00> : vector<16x8xf32>
    %379 = tpu.matmul %378, %84, %cst_335 {dimension_numbers = #tpu.dot_dimension_numbers<[1], [0], [0], [1], [0, 0, 1, 1], [], []>} : vector<16x8xbf16>, vector<8x8xbf16>, vector<16x8xf32> -> vector<16x8xf32>
    %380 = arith.truncf %379 : vector<16x8xf32> to vector<16x8xbf16>
    %c0_336 = arith.constant 0 : index
    %c1_337 = arith.constant 1 : index
    %c0_338 = arith.constant 0 : index
    %c0_339 = arith.constant 0 : index
    %381 = vector.load %arg18[%c0_336, %c1_337, %c0_338, %c0_339] : memref<2x4x8x32xbf16, #tpu.memory_space<vmem>>, vector<1x1x8x32xbf16>
    %382 = vector.shape_cast %381 : vector<1x1x8x32xbf16> to vector<8x32xbf16>
    %cst_340 = arith.constant dense<0.000000e+00> : vector<16x32xf32>
    %383 = tpu.matmul %380, %382, %cst_340 {dimension_numbers = #tpu.dot_dimension_numbers<[1], [0], [0], [1], [0, 0, 1, 1], [], []>} : vector<16x8xbf16>, vector<8x32xbf16>, vector<16x32xf32> -> vector<16x32xf32>
    %384 = arith.addf %358, %383 : vector<16x32xf32>
    %c0_341 = arith.constant 0 : index
    %c2_342 = arith.constant 2 : index
    %c0_343 = arith.constant 0 : index
    %c0_344 = arith.constant 0 : index
    %385 = vector.load %arg12[%c0_341, %c2_342, %c0_343, %c0_344] : memref<2x4x32x8xbf16, #tpu.memory_space<vmem>>, vector<1x1x32x8xbf16>
    %386 = vector.shape_cast %385 : vector<1x1x32x8xbf16> to vector<32x8xbf16>
    %cst_345 = arith.constant dense<0.000000e+00> : vector<16x8xf32>
    %387 = tpu.matmul %333, %386, %cst_345 {dimension_numbers = #tpu.dot_dimension_numbers<[1], [0], [0], [1], [0, 0, 1, 1], [], []>} : vector<16x32xbf16>, vector<32x8xbf16>, vector<16x8xf32> -> vector<16x8xf32>
    %c0_346 = arith.constant 0 : index
    %c2_347 = arith.constant 2 : index
    %c0_348 = arith.constant 0 : index
    %c0_349 = arith.constant 0 : index
    %388 = vector.load %arg15[%c0_346, %c2_347, %c0_348, %c0_349] : memref<2x4x1x8xf32, #tpu.memory_space<vmem>>, vector<1x1x1x8xf32>
    %389 = vector.shape_cast %388 : vector<1x1x1x8xf32> to vector<1x8xf32>
    %390 = vector.broadcast %389 : vector<1x8xf32> to vector<16x8xf32>
    %391 = arith.addf %387, %390 : vector<16x8xf32>
    %392 = arith.truncf %391 : vector<16x8xf32> to vector<16x8xbf16>
    "tpu.trace_start"() <{level = 10 : i32, message = "qd,kd->qk"}> : () -> ()
    %cst_350 = arith.constant dense<0.000000e+00> : vector<16x8xf32>
    %393 = tpu.matmul %392, %28, %cst_350 {dimension_numbers = #tpu.dot_dimension_numbers<[1], [1], [0], [0], [0, 0, 1, 0], [], []>} : vector<16x8xbf16>, vector<8x8xbf16>, vector<16x8xf32> -> vector<16x8xf32>
    "tpu.trace_stop"() : () -> ()
    %cst_351 = arith.constant dense<0xFF800000> : vector<16xf32>
    %394 = vector.multi_reduction <maximumf>, %393, %cst_351 [1] : vector<16x8xf32> to vector<16xf32>
    %395 = vector.shape_cast %394 : vector<16xf32> to vector<16x1xf32>
    %396 = vector.broadcast %395 : vector<16x1xf32> to vector<16x8xf32>
    %397 = arith.subf %393, %396 : vector<16x8xf32>
    %398 = math.exp %397 : vector<16x8xf32>
    %cst_352 = arith.constant dense<0.000000e+00> : vector<16xf32>
    %399 = vector.multi_reduction <add>, %398, %cst_352 [1] : vector<16x8xf32> to vector<16xf32>
    %400 = vector.shape_cast %399 : vector<16xf32> to vector<16x1xf32>
    %401 = tpu.reciprocal %400 {approx = true} : vector<16x1xf32> -> vector<16x1xf32>
    %402 = vector.broadcast %401 : vector<16x1xf32> to vector<16x8xf32>
    %403 = arith.mulf %398, %402 : vector<16x8xf32>
    %404 = arith.truncf %403 : vector<16x8xf32> to vector<16x8xbf16>
    %cst_353 = arith.constant dense<0.000000e+00> : vector<16x8xf32>
    %405 = tpu.matmul %404, %92, %cst_353 {dimension_numbers = #tpu.dot_dimension_numbers<[1], [0], [0], [1], [0, 0, 1, 1], [], []>} : vector<16x8xbf16>, vector<8x8xbf16>, vector<16x8xf32> -> vector<16x8xf32>
    %406 = arith.truncf %405 : vector<16x8xf32> to vector<16x8xbf16>
    %c0_354 = arith.constant 0 : index
    %c2_355 = arith.constant 2 : index
    %c0_356 = arith.constant 0 : index
    %c0_357 = arith.constant 0 : index
    %407 = vector.load %arg18[%c0_354, %c2_355, %c0_356, %c0_357] : memref<2x4x8x32xbf16, #tpu.memory_space<vmem>>, vector<1x1x8x32xbf16>
    %408 = vector.shape_cast %407 : vector<1x1x8x32xbf16> to vector<8x32xbf16>
    %cst_358 = arith.constant dense<0.000000e+00> : vector<16x32xf32>
    %409 = tpu.matmul %406, %408, %cst_358 {dimension_numbers = #tpu.dot_dimension_numbers<[1], [0], [0], [1], [0, 0, 1, 1], [], []>} : vector<16x8xbf16>, vector<8x32xbf16>, vector<16x32xf32> -> vector<16x32xf32>
    %410 = arith.addf %384, %409 : vector<16x32xf32>
    %c0_359 = arith.constant 0 : index
    %c3_360 = arith.constant 3 : index
    %c0_361 = arith.constant 0 : index
    %c0_362 = arith.constant 0 : index
    %411 = vector.load %arg12[%c0_359, %c3_360, %c0_361, %c0_362] : memref<2x4x32x8xbf16, #tpu.memory_space<vmem>>, vector<1x1x32x8xbf16>
    %412 = vector.shape_cast %411 : vector<1x1x32x8xbf16> to vector<32x8xbf16>
    %cst_363 = arith.constant dense<0.000000e+00> : vector<16x8xf32>
    %413 = tpu.matmul %333, %412, %cst_363 {dimension_numbers = #tpu.dot_dimension_numbers<[1], [0], [0], [1], [0, 0, 1, 1], [], []>} : vector<16x32xbf16>, vector<32x8xbf16>, vector<16x8xf32> -> vector<16x8xf32>
    %c0_364 = arith.constant 0 : index
    %c3_365 = arith.constant 3 : index
    %c0_366 = arith.constant 0 : index
    %c0_367 = arith.constant 0 : index
    %414 = vector.load %arg15[%c0_364, %c3_365, %c0_366, %c0_367] : memref<2x4x1x8xf32, #tpu.memory_space<vmem>>, vector<1x1x1x8xf32>
    %415 = vector.shape_cast %414 : vector<1x1x1x8xf32> to vector<1x8xf32>
    %416 = vector.broadcast %415 : vector<1x8xf32> to vector<16x8xf32>
    %417 = arith.addf %413, %416 : vector<16x8xf32>
    %418 = arith.truncf %417 : vector<16x8xf32> to vector<16x8xbf16>
    "tpu.trace_start"() <{level = 10 : i32, message = "qd,kd->qk"}> : () -> ()
    %cst_368 = arith.constant dense<0.000000e+00> : vector<16x8xf32>
    %419 = tpu.matmul %418, %36, %cst_368 {dimension_numbers = #tpu.dot_dimension_numbers<[1], [1], [0], [0], [0, 0, 1, 0], [], []>} : vector<16x8xbf16>, vector<8x8xbf16>, vector<16x8xf32> -> vector<16x8xf32>
    "tpu.trace_stop"() : () -> ()
    %cst_369 = arith.constant dense<0xFF800000> : vector<16xf32>
    %420 = vector.multi_reduction <maximumf>, %419, %cst_369 [1] : vector<16x8xf32> to vector<16xf32>
    %421 = vector.shape_cast %420 : vector<16xf32> to vector<16x1xf32>
    %422 = vector.broadcast %421 : vector<16x1xf32> to vector<16x8xf32>
    %423 = arith.subf %419, %422 : vector<16x8xf32>
    %424 = math.exp %423 : vector<16x8xf32>
    %cst_370 = arith.constant dense<0.000000e+00> : vector<16xf32>
    %425 = vector.multi_reduction <add>, %424, %cst_370 [1] : vector<16x8xf32> to vector<16xf32>
    %426 = vector.shape_cast %425 : vector<16xf32> to vector<16x1xf32>
    %427 = tpu.reciprocal %426 {approx = true} : vector<16x1xf32> -> vector<16x1xf32>
    %428 = vector.broadcast %427 : vector<16x1xf32> to vector<16x8xf32>
    %429 = arith.mulf %424, %428 : vector<16x8xf32>
    %430 = arith.truncf %429 : vector<16x8xf32> to vector<16x8xbf16>
    %cst_371 = arith.constant dense<0.000000e+00> : vector<16x8xf32>
    %431 = tpu.matmul %430, %100, %cst_371 {dimension_numbers = #tpu.dot_dimension_numbers<[1], [0], [0], [1], [0, 0, 1, 1], [], []>} : vector<16x8xbf16>, vector<8x8xbf16>, vector<16x8xf32> -> vector<16x8xf32>
    %432 = arith.truncf %431 : vector<16x8xf32> to vector<16x8xbf16>
    %c0_372 = arith.constant 0 : index
    %c3_373 = arith.constant 3 : index
    %c0_374 = arith.constant 0 : index
    %c0_375 = arith.constant 0 : index
    %433 = vector.load %arg18[%c0_372, %c3_373, %c0_374, %c0_375] : memref<2x4x8x32xbf16, #tpu.memory_space<vmem>>, vector<1x1x8x32xbf16>
    %434 = vector.shape_cast %433 : vector<1x1x8x32xbf16> to vector<8x32xbf16>
    %cst_376 = arith.constant dense<0.000000e+00> : vector<16x32xf32>
    %435 = tpu.matmul %432, %434, %cst_376 {dimension_numbers = #tpu.dot_dimension_numbers<[1], [0], [0], [1], [0, 0, 1, 1], [], []>} : vector<16x8xbf16>, vector<8x32xbf16>, vector<16x32xf32> -> vector<16x32xf32>
    %436 = arith.addf %410, %435 : vector<16x32xf32>
    %c0_377 = arith.constant 0 : index
    %c0_378 = arith.constant 0 : index
    %c0_379 = arith.constant 0 : index
    %437 = vector.load %arg19[%c0_377, %c0_378, %c0_379] : memref<2x1x32xf32, #tpu.memory_space<vmem>>, vector<1x1x32xf32>
    %438 = vector.shape_cast %437 : vector<1x1x32xf32> to vector<1x32xf32>
    %439 = vector.broadcast %438 : vector<1x32xf32> to vector<16x32xf32>
    %440 = arith.addf %436, %439 : vector<16x32xf32>
    %441 = arith.addf %332, %440 : vector<16x32xf32>
    %c0_380 = arith.constant 0 : index
    %c1_381 = arith.constant 1 : index
    %c0_382 = arith.constant 0 : index
    %c0_383 = arith.constant 0 : index
    %442 = vector.load %arg24[%c0_380, %c1_381, %c0_382, %c0_383] : memref<2x3x1x32xf32, #tpu.memory_space<vmem>>, vector<1x1x1x32xf32>
    %443 = vector.shape_cast %442 : vector<1x1x1x32xf32> to vector<1x32xf32>
    %c0_384 = arith.constant 0 : index
    %c1_385 = arith.constant 1 : index
    %c0_386 = arith.constant 0 : index
    %c0_387 = arith.constant 0 : index
    %444 = vector.load %arg25[%c0_384, %c1_385, %c0_386, %c0_387] : memref<2x3x1x32xf32, #tpu.memory_space<vmem>>, vector<1x1x1x32xf32>
    %445 = vector.shape_cast %444 : vector<1x1x1x32xf32> to vector<1x32xf32>
    %cst_388 = arith.constant dense<0.000000e+00> : vector<16xf32>
    %446 = vector.multi_reduction <add>, %441, %cst_388 [1] : vector<16x32xf32> to vector<16xf32>
    %447 = vector.shape_cast %446 : vector<16xf32> to vector<16x1xf32>
    %cst_389 = arith.constant 3.200000e+01 : f32
    %448 = vector.broadcast %cst_389 : f32 to vector<16x1xf32>
    %449 = arith.divf %447, %448 : vector<16x1xf32>
    %450 = vector.broadcast %449 : vector<16x1xf32> to vector<16x32xf32>
    %451 = arith.subf %441, %450 : vector<16x32xf32>
    %452 = arith.mulf %451, %451 : vector<16x32xf32>
    %cst_390 = arith.constant dense<0.000000e+00> : vector<16xf32>
    %453 = vector.multi_reduction <add>, %452, %cst_390 [1] : vector<16x32xf32> to vector<16xf32>
    %454 = vector.shape_cast %453 : vector<16xf32> to vector<16x1xf32>
    %cst_391 = arith.constant 3.200000e+01 : f32
    %455 = vector.broadcast %cst_391 : f32 to vector<16x1xf32>
    %456 = arith.divf %454, %455 : vector<16x1xf32>
    %457 = vector.broadcast %449 : vector<16x1xf32> to vector<16x32xf32>
    %458 = arith.subf %441, %457 : vector<16x32xf32>
    %cst_392 = arith.constant 9.99999974E-6 : f32
    %459 = vector.broadcast %cst_392 : f32 to vector<16x1xf32>
    %460 = arith.addf %456, %459 : vector<16x1xf32>
    %461 = math.rsqrt %460 : vector<16x1xf32>
    %462 = vector.broadcast %461 : vector<16x1xf32> to vector<16x32xf32>
    %463 = arith.mulf %458, %462 : vector<16x32xf32>
    %464 = vector.broadcast %443 : vector<1x32xf32> to vector<16x32xf32>
    %465 = arith.mulf %463, %464 : vector<16x32xf32>
    %466 = vector.broadcast %445 : vector<1x32xf32> to vector<16x32xf32>
    %467 = arith.addf %465, %466 : vector<16x32xf32>
    %468 = arith.truncf %467 : vector<16x32xf32> to vector<16x32xbf16>
    %c0_393 = arith.constant 0 : index
    %c0_394 = arith.constant 0 : index
    %c0_395 = arith.constant 0 : index
    %469 = vector.load %arg20[%c0_393, %c0_394, %c0_395] : memref<2x32x64xbf16, #tpu.memory_space<vmem>>, vector<1x32x64xbf16>
    %470 = vector.shape_cast %469 : vector<1x32x64xbf16> to vector<32x64xbf16>
    %cst_396 = arith.constant dense<0.000000e+00> : vector<16x64xf32>
    %471 = tpu.matmul %468, %470, %cst_396 {dimension_numbers = #tpu.dot_dimension_numbers<[1], [0], [0], [1], [0, 0, 1, 1], [], []>} : vector<16x32xbf16>, vector<32x64xbf16>, vector<16x64xf32> -> vector<16x64xf32>
    %c0_397 = arith.constant 0 : index
    %c0_398 = arith.constant 0 : index
    %c0_399 = arith.constant 0 : index
    %472 = vector.load %arg21[%c0_397, %c0_398, %c0_399] : memref<2x1x64xf32, #tpu.memory_space<vmem>>, vector<1x1x64xf32>
    %473 = vector.shape_cast %472 : vector<1x1x64xf32> to vector<1x64xf32>
    %474 = vector.broadcast %473 : vector<1x64xf32> to vector<16x64xf32>
    %475 = arith.addf %471, %474 : vector<16x64xf32>
    %cst_400 = arith.constant 0.000000e+00 : f32
    %476 = vector.broadcast %cst_400 : f32 to vector<16x64xf32>
    %477 = arith.maximumf %475, %476 : vector<16x64xf32>
    %478 = arith.truncf %477 : vector<16x64xf32> to vector<16x64xbf16>
    %c0_401 = arith.constant 0 : index
    %c0_402 = arith.constant 0 : index
    %c0_403 = arith.constant 0 : index
    %479 = vector.load %arg22[%c0_401, %c0_402, %c0_403] : memref<2x64x32xbf16, #tpu.memory_space<vmem>>, vector<1x64x32xbf16>
    %480 = vector.shape_cast %479 : vector<1x64x32xbf16> to vector<64x32xbf16>
    %cst_404 = arith.constant dense<0.000000e+00> : vector<16x32xf32>
    %481 = tpu.matmul %478, %480, %cst_404 {dimension_numbers = #tpu.dot_dimension_numbers<[1], [0], [0], [1], [0, 0, 1, 1], [], []>} : vector<16x64xbf16>, vector<64x32xbf16>, vector<16x32xf32> -> vector<16x32xf32>
    %c0_405 = arith.constant 0 : index
    %c0_406 = arith.constant 0 : index
    %c0_407 = arith.constant 0 : index
    %482 = vector.load %arg23[%c0_405, %c0_406, %c0_407] : memref<2x1x32xf32, #tpu.memory_space<vmem>>, vector<1x1x32xf32>
    %483 = vector.shape_cast %482 : vector<1x1x32xf32> to vector<1x32xf32>
    %484 = vector.broadcast %483 : vector<1x32xf32> to vector<16x32xf32>
    %485 = arith.addf %481, %484 : vector<16x32xf32>
    %486 = arith.addf %467, %485 : vector<16x32xf32>
    %c0_408 = arith.constant 0 : index
    %c2_409 = arith.constant 2 : index
    %c0_410 = arith.constant 0 : index
    %c0_411 = arith.constant 0 : index
    %487 = vector.load %arg24[%c0_408, %c2_409, %c0_410, %c0_411] : memref<2x3x1x32xf32, #tpu.memory_space<vmem>>, vector<1x1x1x32xf32>
    %488 = vector.shape_cast %487 : vector<1x1x1x32xf32> to vector<1x32xf32>
    %c0_412 = arith.constant 0 : index
    %c2_413 = arith.constant 2 : index
    %c0_414 = arith.constant 0 : index
    %c0_415 = arith.constant 0 : index
    %489 = vector.load %arg25[%c0_412, %c2_413, %c0_414, %c0_415] : memref<2x3x1x32xf32, #tpu.memory_space<vmem>>, vector<1x1x1x32xf32>
    %490 = vector.shape_cast %489 : vector<1x1x1x32xf32> to vector<1x32xf32>
    %cst_416 = arith.constant dense<0.000000e+00> : vector<16xf32>
    %491 = vector.multi_reduction <add>, %486, %cst_416 [1] : vector<16x32xf32> to vector<16xf32>
    %492 = vector.shape_cast %491 : vector<16xf32> to vector<16x1xf32>
    %cst_417 = arith.constant 3.200000e+01 : f32
    %493 = vector.broadcast %cst_417 : f32 to vector<16x1xf32>
    %494 = arith.divf %492, %493 : vector<16x1xf32>
    %495 = vector.broadcast %494 : vector<16x1xf32> to vector<16x32xf32>
    %496 = arith.subf %486, %495 : vector<16x32xf32>
    %497 = arith.mulf %496, %496 : vector<16x32xf32>
    %cst_418 = arith.constant dense<0.000000e+00> : vector<16xf32>
    %498 = vector.multi_reduction <add>, %497, %cst_418 [1] : vector<16x32xf32> to vector<16xf32>
    %499 = vector.shape_cast %498 : vector<16xf32> to vector<16x1xf32>
    %cst_419 = arith.constant 3.200000e+01 : f32
    %500 = vector.broadcast %cst_419 : f32 to vector<16x1xf32>
    %501 = arith.divf %499, %500 : vector<16x1xf32>
    %502 = vector.broadcast %494 : vector<16x1xf32> to vector<16x32xf32>
    %503 = arith.subf %486, %502 : vector<16x32xf32>
    %cst_420 = arith.constant 9.99999974E-6 : f32
    %504 = vector.broadcast %cst_420 : f32 to vector<16x1xf32>
    %505 = arith.addf %501, %504 : vector<16x1xf32>
    %506 = math.rsqrt %505 : vector<16x1xf32>
    %507 = vector.broadcast %506 : vector<16x1xf32> to vector<16x32xf32>
    %508 = arith.mulf %503, %507 : vector<16x32xf32>
    %509 = vector.broadcast %488 : vector<1x32xf32> to vector<16x32xf32>
    %510 = arith.mulf %508, %509 : vector<16x32xf32>
    %511 = vector.broadcast %490 : vector<1x32xf32> to vector<16x32xf32>
    %512 = arith.addf %510, %511 : vector<16x32xf32>
    %513 = arith.truncf %512 : vector<16x32xf32> to vector<16x32xbf16>
    %c1_421 = arith.constant 1 : index
    %c0_422 = arith.constant 0 : index
    %c0_423 = arith.constant 0 : index
    %c0_424 = arith.constant 0 : index
    %514 = vector.load %arg5[%c1_421, %c0_422, %c0_423, %c0_424] : memref<2x4x32x8xbf16, #tpu.memory_space<vmem>>, vector<1x1x32x8xbf16>
    %515 = vector.shape_cast %514 : vector<1x1x32x8xbf16> to vector<32x8xbf16>
    %cst_425 = arith.constant dense<0.000000e+00> : vector<16x8xf32>
    %516 = tpu.matmul %513, %515, %cst_425 {dimension_numbers = #tpu.dot_dimension_numbers<[1], [0], [0], [1], [0, 0, 1, 1], [], []>} : vector<16x32xbf16>, vector<32x8xbf16>, vector<16x8xf32> -> vector<16x8xf32>
    %c1_426 = arith.constant 1 : index
    %c0_427 = arith.constant 0 : index
    %c0_428 = arith.constant 0 : index
    %c0_429 = arith.constant 0 : index
    %517 = vector.load %arg8[%c1_426, %c0_427, %c0_428, %c0_429] : memref<2x4x1x8xf32, #tpu.memory_space<vmem>>, vector<1x1x1x8xf32>
    %518 = vector.shape_cast %517 : vector<1x1x1x8xf32> to vector<1x8xf32>
    %519 = vector.broadcast %518 : vector<1x8xf32> to vector<16x8xf32>
    %520 = arith.addf %516, %519 : vector<16x8xf32>
    %521 = arith.truncf %520 : vector<16x8xf32> to vector<16x8xbf16>
    %c1_430 = arith.constant 1 : index
    %c1_431 = arith.constant 1 : index
    %c0_432 = arith.constant 0 : index
    %c0_433 = arith.constant 0 : index
    %522 = vector.load %arg5[%c1_430, %c1_431, %c0_432, %c0_433] : memref<2x4x32x8xbf16, #tpu.memory_space<vmem>>, vector<1x1x32x8xbf16>
    %523 = vector.shape_cast %522 : vector<1x1x32x8xbf16> to vector<32x8xbf16>
    %cst_434 = arith.constant dense<0.000000e+00> : vector<16x8xf32>
    %524 = tpu.matmul %513, %523, %cst_434 {dimension_numbers = #tpu.dot_dimension_numbers<[1], [0], [0], [1], [0, 0, 1, 1], [], []>} : vector<16x32xbf16>, vector<32x8xbf16>, vector<16x8xf32> -> vector<16x8xf32>
    %c1_435 = arith.constant 1 : index
    %c1_436 = arith.constant 1 : index
    %c0_437 = arith.constant 0 : index
    %c0_438 = arith.constant 0 : index
    %525 = vector.load %arg8[%c1_435, %c1_436, %c0_437, %c0_438] : memref<2x4x1x8xf32, #tpu.memory_space<vmem>>, vector<1x1x1x8xf32>
    %526 = vector.shape_cast %525 : vector<1x1x1x8xf32> to vector<1x8xf32>
    %527 = vector.broadcast %526 : vector<1x8xf32> to vector<16x8xf32>
    %528 = arith.addf %524, %527 : vector<16x8xf32>
    %529 = arith.truncf %528 : vector<16x8xf32> to vector<16x8xbf16>
    %c1_439 = arith.constant 1 : index
    %c2_440 = arith.constant 2 : index
    %c0_441 = arith.constant 0 : index
    %c0_442 = arith.constant 0 : index
    %530 = vector.load %arg5[%c1_439, %c2_440, %c0_441, %c0_442] : memref<2x4x32x8xbf16, #tpu.memory_space<vmem>>, vector<1x1x32x8xbf16>
    %531 = vector.shape_cast %530 : vector<1x1x32x8xbf16> to vector<32x8xbf16>
    %cst_443 = arith.constant dense<0.000000e+00> : vector<16x8xf32>
    %532 = tpu.matmul %513, %531, %cst_443 {dimension_numbers = #tpu.dot_dimension_numbers<[1], [0], [0], [1], [0, 0, 1, 1], [], []>} : vector<16x32xbf16>, vector<32x8xbf16>, vector<16x8xf32> -> vector<16x8xf32>
    %c1_444 = arith.constant 1 : index
    %c2_445 = arith.constant 2 : index
    %c0_446 = arith.constant 0 : index
    %c0_447 = arith.constant 0 : index
    %533 = vector.load %arg8[%c1_444, %c2_445, %c0_446, %c0_447] : memref<2x4x1x8xf32, #tpu.memory_space<vmem>>, vector<1x1x1x8xf32>
    %534 = vector.shape_cast %533 : vector<1x1x1x8xf32> to vector<1x8xf32>
    %535 = vector.broadcast %534 : vector<1x8xf32> to vector<16x8xf32>
    %536 = arith.addf %532, %535 : vector<16x8xf32>
    %537 = arith.truncf %536 : vector<16x8xf32> to vector<16x8xbf16>
    %c1_448 = arith.constant 1 : index
    %c3_449 = arith.constant 3 : index
    %c0_450 = arith.constant 0 : index
    %c0_451 = arith.constant 0 : index
    %538 = vector.load %arg5[%c1_448, %c3_449, %c0_450, %c0_451] : memref<2x4x32x8xbf16, #tpu.memory_space<vmem>>, vector<1x1x32x8xbf16>
    %539 = vector.shape_cast %538 : vector<1x1x32x8xbf16> to vector<32x8xbf16>
    %cst_452 = arith.constant dense<0.000000e+00> : vector<16x8xf32>
    %540 = tpu.matmul %513, %539, %cst_452 {dimension_numbers = #tpu.dot_dimension_numbers<[1], [0], [0], [1], [0, 0, 1, 1], [], []>} : vector<16x32xbf16>, vector<32x8xbf16>, vector<16x8xf32> -> vector<16x8xf32>
    %c1_453 = arith.constant 1 : index
    %c3_454 = arith.constant 3 : index
    %c0_455 = arith.constant 0 : index
    %c0_456 = arith.constant 0 : index
    %541 = vector.load %arg8[%c1_453, %c3_454, %c0_455, %c0_456] : memref<2x4x1x8xf32, #tpu.memory_space<vmem>>, vector<1x1x1x8xf32>
    %542 = vector.shape_cast %541 : vector<1x1x1x8xf32> to vector<1x8xf32>
    %543 = vector.broadcast %542 : vector<1x8xf32> to vector<16x8xf32>
    %544 = arith.addf %540, %543 : vector<16x8xf32>
    %545 = arith.truncf %544 : vector<16x8xf32> to vector<16x8xbf16>
    %c1_457 = arith.constant 1 : index
    %c0_458 = arith.constant 0 : index
    %c0_459 = arith.constant 0 : index
    %c0_460 = arith.constant 0 : index
    %546 = vector.load %arg6[%c1_457, %c0_458, %c0_459, %c0_460] : memref<2x4x32x8xbf16, #tpu.memory_space<vmem>>, vector<1x1x32x8xbf16>
    %547 = vector.shape_cast %546 : vector<1x1x32x8xbf16> to vector<32x8xbf16>
    %cst_461 = arith.constant dense<0.000000e+00> : vector<16x8xf32>
    %548 = tpu.matmul %513, %547, %cst_461 {dimension_numbers = #tpu.dot_dimension_numbers<[1], [0], [0], [1], [0, 0, 1, 1], [], []>} : vector<16x32xbf16>, vector<32x8xbf16>, vector<16x8xf32> -> vector<16x8xf32>
    %c1_462 = arith.constant 1 : index
    %c0_463 = arith.constant 0 : index
    %c0_464 = arith.constant 0 : index
    %c0_465 = arith.constant 0 : index
    %549 = vector.load %arg9[%c1_462, %c0_463, %c0_464, %c0_465] : memref<2x4x1x8xf32, #tpu.memory_space<vmem>>, vector<1x1x1x8xf32>
    %550 = vector.shape_cast %549 : vector<1x1x1x8xf32> to vector<1x8xf32>
    %551 = vector.broadcast %550 : vector<1x8xf32> to vector<16x8xf32>
    %552 = arith.addf %548, %551 : vector<16x8xf32>
    %553 = arith.truncf %552 : vector<16x8xf32> to vector<16x8xbf16>
    %c1_466 = arith.constant 1 : index
    %c1_467 = arith.constant 1 : index
    %c0_468 = arith.constant 0 : index
    %c0_469 = arith.constant 0 : index
    %554 = vector.load %arg6[%c1_466, %c1_467, %c0_468, %c0_469] : memref<2x4x32x8xbf16, #tpu.memory_space<vmem>>, vector<1x1x32x8xbf16>
    %555 = vector.shape_cast %554 : vector<1x1x32x8xbf16> to vector<32x8xbf16>
    %cst_470 = arith.constant dense<0.000000e+00> : vector<16x8xf32>
    %556 = tpu.matmul %513, %555, %cst_470 {dimension_numbers = #tpu.dot_dimension_numbers<[1], [0], [0], [1], [0, 0, 1, 1], [], []>} : vector<16x32xbf16>, vector<32x8xbf16>, vector<16x8xf32> -> vector<16x8xf32>
    %c1_471 = arith.constant 1 : index
    %c1_472 = arith.constant 1 : index
    %c0_473 = arith.constant 0 : index
    %c0_474 = arith.constant 0 : index
    %557 = vector.load %arg9[%c1_471, %c1_472, %c0_473, %c0_474] : memref<2x4x1x8xf32, #tpu.memory_space<vmem>>, vector<1x1x1x8xf32>
    %558 = vector.shape_cast %557 : vector<1x1x1x8xf32> to vector<1x8xf32>
    %559 = vector.broadcast %558 : vector<1x8xf32> to vector<16x8xf32>
    %560 = arith.addf %556, %559 : vector<16x8xf32>
    %561 = arith.truncf %560 : vector<16x8xf32> to vector<16x8xbf16>
    %c1_475 = arith.constant 1 : index
    %c2_476 = arith.constant 2 : index
    %c0_477 = arith.constant 0 : index
    %c0_478 = arith.constant 0 : index
    %562 = vector.load %arg6[%c1_475, %c2_476, %c0_477, %c0_478] : memref<2x4x32x8xbf16, #tpu.memory_space<vmem>>, vector<1x1x32x8xbf16>
    %563 = vector.shape_cast %562 : vector<1x1x32x8xbf16> to vector<32x8xbf16>
    %cst_479 = arith.constant dense<0.000000e+00> : vector<16x8xf32>
    %564 = tpu.matmul %513, %563, %cst_479 {dimension_numbers = #tpu.dot_dimension_numbers<[1], [0], [0], [1], [0, 0, 1, 1], [], []>} : vector<16x32xbf16>, vector<32x8xbf16>, vector<16x8xf32> -> vector<16x8xf32>
    %c1_480 = arith.constant 1 : index
    %c2_481 = arith.constant 2 : index
    %c0_482 = arith.constant 0 : index
    %c0_483 = arith.constant 0 : index
    %565 = vector.load %arg9[%c1_480, %c2_481, %c0_482, %c0_483] : memref<2x4x1x8xf32, #tpu.memory_space<vmem>>, vector<1x1x1x8xf32>
    %566 = vector.shape_cast %565 : vector<1x1x1x8xf32> to vector<1x8xf32>
    %567 = vector.broadcast %566 : vector<1x8xf32> to vector<16x8xf32>
    %568 = arith.addf %564, %567 : vector<16x8xf32>
    %569 = arith.truncf %568 : vector<16x8xf32> to vector<16x8xbf16>
    %c1_484 = arith.constant 1 : index
    %c3_485 = arith.constant 3 : index
    %c0_486 = arith.constant 0 : index
    %c0_487 = arith.constant 0 : index
    %570 = vector.load %arg6[%c1_484, %c3_485, %c0_486, %c0_487] : memref<2x4x32x8xbf16, #tpu.memory_space<vmem>>, vector<1x1x32x8xbf16>
    %571 = vector.shape_cast %570 : vector<1x1x32x8xbf16> to vector<32x8xbf16>
    %cst_488 = arith.constant dense<0.000000e+00> : vector<16x8xf32>
    %572 = tpu.matmul %513, %571, %cst_488 {dimension_numbers = #tpu.dot_dimension_numbers<[1], [0], [0], [1], [0, 0, 1, 1], [], []>} : vector<16x32xbf16>, vector<32x8xbf16>, vector<16x8xf32> -> vector<16x8xf32>
    %c1_489 = arith.constant 1 : index
    %c3_490 = arith.constant 3 : index
    %c0_491 = arith.constant 0 : index
    %c0_492 = arith.constant 0 : index
    %573 = vector.load %arg9[%c1_489, %c3_490, %c0_491, %c0_492] : memref<2x4x1x8xf32, #tpu.memory_space<vmem>>, vector<1x1x1x8xf32>
    %574 = vector.shape_cast %573 : vector<1x1x1x8xf32> to vector<1x8xf32>
    %575 = vector.broadcast %574 : vector<1x8xf32> to vector<16x8xf32>
    %576 = arith.addf %572, %575 : vector<16x8xf32>
    %577 = arith.truncf %576 : vector<16x8xf32> to vector<16x8xbf16>
    %578 = arith.truncf %512 : vector<16x32xf32> to vector<16x32xbf16>
    %c1_493 = arith.constant 1 : index
    %c0_494 = arith.constant 0 : index
    %c0_495 = arith.constant 0 : index
    %c0_496 = arith.constant 0 : index
    %579 = vector.load %arg4[%c1_493, %c0_494, %c0_495, %c0_496] : memref<2x4x32x8xbf16, #tpu.memory_space<vmem>>, vector<1x1x32x8xbf16>
    %580 = vector.shape_cast %579 : vector<1x1x32x8xbf16> to vector<32x8xbf16>
    %cst_497 = arith.constant dense<0.000000e+00> : vector<16x8xf32>
    %581 = tpu.matmul %578, %580, %cst_497 {dimension_numbers = #tpu.dot_dimension_numbers<[1], [0], [0], [1], [0, 0, 1, 1], [], []>} : vector<16x32xbf16>, vector<32x8xbf16>, vector<16x8xf32> -> vector<16x8xf32>
    %c1_498 = arith.constant 1 : index
    %c0_499 = arith.constant 0 : index
    %c0_500 = arith.constant 0 : index
    %c0_501 = arith.constant 0 : index
    %582 = vector.load %arg7[%c1_498, %c0_499, %c0_500, %c0_501] : memref<2x4x1x8xf32, #tpu.memory_space<vmem>>, vector<1x1x1x8xf32>
    %583 = vector.shape_cast %582 : vector<1x1x1x8xf32> to vector<1x8xf32>
    %584 = vector.broadcast %583 : vector<1x8xf32> to vector<16x8xf32>
    %585 = arith.addf %581, %584 : vector<16x8xf32>
    %586 = arith.truncf %585 : vector<16x8xf32> to vector<16x8xbf16>
    "tpu.trace_start"() <{level = 10 : i32, message = "qd,kd->qk"}> : () -> ()
    %cst_502 = arith.constant dense<0.000000e+00> : vector<16x16xf32>
    %587 = tpu.matmul %586, %521, %cst_502 {dimension_numbers = #tpu.dot_dimension_numbers<[1], [1], [0], [0], [0, 0, 1, 0], [], []>} : vector<16x8xbf16>, vector<16x8xbf16>, vector<16x16xf32> -> vector<16x16xf32>
    "tpu.trace_stop"() : () -> ()
    %cst_503 = arith.constant dense<0xFF800000> : vector<16xf32>
    %588 = vector.multi_reduction <maximumf>, %587, %cst_503 [1] : vector<16x16xf32> to vector<16xf32>
    %589 = vector.shape_cast %588 : vector<16xf32> to vector<16x1xf32>
    %590 = vector.broadcast %589 : vector<16x1xf32> to vector<16x16xf32>
    %591 = arith.subf %587, %590 : vector<16x16xf32>
    %592 = math.exp %591 : vector<16x16xf32>
    %cst_504 = arith.constant dense<0.000000e+00> : vector<16xf32>
    %593 = vector.multi_reduction <add>, %592, %cst_504 [1] : vector<16x16xf32> to vector<16xf32>
    %594 = vector.shape_cast %593 : vector<16xf32> to vector<16x1xf32>
    %595 = tpu.reciprocal %594 {approx = true} : vector<16x1xf32> -> vector<16x1xf32>
    %596 = vector.broadcast %595 : vector<16x1xf32> to vector<16x16xf32>
    %597 = arith.mulf %592, %596 : vector<16x16xf32>
    %598 = arith.truncf %597 : vector<16x16xf32> to vector<16x16xbf16>
    %cst_505 = arith.constant dense<0.000000e+00> : vector<16x8xf32>
    %599 = tpu.matmul %598, %553, %cst_505 {dimension_numbers = #tpu.dot_dimension_numbers<[1], [0], [0], [1], [0, 0, 1, 1], [], []>} : vector<16x16xbf16>, vector<16x8xbf16>, vector<16x8xf32> -> vector<16x8xf32>
    %600 = arith.truncf %599 : vector<16x8xf32> to vector<16x8xbf16>
    %c1_506 = arith.constant 1 : index
    %c0_507 = arith.constant 0 : index
    %c0_508 = arith.constant 0 : index
    %c0_509 = arith.constant 0 : index
    %601 = vector.load %arg10[%c1_506, %c0_507, %c0_508, %c0_509] : memref<2x4x8x32xbf16, #tpu.memory_space<vmem>>, vector<1x1x8x32xbf16>
    %602 = vector.shape_cast %601 : vector<1x1x8x32xbf16> to vector<8x32xbf16>
    %cst_510 = arith.constant dense<0.000000e+00> : vector<16x32xf32>
    %603 = tpu.matmul %600, %602, %cst_510 {dimension_numbers = #tpu.dot_dimension_numbers<[1], [0], [0], [1], [0, 0, 1, 1], [], []>} : vector<16x8xbf16>, vector<8x32xbf16>, vector<16x32xf32> -> vector<16x32xf32>
    %c1_511 = arith.constant 1 : index
    %c1_512 = arith.constant 1 : index
    %c0_513 = arith.constant 0 : index
    %c0_514 = arith.constant 0 : index
    %604 = vector.load %arg4[%c1_511, %c1_512, %c0_513, %c0_514] : memref<2x4x32x8xbf16, #tpu.memory_space<vmem>>, vector<1x1x32x8xbf16>
    %605 = vector.shape_cast %604 : vector<1x1x32x8xbf16> to vector<32x8xbf16>
    %cst_515 = arith.constant dense<0.000000e+00> : vector<16x8xf32>
    %606 = tpu.matmul %578, %605, %cst_515 {dimension_numbers = #tpu.dot_dimension_numbers<[1], [0], [0], [1], [0, 0, 1, 1], [], []>} : vector<16x32xbf16>, vector<32x8xbf16>, vector<16x8xf32> -> vector<16x8xf32>
    %c1_516 = arith.constant 1 : index
    %c1_517 = arith.constant 1 : index
    %c0_518 = arith.constant 0 : index
    %c0_519 = arith.constant 0 : index
    %607 = vector.load %arg7[%c1_516, %c1_517, %c0_518, %c0_519] : memref<2x4x1x8xf32, #tpu.memory_space<vmem>>, vector<1x1x1x8xf32>
    %608 = vector.shape_cast %607 : vector<1x1x1x8xf32> to vector<1x8xf32>
    %609 = vector.broadcast %608 : vector<1x8xf32> to vector<16x8xf32>
    %610 = arith.addf %606, %609 : vector<16x8xf32>
    %611 = arith.truncf %610 : vector<16x8xf32> to vector<16x8xbf16>
    "tpu.trace_start"() <{level = 10 : i32, message = "qd,kd->qk"}> : () -> ()
    %cst_520 = arith.constant dense<0.000000e+00> : vector<16x16xf32>
    %612 = tpu.matmul %611, %529, %cst_520 {dimension_numbers = #tpu.dot_dimension_numbers<[1], [1], [0], [0], [0, 0, 1, 0], [], []>} : vector<16x8xbf16>, vector<16x8xbf16>, vector<16x16xf32> -> vector<16x16xf32>
    "tpu.trace_stop"() : () -> ()
    %cst_521 = arith.constant dense<0xFF800000> : vector<16xf32>
    %613 = vector.multi_reduction <maximumf>, %612, %cst_521 [1] : vector<16x16xf32> to vector<16xf32>
    %614 = vector.shape_cast %613 : vector<16xf32> to vector<16x1xf32>
    %615 = vector.broadcast %614 : vector<16x1xf32> to vector<16x16xf32>
    %616 = arith.subf %612, %615 : vector<16x16xf32>
    %617 = math.exp %616 : vector<16x16xf32>
    %cst_522 = arith.constant dense<0.000000e+00> : vector<16xf32>
    %618 = vector.multi_reduction <add>, %617, %cst_522 [1] : vector<16x16xf32> to vector<16xf32>
    %619 = vector.shape_cast %618 : vector<16xf32> to vector<16x1xf32>
    %620 = tpu.reciprocal %619 {approx = true} : vector<16x1xf32> -> vector<16x1xf32>
    %621 = vector.broadcast %620 : vector<16x1xf32> to vector<16x16xf32>
    %622 = arith.mulf %617, %621 : vector<16x16xf32>
    %623 = arith.truncf %622 : vector<16x16xf32> to vector<16x16xbf16>
    %cst_523 = arith.constant dense<0.000000e+00> : vector<16x8xf32>
    %624 = tpu.matmul %623, %561, %cst_523 {dimension_numbers = #tpu.dot_dimension_numbers<[1], [0], [0], [1], [0, 0, 1, 1], [], []>} : vector<16x16xbf16>, vector<16x8xbf16>, vector<16x8xf32> -> vector<16x8xf32>
    %625 = arith.truncf %624 : vector<16x8xf32> to vector<16x8xbf16>
    %c1_524 = arith.constant 1 : index
    %c1_525 = arith.constant 1 : index
    %c0_526 = arith.constant 0 : index
    %c0_527 = arith.constant 0 : index
    %626 = vector.load %arg10[%c1_524, %c1_525, %c0_526, %c0_527] : memref<2x4x8x32xbf16, #tpu.memory_space<vmem>>, vector<1x1x8x32xbf16>
    %627 = vector.shape_cast %626 : vector<1x1x8x32xbf16> to vector<8x32xbf16>
    %cst_528 = arith.constant dense<0.000000e+00> : vector<16x32xf32>
    %628 = tpu.matmul %625, %627, %cst_528 {dimension_numbers = #tpu.dot_dimension_numbers<[1], [0], [0], [1], [0, 0, 1, 1], [], []>} : vector<16x8xbf16>, vector<8x32xbf16>, vector<16x32xf32> -> vector<16x32xf32>
    %629 = arith.addf %603, %628 : vector<16x32xf32>
    %c1_529 = arith.constant 1 : index
    %c2_530 = arith.constant 2 : index
    %c0_531 = arith.constant 0 : index
    %c0_532 = arith.constant 0 : index
    %630 = vector.load %arg4[%c1_529, %c2_530, %c0_531, %c0_532] : memref<2x4x32x8xbf16, #tpu.memory_space<vmem>>, vector<1x1x32x8xbf16>
    %631 = vector.shape_cast %630 : vector<1x1x32x8xbf16> to vector<32x8xbf16>
    %cst_533 = arith.constant dense<0.000000e+00> : vector<16x8xf32>
    %632 = tpu.matmul %578, %631, %cst_533 {dimension_numbers = #tpu.dot_dimension_numbers<[1], [0], [0], [1], [0, 0, 1, 1], [], []>} : vector<16x32xbf16>, vector<32x8xbf16>, vector<16x8xf32> -> vector<16x8xf32>
    %c1_534 = arith.constant 1 : index
    %c2_535 = arith.constant 2 : index
    %c0_536 = arith.constant 0 : index
    %c0_537 = arith.constant 0 : index
    %633 = vector.load %arg7[%c1_534, %c2_535, %c0_536, %c0_537] : memref<2x4x1x8xf32, #tpu.memory_space<vmem>>, vector<1x1x1x8xf32>
    %634 = vector.shape_cast %633 : vector<1x1x1x8xf32> to vector<1x8xf32>
    %635 = vector.broadcast %634 : vector<1x8xf32> to vector<16x8xf32>
    %636 = arith.addf %632, %635 : vector<16x8xf32>
    %637 = arith.truncf %636 : vector<16x8xf32> to vector<16x8xbf16>
    "tpu.trace_start"() <{level = 10 : i32, message = "qd,kd->qk"}> : () -> ()
    %cst_538 = arith.constant dense<0.000000e+00> : vector<16x16xf32>
    %638 = tpu.matmul %637, %537, %cst_538 {dimension_numbers = #tpu.dot_dimension_numbers<[1], [1], [0], [0], [0, 0, 1, 0], [], []>} : vector<16x8xbf16>, vector<16x8xbf16>, vector<16x16xf32> -> vector<16x16xf32>
    "tpu.trace_stop"() : () -> ()
    %cst_539 = arith.constant dense<0xFF800000> : vector<16xf32>
    %639 = vector.multi_reduction <maximumf>, %638, %cst_539 [1] : vector<16x16xf32> to vector<16xf32>
    %640 = vector.shape_cast %639 : vector<16xf32> to vector<16x1xf32>
    %641 = vector.broadcast %640 : vector<16x1xf32> to vector<16x16xf32>
    %642 = arith.subf %638, %641 : vector<16x16xf32>
    %643 = math.exp %642 : vector<16x16xf32>
    %cst_540 = arith.constant dense<0.000000e+00> : vector<16xf32>
    %644 = vector.multi_reduction <add>, %643, %cst_540 [1] : vector<16x16xf32> to vector<16xf32>
    %645 = vector.shape_cast %644 : vector<16xf32> to vector<16x1xf32>
    %646 = tpu.reciprocal %645 {approx = true} : vector<16x1xf32> -> vector<16x1xf32>
    %647 = vector.broadcast %646 : vector<16x1xf32> to vector<16x16xf32>
    %648 = arith.mulf %643, %647 : vector<16x16xf32>
    %649 = arith.truncf %648 : vector<16x16xf32> to vector<16x16xbf16>
    %cst_541 = arith.constant dense<0.000000e+00> : vector<16x8xf32>
    %650 = tpu.matmul %649, %569, %cst_541 {dimension_numbers = #tpu.dot_dimension_numbers<[1], [0], [0], [1], [0, 0, 1, 1], [], []>} : vector<16x16xbf16>, vector<16x8xbf16>, vector<16x8xf32> -> vector<16x8xf32>
    %651 = arith.truncf %650 : vector<16x8xf32> to vector<16x8xbf16>
    %c1_542 = arith.constant 1 : index
    %c2_543 = arith.constant 2 : index
    %c0_544 = arith.constant 0 : index
    %c0_545 = arith.constant 0 : index
    %652 = vector.load %arg10[%c1_542, %c2_543, %c0_544, %c0_545] : memref<2x4x8x32xbf16, #tpu.memory_space<vmem>>, vector<1x1x8x32xbf16>
    %653 = vector.shape_cast %652 : vector<1x1x8x32xbf16> to vector<8x32xbf16>
    %cst_546 = arith.constant dense<0.000000e+00> : vector<16x32xf32>
    %654 = tpu.matmul %651, %653, %cst_546 {dimension_numbers = #tpu.dot_dimension_numbers<[1], [0], [0], [1], [0, 0, 1, 1], [], []>} : vector<16x8xbf16>, vector<8x32xbf16>, vector<16x32xf32> -> vector<16x32xf32>
    %655 = arith.addf %629, %654 : vector<16x32xf32>
    %c1_547 = arith.constant 1 : index
    %c3_548 = arith.constant 3 : index
    %c0_549 = arith.constant 0 : index
    %c0_550 = arith.constant 0 : index
    %656 = vector.load %arg4[%c1_547, %c3_548, %c0_549, %c0_550] : memref<2x4x32x8xbf16, #tpu.memory_space<vmem>>, vector<1x1x32x8xbf16>
    %657 = vector.shape_cast %656 : vector<1x1x32x8xbf16> to vector<32x8xbf16>
    %cst_551 = arith.constant dense<0.000000e+00> : vector<16x8xf32>
    %658 = tpu.matmul %578, %657, %cst_551 {dimension_numbers = #tpu.dot_dimension_numbers<[1], [0], [0], [1], [0, 0, 1, 1], [], []>} : vector<16x32xbf16>, vector<32x8xbf16>, vector<16x8xf32> -> vector<16x8xf32>
    %c1_552 = arith.constant 1 : index
    %c3_553 = arith.constant 3 : index
    %c0_554 = arith.constant 0 : index
    %c0_555 = arith.constant 0 : index
    %659 = vector.load %arg7[%c1_552, %c3_553, %c0_554, %c0_555] : memref<2x4x1x8xf32, #tpu.memory_space<vmem>>, vector<1x1x1x8xf32>
    %660 = vector.shape_cast %659 : vector<1x1x1x8xf32> to vector<1x8xf32>
    %661 = vector.broadcast %660 : vector<1x8xf32> to vector<16x8xf32>
    %662 = arith.addf %658, %661 : vector<16x8xf32>
    %663 = arith.truncf %662 : vector<16x8xf32> to vector<16x8xbf16>
    "tpu.trace_start"() <{level = 10 : i32, message = "qd,kd->qk"}> : () -> ()
    %cst_556 = arith.constant dense<0.000000e+00> : vector<16x16xf32>
    %664 = tpu.matmul %663, %545, %cst_556 {dimension_numbers = #tpu.dot_dimension_numbers<[1], [1], [0], [0], [0, 0, 1, 0], [], []>} : vector<16x8xbf16>, vector<16x8xbf16>, vector<16x16xf32> -> vector<16x16xf32>
    "tpu.trace_stop"() : () -> ()
    %cst_557 = arith.constant dense<0xFF800000> : vector<16xf32>
    %665 = vector.multi_reduction <maximumf>, %664, %cst_557 [1] : vector<16x16xf32> to vector<16xf32>
    %666 = vector.shape_cast %665 : vector<16xf32> to vector<16x1xf32>
    %667 = vector.broadcast %666 : vector<16x1xf32> to vector<16x16xf32>
    %668 = arith.subf %664, %667 : vector<16x16xf32>
    %669 = math.exp %668 : vector<16x16xf32>
    %cst_558 = arith.constant dense<0.000000e+00> : vector<16xf32>
    %670 = vector.multi_reduction <add>, %669, %cst_558 [1] : vector<16x16xf32> to vector<16xf32>
    %671 = vector.shape_cast %670 : vector<16xf32> to vector<16x1xf32>
    %672 = tpu.reciprocal %671 {approx = true} : vector<16x1xf32> -> vector<16x1xf32>
    %673 = vector.broadcast %672 : vector<16x1xf32> to vector<16x16xf32>
    %674 = arith.mulf %669, %673 : vector<16x16xf32>
    %675 = arith.truncf %674 : vector<16x16xf32> to vector<16x16xbf16>
    %cst_559 = arith.constant dense<0.000000e+00> : vector<16x8xf32>
    %676 = tpu.matmul %675, %577, %cst_559 {dimension_numbers = #tpu.dot_dimension_numbers<[1], [0], [0], [1], [0, 0, 1, 1], [], []>} : vector<16x16xbf16>, vector<16x8xbf16>, vector<16x8xf32> -> vector<16x8xf32>
    %677 = arith.truncf %676 : vector<16x8xf32> to vector<16x8xbf16>
    %c1_560 = arith.constant 1 : index
    %c3_561 = arith.constant 3 : index
    %c0_562 = arith.constant 0 : index
    %c0_563 = arith.constant 0 : index
    %678 = vector.load %arg10[%c1_560, %c3_561, %c0_562, %c0_563] : memref<2x4x8x32xbf16, #tpu.memory_space<vmem>>, vector<1x1x8x32xbf16>
    %679 = vector.shape_cast %678 : vector<1x1x8x32xbf16> to vector<8x32xbf16>
    %cst_564 = arith.constant dense<0.000000e+00> : vector<16x32xf32>
    %680 = tpu.matmul %677, %679, %cst_564 {dimension_numbers = #tpu.dot_dimension_numbers<[1], [0], [0], [1], [0, 0, 1, 1], [], []>} : vector<16x8xbf16>, vector<8x32xbf16>, vector<16x32xf32> -> vector<16x32xf32>
    %681 = arith.addf %655, %680 : vector<16x32xf32>
    %c1_565 = arith.constant 1 : index
    %c0_566 = arith.constant 0 : index
    %c0_567 = arith.constant 0 : index
    %682 = vector.load %arg11[%c1_565, %c0_566, %c0_567] : memref<2x1x32xf32, #tpu.memory_space<vmem>>, vector<1x1x32xf32>
    %683 = vector.shape_cast %682 : vector<1x1x32xf32> to vector<1x32xf32>
    %684 = vector.broadcast %683 : vector<1x32xf32> to vector<16x32xf32>
    %685 = arith.addf %681, %684 : vector<16x32xf32>
    %686 = arith.addf %512, %685 : vector<16x32xf32>
    %c1_568 = arith.constant 1 : index
    %c0_569 = arith.constant 0 : index
    %c0_570 = arith.constant 0 : index
    %c0_571 = arith.constant 0 : index
    %687 = vector.load %arg24[%c1_568, %c0_569, %c0_570, %c0_571] : memref<2x3x1x32xf32, #tpu.memory_space<vmem>>, vector<1x1x1x32xf32>
    %688 = vector.shape_cast %687 : vector<1x1x1x32xf32> to vector<1x32xf32>
    %c1_572 = arith.constant 1 : index
    %c0_573 = arith.constant 0 : index
    %c0_574 = arith.constant 0 : index
    %c0_575 = arith.constant 0 : index
    %689 = vector.load %arg25[%c1_572, %c0_573, %c0_574, %c0_575] : memref<2x3x1x32xf32, #tpu.memory_space<vmem>>, vector<1x1x1x32xf32>
    %690 = vector.shape_cast %689 : vector<1x1x1x32xf32> to vector<1x32xf32>
    %cst_576 = arith.constant dense<0.000000e+00> : vector<16xf32>
    %691 = vector.multi_reduction <add>, %686, %cst_576 [1] : vector<16x32xf32> to vector<16xf32>
    %692 = vector.shape_cast %691 : vector<16xf32> to vector<16x1xf32>
    %cst_577 = arith.constant 3.200000e+01 : f32
    %693 = vector.broadcast %cst_577 : f32 to vector<16x1xf32>
    %694 = arith.divf %692, %693 : vector<16x1xf32>
    %695 = vector.broadcast %694 : vector<16x1xf32> to vector<16x32xf32>
    %696 = arith.subf %686, %695 : vector<16x32xf32>
    %697 = arith.mulf %696, %696 : vector<16x32xf32>
    %cst_578 = arith.constant dense<0.000000e+00> : vector<16xf32>
    %698 = vector.multi_reduction <add>, %697, %cst_578 [1] : vector<16x32xf32> to vector<16xf32>
    %699 = vector.shape_cast %698 : vector<16xf32> to vector<16x1xf32>
    %cst_579 = arith.constant 3.200000e+01 : f32
    %700 = vector.broadcast %cst_579 : f32 to vector<16x1xf32>
    %701 = arith.divf %699, %700 : vector<16x1xf32>
    %702 = vector.broadcast %694 : vector<16x1xf32> to vector<16x32xf32>
    %703 = arith.subf %686, %702 : vector<16x32xf32>
    %cst_580 = arith.constant 9.99999974E-6 : f32
    %704 = vector.broadcast %cst_580 : f32 to vector<16x1xf32>
    %705 = arith.addf %701, %704 : vector<16x1xf32>
    %706 = math.rsqrt %705 : vector<16x1xf32>
    %707 = vector.broadcast %706 : vector<16x1xf32> to vector<16x32xf32>
    %708 = arith.mulf %703, %707 : vector<16x32xf32>
    %709 = vector.broadcast %688 : vector<1x32xf32> to vector<16x32xf32>
    %710 = arith.mulf %708, %709 : vector<16x32xf32>
    %711 = vector.broadcast %690 : vector<1x32xf32> to vector<16x32xf32>
    %712 = arith.addf %710, %711 : vector<16x32xf32>
    %713 = arith.truncf %712 : vector<16x32xf32> to vector<16x32xbf16>
    %c1_581 = arith.constant 1 : index
    %c0_582 = arith.constant 0 : index
    %c0_583 = arith.constant 0 : index
    %c0_584 = arith.constant 0 : index
    %714 = vector.load %arg12[%c1_581, %c0_582, %c0_583, %c0_584] : memref<2x4x32x8xbf16, #tpu.memory_space<vmem>>, vector<1x1x32x8xbf16>
    %715 = vector.shape_cast %714 : vector<1x1x32x8xbf16> to vector<32x8xbf16>
    %cst_585 = arith.constant dense<0.000000e+00> : vector<16x8xf32>
    %716 = tpu.matmul %713, %715, %cst_585 {dimension_numbers = #tpu.dot_dimension_numbers<[1], [0], [0], [1], [0, 0, 1, 1], [], []>} : vector<16x32xbf16>, vector<32x8xbf16>, vector<16x8xf32> -> vector<16x8xf32>
    %c1_586 = arith.constant 1 : index
    %c0_587 = arith.constant 0 : index
    %c0_588 = arith.constant 0 : index
    %c0_589 = arith.constant 0 : index
    %717 = vector.load %arg15[%c1_586, %c0_587, %c0_588, %c0_589] : memref<2x4x1x8xf32, #tpu.memory_space<vmem>>, vector<1x1x1x8xf32>
    %718 = vector.shape_cast %717 : vector<1x1x1x8xf32> to vector<1x8xf32>
    %719 = vector.broadcast %718 : vector<1x8xf32> to vector<16x8xf32>
    %720 = arith.addf %716, %719 : vector<16x8xf32>
    %721 = arith.truncf %720 : vector<16x8xf32> to vector<16x8xbf16>
    "tpu.trace_start"() <{level = 10 : i32, message = "qd,kd->qk"}> : () -> ()
    %cst_590 = arith.constant dense<0.000000e+00> : vector<16x8xf32>
    %722 = tpu.matmul %721, %44, %cst_590 {dimension_numbers = #tpu.dot_dimension_numbers<[1], [1], [0], [0], [0, 0, 1, 0], [], []>} : vector<16x8xbf16>, vector<8x8xbf16>, vector<16x8xf32> -> vector<16x8xf32>
    "tpu.trace_stop"() : () -> ()
    %cst_591 = arith.constant dense<0xFF800000> : vector<16xf32>
    %723 = vector.multi_reduction <maximumf>, %722, %cst_591 [1] : vector<16x8xf32> to vector<16xf32>
    %724 = vector.shape_cast %723 : vector<16xf32> to vector<16x1xf32>
    %725 = vector.broadcast %724 : vector<16x1xf32> to vector<16x8xf32>
    %726 = arith.subf %722, %725 : vector<16x8xf32>
    %727 = math.exp %726 : vector<16x8xf32>
    %cst_592 = arith.constant dense<0.000000e+00> : vector<16xf32>
    %728 = vector.multi_reduction <add>, %727, %cst_592 [1] : vector<16x8xf32> to vector<16xf32>
    %729 = vector.shape_cast %728 : vector<16xf32> to vector<16x1xf32>
    %730 = tpu.reciprocal %729 {approx = true} : vector<16x1xf32> -> vector<16x1xf32>
    %731 = vector.broadcast %730 : vector<16x1xf32> to vector<16x8xf32>
    %732 = arith.mulf %727, %731 : vector<16x8xf32>
    %733 = arith.truncf %732 : vector<16x8xf32> to vector<16x8xbf16>
    %cst_593 = arith.constant dense<0.000000e+00> : vector<16x8xf32>
    %734 = tpu.matmul %733, %108, %cst_593 {dimension_numbers = #tpu.dot_dimension_numbers<[1], [0], [0], [1], [0, 0, 1, 1], [], []>} : vector<16x8xbf16>, vector<8x8xbf16>, vector<16x8xf32> -> vector<16x8xf32>
    %735 = arith.truncf %734 : vector<16x8xf32> to vector<16x8xbf16>
    %c1_594 = arith.constant 1 : index
    %c0_595 = arith.constant 0 : index
    %c0_596 = arith.constant 0 : index
    %c0_597 = arith.constant 0 : index
    %736 = vector.load %arg18[%c1_594, %c0_595, %c0_596, %c0_597] : memref<2x4x8x32xbf16, #tpu.memory_space<vmem>>, vector<1x1x8x32xbf16>
    %737 = vector.shape_cast %736 : vector<1x1x8x32xbf16> to vector<8x32xbf16>
    %cst_598 = arith.constant dense<0.000000e+00> : vector<16x32xf32>
    %738 = tpu.matmul %735, %737, %cst_598 {dimension_numbers = #tpu.dot_dimension_numbers<[1], [0], [0], [1], [0, 0, 1, 1], [], []>} : vector<16x8xbf16>, vector<8x32xbf16>, vector<16x32xf32> -> vector<16x32xf32>
    %c1_599 = arith.constant 1 : index
    %c1_600 = arith.constant 1 : index
    %c0_601 = arith.constant 0 : index
    %c0_602 = arith.constant 0 : index
    %739 = vector.load %arg12[%c1_599, %c1_600, %c0_601, %c0_602] : memref<2x4x32x8xbf16, #tpu.memory_space<vmem>>, vector<1x1x32x8xbf16>
    %740 = vector.shape_cast %739 : vector<1x1x32x8xbf16> to vector<32x8xbf16>
    %cst_603 = arith.constant dense<0.000000e+00> : vector<16x8xf32>
    %741 = tpu.matmul %713, %740, %cst_603 {dimension_numbers = #tpu.dot_dimension_numbers<[1], [0], [0], [1], [0, 0, 1, 1], [], []>} : vector<16x32xbf16>, vector<32x8xbf16>, vector<16x8xf32> -> vector<16x8xf32>
    %c1_604 = arith.constant 1 : index
    %c1_605 = arith.constant 1 : index
    %c0_606 = arith.constant 0 : index
    %c0_607 = arith.constant 0 : index
    %742 = vector.load %arg15[%c1_604, %c1_605, %c0_606, %c0_607] : memref<2x4x1x8xf32, #tpu.memory_space<vmem>>, vector<1x1x1x8xf32>
    %743 = vector.shape_cast %742 : vector<1x1x1x8xf32> to vector<1x8xf32>
    %744 = vector.broadcast %743 : vector<1x8xf32> to vector<16x8xf32>
    %745 = arith.addf %741, %744 : vector<16x8xf32>
    %746 = arith.truncf %745 : vector<16x8xf32> to vector<16x8xbf16>
    "tpu.trace_start"() <{level = 10 : i32, message = "qd,kd->qk"}> : () -> ()
    %cst_608 = arith.constant dense<0.000000e+00> : vector<16x8xf32>
    %747 = tpu.matmul %746, %52, %cst_608 {dimension_numbers = #tpu.dot_dimension_numbers<[1], [1], [0], [0], [0, 0, 1, 0], [], []>} : vector<16x8xbf16>, vector<8x8xbf16>, vector<16x8xf32> -> vector<16x8xf32>
    "tpu.trace_stop"() : () -> ()
    %cst_609 = arith.constant dense<0xFF800000> : vector<16xf32>
    %748 = vector.multi_reduction <maximumf>, %747, %cst_609 [1] : vector<16x8xf32> to vector<16xf32>
    %749 = vector.shape_cast %748 : vector<16xf32> to vector<16x1xf32>
    %750 = vector.broadcast %749 : vector<16x1xf32> to vector<16x8xf32>
    %751 = arith.subf %747, %750 : vector<16x8xf32>
    %752 = math.exp %751 : vector<16x8xf32>
    %cst_610 = arith.constant dense<0.000000e+00> : vector<16xf32>
    %753 = vector.multi_reduction <add>, %752, %cst_610 [1] : vector<16x8xf32> to vector<16xf32>
    %754 = vector.shape_cast %753 : vector<16xf32> to vector<16x1xf32>
    %755 = tpu.reciprocal %754 {approx = true} : vector<16x1xf32> -> vector<16x1xf32>
    %756 = vector.broadcast %755 : vector<16x1xf32> to vector<16x8xf32>
    %757 = arith.mulf %752, %756 : vector<16x8xf32>
    %758 = arith.truncf %757 : vector<16x8xf32> to vector<16x8xbf16>
    %cst_611 = arith.constant dense<0.000000e+00> : vector<16x8xf32>
    %759 = tpu.matmul %758, %116, %cst_611 {dimension_numbers = #tpu.dot_dimension_numbers<[1], [0], [0], [1], [0, 0, 1, 1], [], []>} : vector<16x8xbf16>, vector<8x8xbf16>, vector<16x8xf32> -> vector<16x8xf32>
    %760 = arith.truncf %759 : vector<16x8xf32> to vector<16x8xbf16>
    %c1_612 = arith.constant 1 : index
    %c1_613 = arith.constant 1 : index
    %c0_614 = arith.constant 0 : index
    %c0_615 = arith.constant 0 : index
    %761 = vector.load %arg18[%c1_612, %c1_613, %c0_614, %c0_615] : memref<2x4x8x32xbf16, #tpu.memory_space<vmem>>, vector<1x1x8x32xbf16>
    %762 = vector.shape_cast %761 : vector<1x1x8x32xbf16> to vector<8x32xbf16>
    %cst_616 = arith.constant dense<0.000000e+00> : vector<16x32xf32>
    %763 = tpu.matmul %760, %762, %cst_616 {dimension_numbers = #tpu.dot_dimension_numbers<[1], [0], [0], [1], [0, 0, 1, 1], [], []>} : vector<16x8xbf16>, vector<8x32xbf16>, vector<16x32xf32> -> vector<16x32xf32>
    %764 = arith.addf %738, %763 : vector<16x32xf32>
    %c1_617 = arith.constant 1 : index
    %c2_618 = arith.constant 2 : index
    %c0_619 = arith.constant 0 : index
    %c0_620 = arith.constant 0 : index
    %765 = vector.load %arg12[%c1_617, %c2_618, %c0_619, %c0_620] : memref<2x4x32x8xbf16, #tpu.memory_space<vmem>>, vector<1x1x32x8xbf16>
    %766 = vector.shape_cast %765 : vector<1x1x32x8xbf16> to vector<32x8xbf16>
    %cst_621 = arith.constant dense<0.000000e+00> : vector<16x8xf32>
    %767 = tpu.matmul %713, %766, %cst_621 {dimension_numbers = #tpu.dot_dimension_numbers<[1], [0], [0], [1], [0, 0, 1, 1], [], []>} : vector<16x32xbf16>, vector<32x8xbf16>, vector<16x8xf32> -> vector<16x8xf32>
    %c1_622 = arith.constant 1 : index
    %c2_623 = arith.constant 2 : index
    %c0_624 = arith.constant 0 : index
    %c0_625 = arith.constant 0 : index
    %768 = vector.load %arg15[%c1_622, %c2_623, %c0_624, %c0_625] : memref<2x4x1x8xf32, #tpu.memory_space<vmem>>, vector<1x1x1x8xf32>
    %769 = vector.shape_cast %768 : vector<1x1x1x8xf32> to vector<1x8xf32>
    %770 = vector.broadcast %769 : vector<1x8xf32> to vector<16x8xf32>
    %771 = arith.addf %767, %770 : vector<16x8xf32>
    %772 = arith.truncf %771 : vector<16x8xf32> to vector<16x8xbf16>
    "tpu.trace_start"() <{level = 10 : i32, message = "qd,kd->qk"}> : () -> ()
    %cst_626 = arith.constant dense<0.000000e+00> : vector<16x8xf32>
    %773 = tpu.matmul %772, %60, %cst_626 {dimension_numbers = #tpu.dot_dimension_numbers<[1], [1], [0], [0], [0, 0, 1, 0], [], []>} : vector<16x8xbf16>, vector<8x8xbf16>, vector<16x8xf32> -> vector<16x8xf32>
    "tpu.trace_stop"() : () -> ()
    %cst_627 = arith.constant dense<0xFF800000> : vector<16xf32>
    %774 = vector.multi_reduction <maximumf>, %773, %cst_627 [1] : vector<16x8xf32> to vector<16xf32>
    %775 = vector.shape_cast %774 : vector<16xf32> to vector<16x1xf32>
    %776 = vector.broadcast %775 : vector<16x1xf32> to vector<16x8xf32>
    %777 = arith.subf %773, %776 : vector<16x8xf32>
    %778 = math.exp %777 : vector<16x8xf32>
    %cst_628 = arith.constant dense<0.000000e+00> : vector<16xf32>
    %779 = vector.multi_reduction <add>, %778, %cst_628 [1] : vector<16x8xf32> to vector<16xf32>
    %780 = vector.shape_cast %779 : vector<16xf32> to vector<16x1xf32>
    %781 = tpu.reciprocal %780 {approx = true} : vector<16x1xf32> -> vector<16x1xf32>
    %782 = vector.broadcast %781 : vector<16x1xf32> to vector<16x8xf32>
    %783 = arith.mulf %778, %782 : vector<16x8xf32>
    %784 = arith.truncf %783 : vector<16x8xf32> to vector<16x8xbf16>
    %cst_629 = arith.constant dense<0.000000e+00> : vector<16x8xf32>
    %785 = tpu.matmul %784, %124, %cst_629 {dimension_numbers = #tpu.dot_dimension_numbers<[1], [0], [0], [1], [0, 0, 1, 1], [], []>} : vector<16x8xbf16>, vector<8x8xbf16>, vector<16x8xf32> -> vector<16x8xf32>
    %786 = arith.truncf %785 : vector<16x8xf32> to vector<16x8xbf16>
    %c1_630 = arith.constant 1 : index
    %c2_631 = arith.constant 2 : index
    %c0_632 = arith.constant 0 : index
    %c0_633 = arith.constant 0 : index
    %787 = vector.load %arg18[%c1_630, %c2_631, %c0_632, %c0_633] : memref<2x4x8x32xbf16, #tpu.memory_space<vmem>>, vector<1x1x8x32xbf16>
    %788 = vector.shape_cast %787 : vector<1x1x8x32xbf16> to vector<8x32xbf16>
    %cst_634 = arith.constant dense<0.000000e+00> : vector<16x32xf32>
    %789 = tpu.matmul %786, %788, %cst_634 {dimension_numbers = #tpu.dot_dimension_numbers<[1], [0], [0], [1], [0, 0, 1, 1], [], []>} : vector<16x8xbf16>, vector<8x32xbf16>, vector<16x32xf32> -> vector<16x32xf32>
    %790 = arith.addf %764, %789 : vector<16x32xf32>
    %c1_635 = arith.constant 1 : index
    %c3_636 = arith.constant 3 : index
    %c0_637 = arith.constant 0 : index
    %c0_638 = arith.constant 0 : index
    %791 = vector.load %arg12[%c1_635, %c3_636, %c0_637, %c0_638] : memref<2x4x32x8xbf16, #tpu.memory_space<vmem>>, vector<1x1x32x8xbf16>
    %792 = vector.shape_cast %791 : vector<1x1x32x8xbf16> to vector<32x8xbf16>
    %cst_639 = arith.constant dense<0.000000e+00> : vector<16x8xf32>
    %793 = tpu.matmul %713, %792, %cst_639 {dimension_numbers = #tpu.dot_dimension_numbers<[1], [0], [0], [1], [0, 0, 1, 1], [], []>} : vector<16x32xbf16>, vector<32x8xbf16>, vector<16x8xf32> -> vector<16x8xf32>
    %c1_640 = arith.constant 1 : index
    %c3_641 = arith.constant 3 : index
    %c0_642 = arith.constant 0 : index
    %c0_643 = arith.constant 0 : index
    %794 = vector.load %arg15[%c1_640, %c3_641, %c0_642, %c0_643] : memref<2x4x1x8xf32, #tpu.memory_space<vmem>>, vector<1x1x1x8xf32>
    %795 = vector.shape_cast %794 : vector<1x1x1x8xf32> to vector<1x8xf32>
    %796 = vector.broadcast %795 : vector<1x8xf32> to vector<16x8xf32>
    %797 = arith.addf %793, %796 : vector<16x8xf32>
    %798 = arith.truncf %797 : vector<16x8xf32> to vector<16x8xbf16>
    "tpu.trace_start"() <{level = 10 : i32, message = "qd,kd->qk"}> : () -> ()
    %cst_644 = arith.constant dense<0.000000e+00> : vector<16x8xf32>
    %799 = tpu.matmul %798, %68, %cst_644 {dimension_numbers = #tpu.dot_dimension_numbers<[1], [1], [0], [0], [0, 0, 1, 0], [], []>} : vector<16x8xbf16>, vector<8x8xbf16>, vector<16x8xf32> -> vector<16x8xf32>
    "tpu.trace_stop"() : () -> ()
    %cst_645 = arith.constant dense<0xFF800000> : vector<16xf32>
    %800 = vector.multi_reduction <maximumf>, %799, %cst_645 [1] : vector<16x8xf32> to vector<16xf32>
    %801 = vector.shape_cast %800 : vector<16xf32> to vector<16x1xf32>
    %802 = vector.broadcast %801 : vector<16x1xf32> to vector<16x8xf32>
    %803 = arith.subf %799, %802 : vector<16x8xf32>
    %804 = math.exp %803 : vector<16x8xf32>
    %cst_646 = arith.constant dense<0.000000e+00> : vector<16xf32>
    %805 = vector.multi_reduction <add>, %804, %cst_646 [1] : vector<16x8xf32> to vector<16xf32>
    %806 = vector.shape_cast %805 : vector<16xf32> to vector<16x1xf32>
    %807 = tpu.reciprocal %806 {approx = true} : vector<16x1xf32> -> vector<16x1xf32>
    %808 = vector.broadcast %807 : vector<16x1xf32> to vector<16x8xf32>
    %809 = arith.mulf %804, %808 : vector<16x8xf32>
    %810 = arith.truncf %809 : vector<16x8xf32> to vector<16x8xbf16>
    %cst_647 = arith.constant dense<0.000000e+00> : vector<16x8xf32>
    %811 = tpu.matmul %810, %132, %cst_647 {dimension_numbers = #tpu.dot_dimension_numbers<[1], [0], [0], [1], [0, 0, 1, 1], [], []>} : vector<16x8xbf16>, vector<8x8xbf16>, vector<16x8xf32> -> vector<16x8xf32>
    %812 = arith.truncf %811 : vector<16x8xf32> to vector<16x8xbf16>
    %c1_648 = arith.constant 1 : index
    %c3_649 = arith.constant 3 : index
    %c0_650 = arith.constant 0 : index
    %c0_651 = arith.constant 0 : index
    %813 = vector.load %arg18[%c1_648, %c3_649, %c0_650, %c0_651] : memref<2x4x8x32xbf16, #tpu.memory_space<vmem>>, vector<1x1x8x32xbf16>
    %814 = vector.shape_cast %813 : vector<1x1x8x32xbf16> to vector<8x32xbf16>
    %cst_652 = arith.constant dense<0.000000e+00> : vector<16x32xf32>
    %815 = tpu.matmul %812, %814, %cst_652 {dimension_numbers = #tpu.dot_dimension_numbers<[1], [0], [0], [1], [0, 0, 1, 1], [], []>} : vector<16x8xbf16>, vector<8x32xbf16>, vector<16x32xf32> -> vector<16x32xf32>
    %816 = arith.addf %790, %815 : vector<16x32xf32>
    %c1_653 = arith.constant 1 : index
    %c0_654 = arith.constant 0 : index
    %c0_655 = arith.constant 0 : index
    %817 = vector.load %arg19[%c1_653, %c0_654, %c0_655] : memref<2x1x32xf32, #tpu.memory_space<vmem>>, vector<1x1x32xf32>
    %818 = vector.shape_cast %817 : vector<1x1x32xf32> to vector<1x32xf32>
    %819 = vector.broadcast %818 : vector<1x32xf32> to vector<16x32xf32>
    %820 = arith.addf %816, %819 : vector<16x32xf32>
    %821 = arith.addf %712, %820 : vector<16x32xf32>
    %c1_656 = arith.constant 1 : index
    %c1_657 = arith.constant 1 : index
    %c0_658 = arith.constant 0 : index
    %c0_659 = arith.constant 0 : index
    %822 = vector.load %arg24[%c1_656, %c1_657, %c0_658, %c0_659] : memref<2x3x1x32xf32, #tpu.memory_space<vmem>>, vector<1x1x1x32xf32>
    %823 = vector.shape_cast %822 : vector<1x1x1x32xf32> to vector<1x32xf32>
    %c1_660 = arith.constant 1 : index
    %c1_661 = arith.constant 1 : index
    %c0_662 = arith.constant 0 : index
    %c0_663 = arith.constant 0 : index
    %824 = vector.load %arg25[%c1_660, %c1_661, %c0_662, %c0_663] : memref<2x3x1x32xf32, #tpu.memory_space<vmem>>, vector<1x1x1x32xf32>
    %825 = vector.shape_cast %824 : vector<1x1x1x32xf32> to vector<1x32xf32>
    %cst_664 = arith.constant dense<0.000000e+00> : vector<16xf32>
    %826 = vector.multi_reduction <add>, %821, %cst_664 [1] : vector<16x32xf32> to vector<16xf32>
    %827 = vector.shape_cast %826 : vector<16xf32> to vector<16x1xf32>
    %cst_665 = arith.constant 3.200000e+01 : f32
    %828 = vector.broadcast %cst_665 : f32 to vector<16x1xf32>
    %829 = arith.divf %827, %828 : vector<16x1xf32>
    %830 = vector.broadcast %829 : vector<16x1xf32> to vector<16x32xf32>
    %831 = arith.subf %821, %830 : vector<16x32xf32>
    %832 = arith.mulf %831, %831 : vector<16x32xf32>
    %cst_666 = arith.constant dense<0.000000e+00> : vector<16xf32>
    %833 = vector.multi_reduction <add>, %832, %cst_666 [1] : vector<16x32xf32> to vector<16xf32>
    %834 = vector.shape_cast %833 : vector<16xf32> to vector<16x1xf32>
    %cst_667 = arith.constant 3.200000e+01 : f32
    %835 = vector.broadcast %cst_667 : f32 to vector<16x1xf32>
    %836 = arith.divf %834, %835 : vector<16x1xf32>
    %837 = vector.broadcast %829 : vector<16x1xf32> to vector<16x32xf32>
    %838 = arith.subf %821, %837 : vector<16x32xf32>
    %cst_668 = arith.constant 9.99999974E-6 : f32
    %839 = vector.broadcast %cst_668 : f32 to vector<16x1xf32>
    %840 = arith.addf %836, %839 : vector<16x1xf32>
    %841 = math.rsqrt %840 : vector<16x1xf32>
    %842 = vector.broadcast %841 : vector<16x1xf32> to vector<16x32xf32>
    %843 = arith.mulf %838, %842 : vector<16x32xf32>
    %844 = vector.broadcast %823 : vector<1x32xf32> to vector<16x32xf32>
    %845 = arith.mulf %843, %844 : vector<16x32xf32>
    %846 = vector.broadcast %825 : vector<1x32xf32> to vector<16x32xf32>
    %847 = arith.addf %845, %846 : vector<16x32xf32>
    %848 = arith.truncf %847 : vector<16x32xf32> to vector<16x32xbf16>
    %c1_669 = arith.constant 1 : index
    %c0_670 = arith.constant 0 : index
    %c0_671 = arith.constant 0 : index
    %849 = vector.load %arg20[%c1_669, %c0_670, %c0_671] : memref<2x32x64xbf16, #tpu.memory_space<vmem>>, vector<1x32x64xbf16>
    %850 = vector.shape_cast %849 : vector<1x32x64xbf16> to vector<32x64xbf16>
    %cst_672 = arith.constant dense<0.000000e+00> : vector<16x64xf32>
    %851 = tpu.matmul %848, %850, %cst_672 {dimension_numbers = #tpu.dot_dimension_numbers<[1], [0], [0], [1], [0, 0, 1, 1], [], []>} : vector<16x32xbf16>, vector<32x64xbf16>, vector<16x64xf32> -> vector<16x64xf32>
    %c1_673 = arith.constant 1 : index
    %c0_674 = arith.constant 0 : index
    %c0_675 = arith.constant 0 : index
    %852 = vector.load %arg21[%c1_673, %c0_674, %c0_675] : memref<2x1x64xf32, #tpu.memory_space<vmem>>, vector<1x1x64xf32>
    %853 = vector.shape_cast %852 : vector<1x1x64xf32> to vector<1x64xf32>
    %854 = vector.broadcast %853 : vector<1x64xf32> to vector<16x64xf32>
    %855 = arith.addf %851, %854 : vector<16x64xf32>
    %cst_676 = arith.constant 0.000000e+00 : f32
    %856 = vector.broadcast %cst_676 : f32 to vector<16x64xf32>
    %857 = arith.maximumf %855, %856 : vector<16x64xf32>
    %858 = arith.truncf %857 : vector<16x64xf32> to vector<16x64xbf16>
    %c1_677 = arith.constant 1 : index
    %c0_678 = arith.constant 0 : index
    %c0_679 = arith.constant 0 : index
    %859 = vector.load %arg22[%c1_677, %c0_678, %c0_679] : memref<2x64x32xbf16, #tpu.memory_space<vmem>>, vector<1x64x32xbf16>
    %860 = vector.shape_cast %859 : vector<1x64x32xbf16> to vector<64x32xbf16>
    %cst_680 = arith.constant dense<0.000000e+00> : vector<16x32xf32>
    %861 = tpu.matmul %858, %860, %cst_680 {dimension_numbers = #tpu.dot_dimension_numbers<[1], [0], [0], [1], [0, 0, 1, 1], [], []>} : vector<16x64xbf16>, vector<64x32xbf16>, vector<16x32xf32> -> vector<16x32xf32>
    %c1_681 = arith.constant 1 : index
    %c0_682 = arith.constant 0 : index
    %c0_683 = arith.constant 0 : index
    %862 = vector.load %arg23[%c1_681, %c0_682, %c0_683] : memref<2x1x32xf32, #tpu.memory_space<vmem>>, vector<1x1x32xf32>
    %863 = vector.shape_cast %862 : vector<1x1x32xf32> to vector<1x32xf32>
    %864 = vector.broadcast %863 : vector<1x32xf32> to vector<16x32xf32>
    %865 = arith.addf %861, %864 : vector<16x32xf32>
    %866 = arith.addf %847, %865 : vector<16x32xf32>
    %c1_684 = arith.constant 1 : index
    %c2_685 = arith.constant 2 : index
    %c0_686 = arith.constant 0 : index
    %c0_687 = arith.constant 0 : index
    %867 = vector.load %arg24[%c1_684, %c2_685, %c0_686, %c0_687] : memref<2x3x1x32xf32, #tpu.memory_space<vmem>>, vector<1x1x1x32xf32>
    %868 = vector.shape_cast %867 : vector<1x1x1x32xf32> to vector<1x32xf32>
    %c1_688 = arith.constant 1 : index
    %c2_689 = arith.constant 2 : index
    %c0_690 = arith.constant 0 : index
    %c0_691 = arith.constant 0 : index
    %869 = vector.load %arg25[%c1_688, %c2_689, %c0_690, %c0_691] : memref<2x3x1x32xf32, #tpu.memory_space<vmem>>, vector<1x1x1x32xf32>
    %870 = vector.shape_cast %869 : vector<1x1x1x32xf32> to vector<1x32xf32>
    %cst_692 = arith.constant dense<0.000000e+00> : vector<16xf32>
    %871 = vector.multi_reduction <add>, %866, %cst_692 [1] : vector<16x32xf32> to vector<16xf32>
    %872 = vector.shape_cast %871 : vector<16xf32> to vector<16x1xf32>
    %cst_693 = arith.constant 3.200000e+01 : f32
    %873 = vector.broadcast %cst_693 : f32 to vector<16x1xf32>
    %874 = arith.divf %872, %873 : vector<16x1xf32>
    %875 = vector.broadcast %874 : vector<16x1xf32> to vector<16x32xf32>
    %876 = arith.subf %866, %875 : vector<16x32xf32>
    %877 = arith.mulf %876, %876 : vector<16x32xf32>
    %cst_694 = arith.constant dense<0.000000e+00> : vector<16xf32>
    %878 = vector.multi_reduction <add>, %877, %cst_694 [1] : vector<16x32xf32> to vector<16xf32>
    %879 = vector.shape_cast %878 : vector<16xf32> to vector<16x1xf32>
    %cst_695 = arith.constant 3.200000e+01 : f32
    %880 = vector.broadcast %cst_695 : f32 to vector<16x1xf32>
    %881 = arith.divf %879, %880 : vector<16x1xf32>
    %882 = vector.broadcast %874 : vector<16x1xf32> to vector<16x32xf32>
    %883 = arith.subf %866, %882 : vector<16x32xf32>
    %cst_696 = arith.constant 9.99999974E-6 : f32
    %884 = vector.broadcast %cst_696 : f32 to vector<16x1xf32>
    %885 = arith.addf %881, %884 : vector<16x1xf32>
    %886 = math.rsqrt %885 : vector<16x1xf32>
    %887 = vector.broadcast %886 : vector<16x1xf32> to vector<16x32xf32>
    %888 = arith.mulf %883, %887 : vector<16x32xf32>
    %889 = vector.broadcast %868 : vector<1x32xf32> to vector<16x32xf32>
    %890 = arith.mulf %888, %889 : vector<16x32xf32>
    %891 = vector.broadcast %870 : vector<1x32xf32> to vector<16x32xf32>
    %892 = arith.addf %890, %891 : vector<16x32xf32>
    %893 = arith.truncf %892 : vector<16x32xf32> to vector<16x32xbf16>
    %c0_697 = arith.constant 0 : index
    %c0_698 = arith.constant 0 : index
    %c0_699 = arith.constant 0 : index
    %894 = vector.load %arg3[%c0_697, %c0_698, %c0_699] : memref<1x32x8xf32, #tpu.memory_space<vmem>>, vector<1x32x8xf32>
    %895 = vector.shape_cast %894 : vector<1x32x8xf32> to vector<32x8xf32>
    %896 = arith.truncf %895 : vector<32x8xf32> to vector<32x8xbf16>
    %cst_700 = arith.constant dense<0.000000e+00> : vector<16x8xf32>
    %897 = tpu.matmul %893, %896, %cst_700 {dimension_numbers = #tpu.dot_dimension_numbers<[1], [0], [0], [1], [0, 0, 1, 1], [], []>} : vector<16x32xbf16>, vector<32x8xbf16>, vector<16x8xf32> -> vector<16x8xf32>
    %c0_701 = arith.constant 0 : index
    %c0_702 = arith.constant 0 : index
    %c0_703 = arith.constant 0 : index
    %898 = vector.load %arg26[%c0_701, %c0_702, %c0_703] : memref<1x16x8xf32, #tpu.memory_space<vmem>>, vector<1x16x8xf32>
    %899 = vector.shape_cast %898 : vector<1x16x8xf32> to vector<16x8xf32>
    %900 = vector.shape_cast %897 : vector<16x8xf32> to vector<1x16x8xf32>
    tpu.vector_store %arg26[%c0_701, %c0_702, %c0_703], %900 {strides = array<i32>} : memref<1x16x8xf32, #tpu.memory_space<vmem>>, vector<1x16x8xf32>,
    return
  }
  func.func @transform_0(%arg0: i32) -> (i32, i32, i32) {
    %c0_i32 = arith.constant 0 : i32
    %c0_i32_0 = arith.constant 0 : i32
    %c0_i32_1 = arith.constant 0 : i32
    return %arg0, %c0_i32, %c0_i32_0 : i32, i32, i32
  }
  func.func @transform_1(%arg0: i32) -> (i32, i32, i32) {
    %c0_i32 = arith.constant 0 : i32
    %c0_i32_0 = arith.constant 0 : i32
    %c0_i32_1 = arith.constant 0 : i32
    return %arg0, %c0_i32, %c0_i32_0 : i32, i32, i32
  }
  func.func @transform_2(%arg0: i32) -> (i32, i32, i32) {
    %c0_i32 = arith.constant 0 : i32
    %c0_i32_0 = arith.constant 0 : i32
    %c0_i32_1 = arith.constant 0 : i32
    return %arg0, %c0_i32, %c0_i32_0 : i32, i32, i32
  }
  func.func @transform_3(%arg0: i32) -> (i32, i32, i32, i32) {
    %c0_i32 = arith.constant 0 : i32
    %c0_i32_0 = arith.constant 0 : i32
    %c0_i32_1 = arith.constant 0 : i32
    %c0_i32_2 = arith.constant 0 : i32
    %c0_i32_3 = arith.constant 0 : i32
    return %c0_i32, %c0_i32_0, %c0_i32_1, %c0_i32_2 : i32, i32, i32, i32
  }
  func.func @transform_4(%arg0: i32) -> (i32, i32, i32, i32) {
    %c0_i32 = arith.constant 0 : i32
    %c0_i32_0 = arith.constant 0 : i32
    %c0_i32_1 = arith.constant 0 : i32
    %c0_i32_2 = arith.constant 0 : i32
    %c0_i32_3 = arith.constant 0 : i32
    return %c0_i32, %c0_i32_0, %c0_i32_1, %c0_i32_2 : i32, i32, i32, i32
  }
  func.func @transform_5(%arg0: i32) -> (i32, i32, i32, i32) {
    %c0_i32 = arith.constant 0 : i32
    %c0_i32_0 = arith.constant 0 : i32
    %c0_i32_1 = arith.constant 0 : i32
    %c0_i32_2 = arith.constant 0 : i32
    %c0_i32_3 = arith.constant 0 : i32
    return %c0_i32, %c0_i32_0, %c0_i32_1, %c0_i32_2 : i32, i32, i32, i32
  }
  func.func @transform_6(%arg0: i32) -> (i32, i32, i32, i32) {
    %c0_i32 = arith.constant 0 : i32
    %c0_i32_0 = arith.constant 0 : i32
    %c0_i32_1 = arith.constant 0 : i32
    %c0_i32_2 = arith.constant 0 : i32
    %c0_i32_3 = arith.constant 0 : i32
    return %c0_i32, %c0_i32_0, %c0_i32_1, %c0_i32_2 : i32, i32, i32, i32
  }
  func.func @transform_7(%arg0: i32) -> (i32, i32, i32, i32) {
    %c0_i32 = arith.constant 0 : i32
    %c0_i32_0 = arith.constant 0 : i32
    %c0_i32_1 = arith.constant 0 : i32
    %c0_i32_2 = arith.constant 0 : i32
    %c0_i32_3 = arith.constant 0 : i32
    return %c0_i32, %c0_i32_0, %c0_i32_1, %c0_i32_2 : i32, i32, i32, i32
  }
  func.func @transform_8(%arg0: i32) -> (i32, i32, i32, i32) {
    %c0_i32 = arith.constant 0 : i32
    %c0_i32_0 = arith.constant 0 : i32
    %c0_i32_1 = arith.constant 0 : i32
    %c0_i32_2 = arith.constant 0 : i32
    %c0_i32_3 = arith.constant 0 : i32
    return %c0_i32, %c0_i32_0, %c0_i32_1, %c0_i32_2 : i32, i32, i32, i32
  }
  func.func @transform_9(%arg0: i32) -> (i32, i32, i32, i32) {
    %c0_i32 = arith.constant 0 : i32
    %c0_i32_0 = arith.constant 0 : i32
    %c0_i32_1 = arith.constant 0 : i32
    %c0_i32_2 = arith.constant 0 : i32
    %c0_i32_3 = arith.constant 0 : i32
    return %c0_i32, %c0_i32_0, %c0_i32_1, %c0_i32_2 : i32, i32, i32, i32
  }
  func.func @transform_10(%arg0: i32) -> (i32, i32, i32) {
    %c0_i32 = arith.constant 0 : i32
    %c0_i32_0 = arith.constant 0 : i32
    %c0_i32_1 = arith.constant 0 : i32
    %c0_i32_2 = arith.constant 0 : i32
    return %c0_i32, %c0_i32_0, %c0_i32_1 : i32, i32, i32
  }
  func.func @transform_11(%arg0: i32) -> (i32, i32, i32, i32) {
    %c0_i32 = arith.constant 0 : i32
    %c0_i32_0 = arith.constant 0 : i32
    %c0_i32_1 = arith.constant 0 : i32
    %c0_i32_2 = arith.constant 0 : i32
    %c0_i32_3 = arith.constant 0 : i32
    return %c0_i32, %c0_i32_0, %c0_i32_1, %c0_i32_2 : i32, i32, i32, i32
  }
  func.func @transform_12(%arg0: i32) -> (i32, i32, i32, i32) {
    %c0_i32 = arith.constant 0 : i32
    %c0_i32_0 = arith.constant 0 : i32
    %c0_i32_1 = arith.constant 0 : i32
    %c0_i32_2 = arith.constant 0 : i32
    %c0_i32_3 = arith.constant 0 : i32
    return %c0_i32, %c0_i32_0, %c0_i32_1, %c0_i32_2 : i32, i32, i32, i32
  }
  func.func @transform_13(%arg0: i32) -> (i32, i32, i32, i32) {
    %c0_i32 = arith.constant 0 : i32
    %c0_i32_0 = arith.constant 0 : i32
    %c0_i32_1 = arith.constant 0 : i32
    %c0_i32_2 = arith.constant 0 : i32
    %c0_i32_3 = arith.constant 0 : i32
    return %c0_i32, %c0_i32_0, %c0_i32_1, %c0_i32_2 : i32, i32, i32, i32
  }
  func.func @transform_14(%arg0: i32) -> (i32, i32, i32, i32) {
    %c0_i32 = arith.constant 0 : i32
    %c0_i32_0 = arith.constant 0 : i32
    %c0_i32_1 = arith.constant 0 : i32
    %c0_i32_2 = arith.constant 0 : i32
    %c0_i32_3 = arith.constant 0 : i32
    return %c0_i32, %c0_i32_0, %c0_i32_1, %c0_i32_2 : i32, i32, i32, i32
  }
  func.func @transform_15(%arg0: i32) -> (i32, i32, i32, i32) {
    %c0_i32 = arith.constant 0 : i32
    %c0_i32_0 = arith.constant 0 : i32
    %c0_i32_1 = arith.constant 0 : i32
    %c0_i32_2 = arith.constant 0 : i32
    %c0_i32_3 = arith.constant 0 : i32
    return %c0_i32, %c0_i32_0, %c0_i32_1, %c0_i32_2 : i32, i32, i32, i32
  }
  func.func @transform_16(%arg0: i32) -> (i32, i32, i32, i32) {
    %c0_i32 = arith.constant 0 : i32
    %c0_i32_0 = arith.constant 0 : i32
    %c0_i32_1 = arith.constant 0 : i32
    %c0_i32_2 = arith.constant 0 : i32
    %c0_i32_3 = arith.constant 0 : i32
    return %c0_i32, %c0_i32_0, %c0_i32_1, %c0_i32_2 : i32, i32, i32, i32
  }
  func.func @transform_17(%arg0: i32) -> (i32, i32, i32, i32) {
    %c0_i32 = arith.constant 0 : i32
    %c0_i32_0 = arith.constant 0 : i32
    %c0_i32_1 = arith.constant 0 : i32
    %c0_i32_2 = arith.constant 0 : i32
    %c0_i32_3 = arith.constant 0 : i32
    return %c0_i32, %c0_i32_0, %c0_i32_1, %c0_i32_2 : i32, i32, i32, i32
  }
  func.func @transform_18(%arg0: i32) -> (i32, i32, i32) {
    %c0_i32 = arith.constant 0 : i32
    %c0_i32_0 = arith.constant 0 : i32
    %c0_i32_1 = arith.constant 0 : i32
    %c0_i32_2 = arith.constant 0 : i32
    return %c0_i32, %c0_i32_0, %c0_i32_1 : i32, i32, i32
  }
  func.func @transform_19(%arg0: i32) -> (i32, i32, i32) {
    %c0_i32 = arith.constant 0 : i32
    %c0_i32_0 = arith.constant 0 : i32
    %c0_i32_1 = arith.constant 0 : i32
    %c0_i32_2 = arith.constant 0 : i32
    return %c0_i32, %c0_i32_0, %c0_i32_1 : i32, i32, i32
  }
  func.func @transform_20(%arg0: i32) -> (i32, i32, i32) {
    %c0_i32 = arith.constant 0 : i32
    %c0_i32_0 = arith.constant 0 : i32
    %c0_i32_1 = arith.constant 0 : i32
    %c0_i32_2 = arith.constant 0 : i32
    return %c0_i32, %c0_i32_0, %c0_i32_1 : i32, i32, i32
  }
  func.func @transform_21(%arg0: i32) -> (i32, i32, i32) {
    %c0_i32 = arith.constant 0 : i32
    %c0_i32_0 = arith.constant 0 : i32
    %c0_i32_1 = arith.constant 0 : i32
    %c0_i32_2 = arith.constant 0 : i32
    return %c0_i32, %c0_i32_0, %c0_i32_1 : i32, i32, i32
  }
  func.func @transform_22(%arg0: i32) -> (i32, i32, i32) {
    %c0_i32 = arith.constant 0 : i32
    %c0_i32_0 = arith.constant 0 : i32
    %c0_i32_1 = arith.constant 0 : i32
    %c0_i32_2 = arith.constant 0 : i32
    return %c0_i32, %c0_i32_0, %c0_i32_1 : i32, i32, i32
  }
  func.func @transform_23(%arg0: i32) -> (i32, i32, i32, i32) {
    %c0_i32 = arith.constant 0 : i32
    %c0_i32_0 = arith.constant 0 : i32
    %c0_i32_1 = arith.constant 0 : i32
    %c0_i32_2 = arith.constant 0 : i32
    %c0_i32_3 = arith.constant 0 : i32
    return %c0_i32, %c0_i32_0, %c0_i32_1, %c0_i32_2 : i32, i32, i32, i32
  }
  func.func @transform_24(%arg0: i32) -> (i32, i32, i32, i32) {
    %c0_i32 = arith.constant 0 : i32
    %c0_i32_0 = arith.constant 0 : i32
    %c0_i32_1 = arith.constant 0 : i32
    %c0_i32_2 = arith.constant 0 : i32
    %c0_i32_3 = arith.constant 0 : i32
    return %c0_i32, %c0_i32_0, %c0_i32_1, %c0_i32_2 : i32, i32, i32, i32
  }
  func.func @transform_25(%arg0: i32) -> (i32, i32, i32) {
    %c0_i32 = arith.constant 0 : i32
    %c0_i32_0 = arith.constant 0 : i32
    %c0_i32_1 = arith.constant 0 : i32
    return %arg0, %c0_i32, %c0_i32_0 : i32, i32, i32
  }
}

</mosaic_0001>

<bundles_post_ra>
// kernel: decoder_duration_forward.1
= control target key start
LH: loop header
LB: loop body
LE: loop exit
PB: predicated region body
PF: predicated region fallthrough
CT: control target
= control target key end

     0   :  { %s9385_s29 = smov 0   ;;  %s10834_s0 = inlined_call_operand.vmem [shape: f32[2,16,32], index: 0, kind: input, shape index: {}]   ;;  %s10835_s1 = inlined_call_operand.vmem [shape: f32[2,8,32], index: 1, kind: input, shape index: {}]   ;;  %s10836_s2 = inlined_call_operand.vmem [shape: f32[2,32,8], index: 2, kind: input, shape index: {}]   ;;  %s10837_s3 = inlined_call_operand.vmem [shape: bf16[2,4,32,8], index: 3, kind: input, shape index: {}]   ;;  %s10838_s4 = inlined_call_operand.vmem [shape: bf16[2,4,32,8], index: 4, kind: input, shape index: {}]   ;;  %s10839_s5 = inlined_call_operand.vmem [shape: bf16[2,4,32,8], index: 5, kind: input, shape index: {}]   ;;  %s10840_s6 = inlined_call_operand.vmem [shape: f32[2,4,1,8], index: 6, kind: input, shape index: {}]   ;;  %s10841_s7 = inlined_call_operand.vmem [shape: f32[2,4,1,8], index: 7, kind: input, shape index: {}]   ;;  %s10842_s8 = inlined_call_operand.vmem [shape: f32[2,4,1,8], index: 8, kind: input, shape index: {}]   ;;  %s10843_s9 = inlined_call_operand.vmem [shape: bf16[2,4,8,32], index: 9, kind: input, shape index: {}]   ;;  %s10844_s10 = inlined_call_operand.vmem [shape: f32[2,1,32], index: 10, kind: input, shape index: {}]   ;;  %s10845_s11 = inlined_call_operand.vmem [shape: bf16[2,4,32,8], index: 11, kind: input, shape index: {}]   ;;  %s10846_s12 = inlined_call_operand.vmem [shape: bf16[2,4,32,8], index: 12, kind: input, shape index: {}]   ;;  %s10847_s13 = inlined_call_operand.vmem [shape: bf16[2,4,32,8], index: 13, kind: input, shape index: {}]   ;;  %s10848_s14 = inlined_call_operand.vmem [shape: f32[2,4,1,8], index: 14, kind: input, shape index: {}]   ;;  %s10849_s15 = inlined_call_operand.vmem [shape: f32[2,4,1,8], index: 15, kind: input, shape index: {}]   ;;  %s10850_s16 = inlined_call_operand.vmem [shape: f32[2,4,1,8], index: 16, kind: input, shape index: {}]   ;;  %s10851_s17 = inlined_call_operand.vmem [shape: bf16[2,4,8,32], index: 17, kind: input, shape index: {}]   ;;  %s10852_s18 = inlined_call_operand.vmem [shape: f32[2,1,32], index: 18, kind: input, shape index: {}]   ;;  %s10853_s19 = inlined_call_operand.vmem [shape: bf16[2,32,64], index: 19, kind: input, shape index: {}]   ;;  %s10854_s20 = inlined_call_operand.vmem [shape: f32[2,1,64], index: 20, kind: input, shape index: {}]   ;;  %s10855_s21 = inlined_call_operand.vmem [shape: bf16[2,64,32], index: 21, kind: input, shape index: {}]   ;;  %s10856_s22 = inlined_call_operand.vmem [shape: f32[2,1,32], index: 22, kind: input, shape index: {}]   ;;  %s10857_s23 = inlined_call_operand.vmem [shape: f32[2,3,1,32], index: 23, kind: input, shape index: {}]   ;;  %s10858_s24 = inlined_call_operand.vmem [shape: f32[2,3,1,32], index: 24, kind: input, shape index: {}]   ;;  %s10859_s25 = inlined_call_operand.vmem [shape: f32[2,16,8], index: 25, kind: output, shape index: {}]  }
   0x1   :  { %10868 = sst [smem:[#allocation2_spill]] %s10834_s0 }
   0x2   :  { %10869 = sst [smem:[#allocation3_spill]] %s10835_s1 }
   0x3   :  { %10870 = sst [smem:[#allocation4_spill]] %s10836_s2 }
   0x4   :  { %10871 = sst [smem:[#allocation5_spill]] %s10837_s3 }
   0x5   :  { %10872 = sst [smem:[#allocation6_spill]] %s10838_s4 }
   0x6   :  { %10873 = sst [smem:[#allocation7_spill]] %s10839_s5 }
   0x7   :  { %10874 = sst [smem:[#allocation8_spill]] %s10840_s6 }
   0x8   :  { %10875 = sst [smem:[#allocation9_spill]] %s10841_s7 }
   0x9   :  { %10876 = sst [smem:[#allocation10_spill]] %s10842_s8 }
   0xa   :  { %10877 = sst [smem:[#allocation11_spill]] %s10843_s9 }
   0xb   :  { %10878 = sst [smem:[#allocation12_spill]] %s10846_s12 }
   0xc   :  { %10879 = sst [smem:[#allocation13_spill]] %s10847_s13 }
   0xd LB: > { %s7450_s2 = sadd.s32 4294967295, %s9251_s29   ;;  %p7454_p0 = scmp.ge.s32.totalorder %s9251_s29, 1  ;;  %s9251_s29 = sphi %s9385_s29, %s35_s29  }
   0xe   : > { %p706_p1 = scmp.lt.s32.totalorder %s9251_s29, 3 }
  0x10   : > { %p707_p2 = pnand %p7454_p0, %p706_p1 }
  0x11   : > { %s10880_s12 = sld [smem:[#allocation12_spill]] (!%p707_p2)  ;;  %v9253_v1 = vmov (!%p707_p2), 0.0   ;;  %vm9254_vm0 = vmmov (!%p707_p2), 0   ;;  %p783_p3 = scmp.lt.s32.totalorder (!%p707_p2), %s7450_s2, 1  ;;  %vm830_vm1 = vcmask (!%p707_p2), 261120   ;;  %vm2464_vm2 = vcmask (!%p707_p2), 64512  }
  0x12   : > { %710 = sbr.rel (%p707_p2) target bundleno = 16934 (0x4226), region = 120  ;;  %8253 = vmatprep.subr.bf16.mxu0 (!%p707_p2), %v9253_v1  ;;  %8261 = vmatprep.subr.bf16.mxu1 (!%p707_p2), %v9253_v1  ;;  %s10881_s27 = sld [smem:[#allocation3_spill]] (!%p707_p2)  ;;  %vm2512_vm3 = vcmask (!%p707_p2), 130048   ;;  %vm2769_vm4 = vcmask (!%p707_p2), 1043456   ;;  %vm4491_vm5 = vcmask (!%p707_p2), 523264  }
  0x13   : > { %8257 = vmatprep.mubr.msk.bf16.mxu0 (!%p707_p2), %vm9254_vm0, %v9253_v1  ;;  %8265 = vmatprep.mubr.msk.bf16.mxu1 (!%p707_p2), %vm9254_vm0, %v9253_v1  ;;  %s10882_s13 = sld [smem:[#allocation13_spill]] (!%p707_p2)  ;;  %s10883_s8 = sld [smem:[#allocation6_spill]] (!%p707_p2) }
  0x14   : > { %s10884_s28 = sld [smem:[#allocation2_spill]] (!%p707_p2)  ;;  %s10886_s5 = sld [smem:[#allocation5_spill]] (!%p707_p2) }
  0x15   : > { %s10887_s30 = sld [smem:[#allocation9_spill]] (!%p707_p2)  ;;  %s10890_s0 = sld [smem:[#allocation11_spill]] (!%p707_p2) }
  0x16   : > { %s10891_s6 = sld [smem:[#allocation4_spill]] (!%p707_p2) }
  0x17   : > { %v8983_v0 = vld [vmem:[%s10880_s12] sm:$0xff] (!%p707_p2)   ;;  %v8984_v2 = vld [vmem:[%s10880_s12 + $0x8] sm:$0xff] (!%p707_p2)   ;;  %v9009_v11 = vld [vmem:[%s10880_s12 + $0x10] sm:$0xff] (!%p707_p2)  }
  0x18   : > { %8254 = vmatpush3.bf16.msra.mxu0 (!%p707_p2), %v8983_v0  ;;  %v8985_v4 = vld [vmem:[%s10880_s12 + $0x20] sm:$0xff] (!%p707_p2)   ;;  %v8986_v6 = vld [vmem:[%s10880_s12 + $0x28] sm:$0xff] (!%p707_p2)   ;;  %8262 = vmatpush3.bf16.msra.mxu1 (!%p707_p2), %v9009_v11  ;;  %v9010_v12 = vld [vmem:[%s10880_s12 + $0x18] sm:$0xff] (!%p707_p2)  }
  0x19   : > { %8255 = vmatprep.subr.bf16.mxu0 %v9253_v1  ;;  %s10894_s2 = smov (!%p783_p3, %s7450_s2), 1  ;;  %v8987_v7 = vld [vmem:[%s10880_s12 + $0x40] sm:$0xff]   ;;  %v8988_v8 = vld [vmem:[%s10880_s12 + $0x48] sm:$0xff]   ;;  %8263 = vmatprep.subr.bf16.mxu1 %v9253_v1  ;;  %v9011_v14 = vld [vmem:[%s10880_s12 + $0x30] sm:$0xff]  }
  0x1a   : > { %s7457_s26 = sshll.u32 %s10894_s2, 3  ;;  %v8989_v9 = vld [vmem:[%s10880_s12 + $0x60] sm:$0xff]   ;;  %v8990_v10 = vld [vmem:[%s10880_s12 + $0x68] sm:$0xff]   ;;  %s10867_s1 = sshll.u32 %s10894_s2, 4  ;;  %v9012_v16 = vld [vmem:[%s10880_s12 + $0x38] sm:$0xff]  }
  0x1b   : > { %s791_s4 = scalar_lea.vmem %s10881_s27, %s7457_s26  ;;  %v8991_v13 = vld [vmem:[%s10882_s13] sm:$0xff]   ;;  %v8992_v15 = vld [vmem:[%s10882_s13 + $0x8] sm:$0xff]   ;;  %v9013_v18 = vld [vmem:[%s10880_s12 + $0x50] sm:$0xff]   ;;  %s9555_s9 = scalar_lea.vmem %s10884_s28, %s10867_s1 }
  0x1c   : > { %8256 = vmatpush3.bf16.msra.mxu0 %v8984_v2  ;;  %v805_v3 = vld [vmem:[%s791_s4] sm:$0xff]  ;;  %8264 = vmatpush3.bf16.msra.mxu1 %v9010_v12  ;;  %v8994_v19 = vld [vmem:[%s10882_s13 + $0x28] sm:$0xff]   ;;  %v9014_v20 = vld [vmem:[%s10880_s12 + $0x58] sm:$0xff]   ;;  %s10885_s4 = sld [smem:[#allocation7_spill]]  ;;  %s10888_s28 = sld [smem:[#allocation10_spill]] }
  0x1d   : > { %8269 = vmatprep.subr.bf16.mxu0 %v9253_v1  ;;  %v9416_v5 = vpack.c.bf16 %v805_v3, %v805_v3  ;;  %8277 = vmatprep.subr.bf16.mxu1 %v9253_v1  ;;  %v8993_v17 = vld [vmem:[%s10882_s13 + $0x20] sm:$0xff]   ;;  %v9015_v22 = vld [vmem:[%s10880_s12 + $0x70] sm:$0xff]   ;;  %v8996_v23 = vld [vmem:[%s10882_s13 + $0x48] sm:$0xff]   ;;  %s10889_s26 = sld [smem:[#allocation8_spill]]  ;;  %s10892_s3 = sshll.u32 %s10894_s2, 4 }
  0x1e   : > { %v8995_v21 = vld [vmem:[%s10882_s13 + $0x40] sm:$0xff]   ;;  %v9016_v24 = vld [vmem:[%s10880_s12 + $0x78] sm:$0xff]   ;;  %v8998_v26 = vld [vmem:[%s10882_s13 + $0x68] sm:$0xff]  }
  0x1f   : > { %8258 = vmatmul.mubr.msk.bf16.vlgmr.msra.gmra.mrb[0].mxu0 %vm830_vm1, %v9416_v5  ;;  %8266 = vmatmul.mubr.msk.bf16.vlgmr.msra.gmra.mrb[0].mxu1 %vm830_vm1, %v9416_v5  ;;  %v8997_v25 = vld [vmem:[%s10882_s13 + $0x60] sm:$0xff]   ;;  %v9000_v28 = vld [vmem:[%s10883_s8 + $0x8] sm:$0xff]   ;;  %v9017_v38 = vld [vmem:[%s10882_s13 + $0x10] sm:$0xff]  }
  0x20   : > { %8270 = vmatpush3.bf16.msra.mxu0 %v8985_v4  ;;  %8273 = vmatprep.mubr.msk.bf16.mxu0 %vm9254_vm0, %v9253_v1  ;;  %v8999_v27 = vld [vmem:[%s10883_s8] sm:$0xff]   ;;  %v804_v30 = vld [vmem:[%s9555_s9 + $0x8] sm:$0xff]  ;;  %v9018_v40 = vld [vmem:[%s10882_s13 + $0x18] sm:$0xff]  }
  0x21   : > { %8271 = vmatprep.subr.bf16.mxu0 %v9253_v1  ;;  %8278 = vmatpush3.bf16.msra.mxu1 %v9011_v14  ;;  %v803_v29 = vld [vmem:[%s9555_s9] sm:$0xff]  ;;  %v9002_v33 = vld [vmem:[%s10883_s8 + $0x28] sm:$0xff]   ;;  %v9019_v42 = vld [vmem:[%s10882_s13 + $0x30] sm:$0xff]  }
  0x22   : > { %8281 = vmatprep.mubr.msk.bf16.mxu1 %vm9254_vm0, %v9253_v1  ;;  %8279 = vmatprep.subr.bf16.mxu1 %v9253_v1  ;;  %v9001_v31 = vld [vmem:[%s10883_s8 + $0x20] sm:$0xff]   ;;  %v9571_v32 = vpack.c.bf16 %v804_v30, %v803_v29  ;;  %v9004_v35 = vld [vmem:[%s10885_s4 + $0x8] sm:$0xff]   ;;  %v9020_v43 = vld [vmem:[%s10882_s13 + $0x38] sm:$0xff]  }
  0x23   : > { %v9003_v34 = vld [vmem:[%s10885_s4] sm:$0xff]   ;;  %v9006_v37 = vld [vmem:[%s10885_s4 + $0x28] sm:$0xff]   ;;  %v9021_v44 = vld [vmem:[%s10882_s13 + $0x50] sm:$0xff]  }
  0x24   : > { %8272 = vmatpush3.bf16.msra.mxu0 %v8986_v6  ;;  %v9005_v36 = vld [vmem:[%s10885_s4 + $0x20] sm:$0xff]   ;;  %v9008_v41 = vld [vmem:[%s10886_s5 + $0x8] sm:$0xff]   ;;  %v9022_v45 = vld [vmem:[%s10882_s13 + $0x58] sm:$0xff]  }
  0x25   : > { %8285 = vmatprep.subr.bf16.mxu0 %v9253_v1  ;;  %8280 = vmatpush3.bf16.msra.mxu1 %v9012_v16  ;;  %v9007_v39 = vld [vmem:[%s10886_s5] sm:$0xff]   ;;  %v9023_v46 = vld [vmem:[%s10882_s13 + $0x70] sm:$0xff]   ;;  %v9024_v47 = vld [vmem:[%s10882_s13 + $0x78] sm:$0xff]  }
  0x26   : > { %8293 = vmatprep.subr.bf16.mxu1 %v9253_v1  ;;  %v9025_v48 = vld [vmem:[%s10883_s8 + $0x10] sm:$0xff]   ;;  %v9026_v49 = vld [vmem:[%s10883_s8 + $0x18] sm:$0xff]  }
  0x27   : > { %8274 = vmatmul.mubr.msk.bf16.vlgmr.msra.gmra.mrb[4].mxu0 %vm830_vm1, %v9416_v5  ;;  %v9027_v50 = vld [vmem:[%s10883_s8 + $0x30] sm:$0xff]   ;;  %v9028_v51 = vld [vmem:[%s10883_s8 + $0x38] sm:$0xff]  }
  0x28   : > { %8286 = vmatpush3.bf16.msra.mxu0 %v8987_v7  ;;  %8289 = vmatprep.mubr.msk.bf16.mxu0 %vm9254_vm0, %v9253_v1  ;;  %v9029_v52 = vld [vmem:[%s10885_s4 + $0x10] sm:$0xff]   ;;  %v9030_v53 = vld [vmem:[%s10885_s4 + $0x18] sm:$0xff]  }
  0x29   : > { %8287 = vmatprep.subr.bf16.mxu0 %v9253_v1  ;;  %8282 = vmatmul.mubr.msk.bf16.vlgmr.msra.gmra.mrb[4].mxu1 %vm830_vm1, %v9416_v5  ;;  %v9031_v54 = vld [vmem:[%s10885_s4 + $0x30] sm:$0xff]   ;;  %v9032_v55 = vld [vmem:[%s10885_s4 + $0x38] sm:$0xff]  }
  0x2a   : > { %8294 = vmatpush3.bf16.msra.mxu1 %v9013_v18  ;;  %8297 = vmatprep.mubr.msk.bf16.mxu1 %vm9254_vm0, %v9253_v1 }
  0x2b   : > { %8295 = vmatprep.subr.bf16.mxu1 %v9253_v1 }
  0x2c   : > { %8288 = vmatpush3.bf16.msra.mxu0 %v8988_v8 }
  0x2d   : > { %8301 = vmatprep.subr.bf16.mxu0 %v9253_v1 }
  0x2e   : > { %8296 = vmatpush3.bf16.msra.mxu1 %v9014_v20 }
  0x2f   : > { %8290 = vmatmul.mubr.msk.bf16.vlgmr.msra.gmra.mrb[8].mxu0 %vm830_vm1, %v9416_v5  ;;  %8309 = vmatprep.subr.bf16.mxu1 %v9253_v1 }
  0x30   : > { %8302 = vmatpush3.bf16.msra.mxu0 %v8989_v9  ;;  %8305 = vmatprep.mubr.msk.bf16.mxu0 %vm9254_vm0, %v9253_v1 }
  0x31   : > { %8303 = vmatprep.subr.bf16.mxu0 %v9253_v1  ;;  %8298 = vmatmul.mubr.msk.bf16.vlgmr.msra.gmra.mrb[8].mxu1 %vm830_vm1, %v9416_v5 }
  0x32   : > { %8310 = vmatpush3.bf16.msra.mxu1 %v9015_v22  ;;  %8313 = vmatprep.mubr.msk.bf16.mxu1 %vm9254_vm0, %v9253_v1 }
  0x33   : > { %8311 = vmatprep.subr.bf16.mxu1 %v9253_v1 }
  0x34   : > { %8304 = vmatpush3.bf16.msra.mxu0 %v8990_v10 }
  0x35   : > { %8317 = vmatprep.subr.bf16.mxu0 %v9253_v1 }
  0x36   : > { %8312 = vmatpush3.bf16.msra.mxu1 %v9016_v24 }
  0x37   : > { %8306 = vmatmul.mubr.msk.bf16.vlgmr.msra.gmra.mrb[12].mxu0 %vm830_vm1, %v9416_v5  ;;  %8325 = vmatprep.subr.bf16.mxu1 %v9253_v1 }
  0x38   : > { %8318 = vmatpush3.bf16.msra.mxu0 %v8991_v13  ;;  %8321 = vmatprep.mubr.msk.bf16.mxu0 %vm9254_vm0, %v9253_v1 }
  0x39   : > { %8319 = vmatprep.subr.bf16.mxu0 %v9253_v1  ;;  %8314 = vmatmul.mubr.msk.bf16.vlgmr.msra.gmra.mrb[12].mxu1 %vm830_vm1, %v9416_v5 }
  0x3a   : > { %8329 = vmatprep.mubr.msk.bf16.mxu1 %vm9254_vm0, %v9253_v1  ;;  %8326 = vmatpush3.bf16.msra.mxu1 %v9017_v38 }
  0x3b   : > { %8327 = vmatprep.subr.bf16.mxu1 %v9253_v1 }
  0x3c   : > { %8320 = vmatpush3.bf16.msra.mxu0 %v8992_v15 }
  0x3d   : > { %8333 = vmatprep.subr.bf16.mxu0 %v9253_v1 }
  0x3e   : > { %8328 = vmatpush3.bf16.msra.mxu1 %v9018_v40 }
  0x3f   : > { %8322 = vmatmul.mubr.msk.bf16.vlgmr.msra.gmra.mrb[16].mxu0 %vm830_vm1, %v9416_v5  ;;  %8341 = vmatprep.subr.bf16.mxu1 %v9253_v1 }
  0x40   : > { %8334 = vmatpush3.bf16.msra.mxu0 %v8993_v17  ;;  %8337 = vmatprep.mubr.msk.bf16.mxu0 %vm9254_vm0, %v9253_v1 }
  0x41   : > { %8335 = vmatprep.subr.bf16.mxu0 %v9253_v1  ;;  %8330 = vmatmul.mubr.msk.bf16.vlgmr.msra.gmra.mrb[16].mxu1 %vm830_vm1, %v9416_v5 }
  0x42   : > { %8342 = vmatpush3.bf16.msra.mxu1 %v9019_v42  ;;  %8345 = vmatprep.mubr.msk.bf16.mxu1 %vm9254_vm0, %v9253_v1  ;;  %v7596_v42 = vld [vmem:[%s10887_s30] ss:$0 sm:$0xff] }
  0x43   : > { %8343 = vmatprep.subr.bf16.mxu1 %v9253_v1 }
  0x44   : > { %8336 = vmatpush3.bf16.msra.mxu0 %v8994_v19 }
  0x45   : > { %8349 = vmatprep.subr.bf16.mxu0 %v9253_v1 }
  0x46   : > { %8344 = vmatpush3.bf16.msra.mxu1 %v9020_v43 }
  0x47   : > { %8338 = vmatmul.mubr.msk.bf16.vlgmr.msra.gmra.mrb[20].mxu0 %vm830_vm1, %v9416_v5  ;;  %8357 = vmatprep.subr.bf16.mxu1 %v9253_v1 }
  0x48   : > { %8350 = vmatpush3.bf16.msra.mxu0 %v8995_v21  ;;  %8353 = vmatprep.mubr.msk.bf16.mxu0 %vm9254_vm0, %v9253_v1 }
  0x49   : > { %8351 = vmatprep.subr.bf16.mxu0 %v9253_v1  ;;  %8346 = vmatmul.mubr.msk.bf16.vlgmr.msra.gmra.mrb[20].mxu1 %vm830_vm1, %v9416_v5 }
  0x4a   : > { %8358 = vmatpush3.bf16.msra.mxu1 %v9021_v44  ;;  %8361 = vmatprep.mubr.msk.bf16.mxu1 %vm9254_vm0, %v9253_v1 }
  0x4b   : > { %8359 = vmatprep.subr.bf16.mxu1 %v9253_v1 }
  0x4c   : > { %8352 = vmatpush3.bf16.msra.mxu0 %v8996_v23 }
  0x4d   : > { %8365 = vmatprep.subr.bf16.mxu0 %v9253_v1 }
  0x4e   : > { %8360 = vmatpush3.bf16.msra.mxu1 %v9022_v45 }
  0x4f   : > { %8354 = vmatmul.mubr.msk.bf16.vlgmr.msra.gmra.mrb[24].mxu0 %vm830_vm1, %v9416_v5  ;;  %8373 = vmatprep.subr.bf16.mxu1 %v9253_v1 }
  0x50   : > { %8366 = vmatpush3.bf16.msra.mxu0 %v8997_v25  ;;  %8369 = vmatprep.mubr.msk.bf16.mxu0 %vm9254_vm0, %v9253_v1 }
  0x51   : > { %8367 = vmatprep.subr.bf16.mxu0 %v9253_v1  ;;  %8362 = vmatmul.mubr.msk.bf16.vlgmr.msra.gmra.mrb[24].mxu1 %vm830_vm1, %v9416_v5 }
  0x52   : > { %8374 = vmatpush3.bf16.msra.mxu1 %v9023_v46  ;;  %8377 = vmatprep.mubr.msk.bf16.mxu1 %vm9254_vm0, %v9253_v1 }
  0x53   : > { %8375 = vmatprep.subr.bf16.mxu1 %v9253_v1 }
  0x54   : > { %8368 = vmatpush3.bf16.msra.mxu0 %v8998_v26 }
  0x55   : > { %8381 = vmatprep.subr.bf16.mxu0 %v9253_v1 }
  0x56   : > { %8376 = vmatpush3.bf16.msra.mxu1 %v9024_v47 }
  0x57   : > { %8370 = vmatmul.mubr.msk.bf16.vlgmr.msra.gmra.mrb[28].mxu0 %vm830_vm1, %v9416_v5  ;;  %8389 = vmatprep.subr.bf16.mxu1 %v9253_v1 }
  0x58   : > { %8382 = vmatpush3.bf16.msra.mxu0 %v8999_v27  ;;  %8385 = vmatprep.mubr.msk.bf16.mxu0 %vm9254_vm0, %v9253_v1 }
  0x59   : > { %8383 = vmatprep.subr.bf16.mxu0 %v9253_v1  ;;  %8378 = vmatmul.mubr.msk.bf16.vlgmr.msra.gmra.mrb[28].mxu1 %vm830_vm1, %v9416_v5 }
  0x5a   : > { %8390 = vmatpush3.bf16.msra.mxu1 %v9025_v48  ;;  %8393 = vmatprep.mubr.msk.bf16.mxu1 %vm9254_vm0, %v9253_v1 }
  0x5b   : > { %8391 = vmatprep.subr.bf16.mxu1 %v9253_v1 }
  0x5c   : > { %8384 = vmatpush3.bf16.msra.mxu0 %v9000_v28 }
  0x5d   : > { %8397 = vmatprep.subr.bf16.mxu0 %v9253_v1 }
  0x5e   : > { %8392 = vmatpush3.bf16.msra.mxu1 %v9026_v49 }
  0x5f   : > { %8386 = vmatmul.mubr.msk.bf16.vlgmr.msra.gmra.mrb[32].mxu0 %vm830_vm1, %v9571_v32  ;;  %8405 = vmatprep.subr.bf16.mxu1 %v9253_v1 }
  0x60   : > { %8398 = vmatpush3.bf16.msra.mxu0 %v9001_v31  ;;  %8401 = vmatprep.mubr.msk.bf16.mxu0 %vm9254_vm0, %v9253_v1 }
  0x61   : > { %8399 = vmatprep.subr.bf16.mxu0 %v9253_v1  ;;  %8394 = vmatmul.mubr.msk.bf16.vlgmr.msra.gmra.mrb[32].mxu1 %vm830_vm1, %v9571_v32 }
  0x62   : > { %8406 = vmatpush3.bf16.msra.mxu1 %v9027_v50  ;;  %8409 = vmatprep.mubr.msk.bf16.mxu1 %vm9254_vm0, %v9253_v1 }
  0x63   : > { %8407 = vmatprep.subr.bf16.mxu1 %v9253_v1 }
  0x64   : > { %8400 = vmatpush3.bf16.msra.mxu0 %v9002_v33 }
  0x65   : > { %8413 = vmatprep.subr.bf16.mxu0 %v9253_v1 }
  0x66   : > { %8408 = vmatpush3.bf16.msra.mxu1 %v9028_v51  ;;  %v7614_v51 = vld [vmem:[%s10887_s30 + $0x2] ss:$0 sm:$0xff] }
  0x67   : > { %8402 = vmatmul.mubr.msk.bf16.vlgmr.msra.gmra.mrb[36].mxu0 %vm830_vm1, %v9571_v32  ;;  %8421 = vmatprep.subr.bf16.mxu1 %v9253_v1 }
  0x68   : > { %8414 = vmatpush3.bf16.msra.mxu0 %v9003_v34  ;;  %8417 = vmatprep.mubr.msk.bf16.mxu0 %vm9254_vm0, %v9253_v1 }
  0x69   : > { %8415 = vmatprep.subr.bf16.mxu0 %v9253_v1  ;;  %8410 = vmatmul.mubr.msk.bf16.vlgmr.msra.gmra.mrb[36].mxu1 %vm830_vm1, %v9571_v32 }
  0x6a   : > { %8422 = vmatpush3.bf16.msra.mxu1 %v9029_v52  ;;  %8425 = vmatprep.mubr.msk.bf16.mxu1 %vm9254_vm0, %v9253_v1 }
  0x6b   : > { %8423 = vmatprep.subr.bf16.mxu1 %v9253_v1 }
  0x6c   : > { %8416 = vmatpush3.bf16.msra.mxu0 %v9004_v35 }
  0x6d   : > { %8429 = vmatprep.subr.bf16.mxu0 %v9253_v1 }
  0x6e   : > { %8424 = vmatpush3.bf16.msra.mxu1 %v9030_v53 }
  0x6f   : > { %8418 = vmatmul.mubr.msk.bf16.vlgmr.msra.gmra.mrb[40].mxu0 %vm830_vm1, %v9571_v32  ;;  %8437 = vmatprep.subr.bf16.mxu1 %v9253_v1 }
  0x70   : > { %8430 = vmatpush3.bf16.msra.mxu0 %v9005_v36  ;;  %8433 = vmatprep.mubr.msk.bf16.mxu0 %vm9254_vm0, %v9253_v1 }
  0x71   : > { %8431 = vmatprep.subr.bf16.mxu0 %v9253_v1  ;;  %8426 = vmatmul.mubr.msk.bf16.vlgmr.msra.gmra.mrb[40].mxu1 %vm830_vm1, %v9571_v32 }
  0x72   : > { %8438 = vmatpush3.bf16.msra.mxu1 %v9031_v54  ;;  %8441 = vmatprep.mubr.msk.bf16.mxu1 %vm9254_vm0, %v9253_v1 }
  0x73   : > { %8439 = vmatprep.subr.bf16.mxu1 %v9253_v1 }
  0x74   : > { %8432 = vmatpush3.bf16.msra.mxu0 %v9006_v37 }
  0x75   : > { %8445 = vmatprep.subr.bf16.mxu0 %v9253_v1 }
  0x76   : > { %8440 = vmatpush3.bf16.msra.mxu1 %v9032_v55 }
  0x77   : > { %8434 = vmatmul.mubr.msk.bf16.vlgmr.msra.gmra.mrb[44].mxu0 %vm830_vm1, %v9571_v32  ;;  %8453 = vmatprep.subr.bf16.mxu1 %v9253_v1 }
  0x78   : > { %8446 = vmatpush3.bf16.msra.mxu0 %v9007_v39  ;;  %8449 = vmatprep.mubr.msk.bf16.mxu0 %vm9254_vm0, %v9253_v1 }
  0x79   : > { %8447 = vmatprep.subr.bf16.mxu0 %v9253_v1  ;;  %8442 = vmatmul.mubr.msk.bf16.vlgmr.msra.gmra.mrb[44].mxu1 %vm830_vm1, %v9571_v32 }
  0x7a   : > { %8455 = vmatprep.mubr.msk.bf16.mxu1 %vm9254_vm0, %v9253_v1 }
  0x7c   : > { %8448 = vmatpush3.bf16.msra.mxu0 %v9008_v41 }
  0x7d   : > { %8459 = vmatprep.subr.bf16.mxu0 %v9253_v1 }
  0x7f   : > { %8450 = vmatmul.mubr.msk.bf16.vlgmr.msra.gmra.mrb[48].mxu0 %vm830_vm1, %v9571_v32 }
  0x80   : > { %8461 = vmatprep.mubr.msk.bf16.mxu0 %vm9254_vm0, %v9253_v1 }
  0xf2   : > { %v9719_v56 = vpop.f32.mrb[0].mxu0  ;;  %v9727_v8 = vpop.f32.mrb[0].mxu1 }
  0xf3   : > { %v8259_v57 = vpop.f32.mrb[1].mxu0  ;;  %v8267_v10 = vpop.f32.mrb[1].mxu1 }
  0xf4   : > { %v871_v58 = vpop.f32.mrb[2].mxu0  ;;  %v937_v11 = vpop.f32.mrb[2].mxu1 }
  0xf5   : > { %v8260_v59 = vpop.f32.mrb[3].mxu0  ;;  %v8268_v12 = vpop.f32.mrb[3].mxu1 }
  0xfa   : > { %v9721_v60 = vpop.f32.mrb[4].mxu0 }
  0xfb   : > { %v8275_v61 = vpop.f32.mrb[5].mxu0 }
  0xfc   : > { %v1003_v62 = vpop.f32.mrb[6].mxu0  ;;  %v9731_v16 = vpop.f32.mrb[4].mxu1  ;;  %v7627_v61 = vld [vmem:[%s10888_s28] ss:$0 sm:$0xff] }
  0xfd   : > { %v8276_v63 = vpop.f32.mrb[7].mxu0  ;;  %v8283_v18 = vpop.f32.mrb[5].mxu1 }
  0xfe   : > { %v1069_v19 = vpop.f32.mrb[6].mxu1 }
  0xff   : > { %v8284_v20 = vpop.f32.mrb[7].mxu1 }
 0x102   : > { %v9723_v0 = vpop.f32.mrb[8].mxu0 }
 0x103   : > { %v8291_v2 = vpop.f32.mrb[9].mxu0 }
 0x104   : > { %v1135_v3 = vpop.f32.mrb[10].mxu0  ;;  %v9735_v24 = vpop.f32.mrb[8].mxu1 }
 0x105   : > { %v8292_v4 = vpop.f32.mrb[11].mxu0  ;;  %v8299_v26 = vpop.f32.mrb[9].mxu1 }
 0x106   : > { %v1201_v27 = vpop.f32.mrb[10].mxu1 }
 0x107   : > { %v8300_v28 = vpop.f32.mrb[11].mxu1 }
 0x10a   : > { %v9725_v5 = vpop.f32.mrb[12].mxu0 }
 0x10b   : > { %v8307_v6 = vpop.f32.mrb[13].mxu0 }
 0x10c   : > { %v1267_v7 = vpop.f32.mrb[14].mxu0  ;;  %v9739_v33 = vpop.f32.mrb[12].mxu1 }
 0x10d   : > { %v8308_v9 = vpop.f32.mrb[15].mxu0  ;;  %v8315_v35 = vpop.f32.mrb[13].mxu1 }
 0x10e   : > { %v1333_v36 = vpop.f32.mrb[14].mxu1  ;;  %v7645_v9 = vld [vmem:[%s10888_s28 + $0x2] ss:$0 sm:$0xff]  ;;  %v9033_v35 = vld [vmem:[%s10886_s5 + $0x10] sm:$0xff]  }
 0x10f   : > { %v8316_v37 = vpop.f32.mrb[15].mxu1 }
 0x112   : > { %v9729_v13 = vpop.f32.mrb[16].mxu0 }
 0x113   : > { %v8323_v14 = vpop.f32.mrb[17].mxu0 }
 0x114   : > { %v1397_v15 = vpop.f32.mrb[18].mxu0  ;;  %v9770_v19 = vpop.f32.mrb[16].mxu1 }
 0x115   : > { %v8324_v17 = vpop.f32.mrb[19].mxu0  ;;  %v8331_v20 = vpop.f32.mrb[17].mxu1 }
 0x11a   : > { %v9733_v21 = vpop.f32.mrb[20].mxu0 }
 0x11b   : > { %v8339_v22 = vpop.f32.mrb[21].mxu0 }
 0x11c   : > { %v1529_v23 = vpop.f32.mrb[22].mxu0  ;;  %v1463_v22 = vpop.f32.mrb[18].mxu1 }
 0x11d   : > { %v8340_v25 = vpop.f32.mrb[23].mxu0  ;;  %v7658_v23 = vld [vmem:[%s10889_s26] ss:$0 sm:$0xff]  ;;  %v8332_v26 = vpop.f32.mrb[19].mxu1 }
 0x11e   : > { %v9778_v37 = vpop.f32.mrb[20].mxu1 }
 0x122   : > { %v9737_v29 = vpop.f32.mrb[24].mxu0 }
 0x123   : > { %v8355_v30 = vpop.f32.mrb[25].mxu0 }
 0x124   : > { %v1661_v31 = vpop.f32.mrb[26].mxu0 }
 0x125   : > { %v8356_v34 = vpop.f32.mrb[27].mxu0 }
 0x12a   : > { %v9741_v38 = vpop.f32.mrb[28].mxu0 }
 0x12b   : > { %v8371_v39 = vpop.f32.mrb[29].mxu0 }
 0x12c   : > { %v1793_v40 = vpop.f32.mrb[30].mxu0  ;;  %v8347_v39 = vpop.f32.mrb[21].mxu1 }
 0x12d   : > { %v8372_v41 = vpop.f32.mrb[31].mxu0  ;;  %v1595_v40 = vpop.f32.mrb[22].mxu1 }
 0x12e   : > { %v8348_v41 = vpop.f32.mrb[23].mxu1 }
 0x132   : > { %v1924_v43 = vpop.f32.mrb[32].mxu0 }
 0x133   : > { %v8387_v44 = vpop.f32.mrb[33].mxu0  ;;  %v1925_v46 = vadd.f32 %v7596_v42, %v1924_v43  ;;  %v9787_v43 = vpop.f32.mrb[24].mxu1 }
 0x134   : > { %v1927_v45 = vpop.f32.mrb[34].mxu0  ;;  %v8363_v44 = vpop.f32.mrb[25].mxu1 }
 0x135   : > { %v1928_v47 = vadd.f32 %v7596_v42, %v1927_v45  ;;  %v8388_v48 = vpop.f32.mrb[35].mxu0  ;;  %v9034_v42 = vld [vmem:[%s10886_s5 + $0x18] sm:$0xff]   ;;  %v1727_v45 = vpop.f32.mrb[26].mxu1 }
 0x137   : > { %v1931_v49 = vpack.c.bf16 %v1928_v47, %v1925_v46  ;;  %v8364_v46 = vpop.f32.mrb[27].mxu1 }
 0x138   : > { %v9794_v47 = vpop.f32.mrb[28].mxu1 }
 0x139   : > { %v2469_v50 = vsel %vm2464_vm2, %v1931_v49, 0  ;;  %v8379_v48 = vpop.f32.mrb[29].mxu1 }
 0x13a   : > { %v2058_v52 = vpop.f32.mrb[36].mxu0  ;;  %8454 = vmatpush3.bf16.xpose.msra.mxu1 %v2469_v50  ;;  %v1859_v49 = vpop.f32.mrb[30].mxu1 }
 0x13b   : > { %v8403_v53 = vpop.f32.mrb[37].mxu0  ;;  %8465 = vmatprep.subr.bf16.mxu1 %v9253_v1  ;;  %v9751_v55 = vadd.f32 %v7614_v51, %v2058_v52  ;;  %v8380_v50 = vpop.f32.mrb[31].mxu1 }
 0x13c   : > { %v2061_v54 = vpop.f32.mrb[38].mxu0  ;;  %v1991_v52 = vpop.f32.mrb[32].mxu1 }
 0x13d   : > { %v9753_v57 = vadd.f32 %v7614_v51, %v2061_v54  ;;  %v8404_v58 = vpop.f32.mrb[39].mxu0  ;;  %v7605_v51 = vld [vmem:[%s10887_s30 + $0x1] ss:$0 sm:$0xff]  ;;  %v8395_v54 = vpop.f32.mrb[33].mxu1 }
 0x13e   : > { %v9799_v53 = vadd.f32 %v7605_v51, %v1991_v52  ;;  %v1994_v58 = vpop.f32.mrb[34].mxu1 }
 0x13f   : > { %v2065_v59 = vpack.c.bf16 %v9753_v57, %v9751_v55  ;;  %v9036_v55 = vld [vmem:[%s10886_s5 + $0x28] sm:$0xff]  }
 0x142   : > { %v2190_v62 = vpop.f32.mrb[40].mxu0 }
 0x143   : > { %v8419_v63 = vpop.f32.mrb[41].mxu0  ;;  %v2191_v3 = vadd.f32 %v7627_v61, %v2190_v62  ;;  %v8396_v62 = vpop.f32.mrb[35].mxu1 }
 0x144   : > { %v2193_v2 = vpop.f32.mrb[42].mxu0 }
 0x145   : > { %v2194_v4 = vadd.f32 %v7627_v61, %v2193_v2  ;;  %v8420_v6 = vpop.f32.mrb[43].mxu0  ;;  %v9801_v61 = vadd.f32 %v7605_v51, %v1994_v58  ;;  %v7623_v2 = vld [vmem:[%s10887_s30 + $0x3] ss:$0 sm:$0xff] }
 0x147   : > { %v2197_v7 = vpack.c.bf16 %v2194_v4, %v2191_v3  ;;  %v1998_v63 = vpack.c.bf16 %v9801_v61, %v9799_v53  ;;  %v2125_v3 = vpop.f32.mrb[36].mxu1 }
 0x148   : > { %v9808_v4 = vadd.f32 %v7623_v2, %v2125_v3  ;;  %v8411_v6 = vpop.f32.mrb[37].mxu1 }
 0x149   : > { %8460 = vmatpush3.bf16.msra.mxu0 %v2197_v7  ;;  %v2128_v7 = vpop.f32.mrb[38].mxu1 }
 0x14a   : > { %v2324_v10 = vpop.f32.mrb[44].mxu0  ;;  %8473 = vmatprep.subr.bf16.mxu0 %v9253_v1 }
 0x14b   : > { %v8435_v11 = vpop.f32.mrb[45].mxu0  ;;  %v9764_v14 = vadd.f32 %v7645_v9, %v2324_v10  ;;  %v8412_v10 = vpop.f32.mrb[39].mxu1 }
 0x14c   : > { %v2327_v12 = vpop.f32.mrb[46].mxu0  ;;  %v7669_v10 = vld [vmem:[%s10889_s26 + $0x1] ss:$0 sm:$0xff] }
 0x14d   : > { %v9766_v15 = vadd.f32 %v7645_v9, %v2327_v12  ;;  %v8436_v17 = vpop.f32.mrb[47].mxu0  ;;  %v9810_v9 = vadd.f32 %v7623_v2, %v2128_v7  ;;  %v7636_v12 = vld [vmem:[%s10888_s28 + $0x1] ss:$0 sm:$0xff] }
 0x14e   : > { %v2257_v17 = vpop.f32.mrb[40].mxu1 }
 0x14f   : > { %v2331_v18 = vpack.c.bf16 %v9766_v15, %v9764_v14  ;;  %v2132_v11 = vpack.c.bf16 %v9810_v9, %v9808_v4  ;;  %v2258_v20 = vadd.f32 %v7636_v12, %v2257_v17  ;;  %v8427_v22 = vpop.f32.mrb[41].mxu1 }
 0x152   : > { %v2456_v25 = vpop.f32.mrb[48].mxu0 }
 0x153   : > { %v8451_v27 = vpop.f32.mrb[49].mxu0  ;;  %v2457_v30 = vadd.f32 %v7658_v23, %v2456_v25 }
 0x154   : > { %v2459_v28 = vpop.f32.mrb[50].mxu0 }
 0x155   : > { %v2460_v31 = vadd.f32 %v7658_v23, %v2459_v28  ;;  %v8452_v34 = vpop.f32.mrb[51].mxu0  ;;  %v2260_v23 = vpop.f32.mrb[42].mxu1  ;;  %v7654_v28 = vld [vmem:[%s10888_s28 + $0x3] ss:$0 sm:$0xff] }
 0x156   : > { %v2261_v25 = vadd.f32 %v7636_v12, %v2260_v23  ;;  %v8428_v26 = vpop.f32.mrb[43].mxu1 }
 0x157   : > { %v2463_v36 = vpack.c.bf16 %v2460_v31, %v2457_v30  ;;  %v2391_v30 = vpop.f32.mrb[44].mxu1 }
 0x158   : > { %v2264_v27 = vpack.c.bf16 %v2261_v25, %v2258_v20  ;;  %v9821_v31 = vadd.f32 %v7654_v28, %v2391_v30  ;;  %v8443_v34 = vpop.f32.mrb[45].mxu1 }
 0x159   : > { %8456 = vmatmul.mubr.msk.bf16.vlgmr.msra.gmra.mrb[48].mxu1 %vm2464_vm2, %v2463_v36 }
 0x15a   : > { %8466 = vmatpush3.bf16.msra.mxu1 %v9033_v35  ;;  %8469 = vmatprep.mubr.msk.bf16.mxu1 %vm9254_vm0, %v9253_v1  ;;  %v2394_v35 = vpop.f32.mrb[46].mxu1 }
 0x15b   : > { %8467 = vmatprep.subr.bf16.mxu1 %v9253_v1  ;;  %v9823_v36 = vadd.f32 %v7654_v28, %v2394_v35  ;;  %v8444_v39 = vpop.f32.mrb[47].mxu1 }
 0x15d   : > { %v2398_v40 = vpack.c.bf16 %v9823_v36, %v9821_v31  ;;  %v7696_v31 = vld [vmem:[%s10889_s26 + $0x3] ss:$0 sm:$0xff] }
 0x15e   : > { %8468 = vmatpush3.bf16.msra.mxu1 %v9034_v42 }
 0x15f   : > { %8479 = vmatprep.subr.bf16.mxu1 %v9253_v1 }
 0x161   : > { %8470 = vmatmul.mubr.msk.bf16.vlgmr.msra.gmra.mrb[52].mxu1 %vm830_vm1, %v9571_v32 }
 0x162   : > { %8481 = vmatprep.mubr.msk.bf16.mxu1 %vm9254_vm0, %v9253_v1  ;;  %8480 = vmatpush3.bf16.msra.mxu1 %v2264_v27 }
 0x163   : > { %8491 = vmatprep.subr.bf16.mxu1 %v9253_v1 }
 0x22c   : > { %v2505_v41 = vpop.f32.mrb[48].mxu1 }
 0x22d   : > { %v8457_v42 = vpop.f32.mrb[49].mxu1  ;;  %v2513_v44 = vsel %vm2512_vm3, %v2505_v41, -inf }
 0x22e   : > { %2514 = vmax.xlane.f32.xlu0 %v2513_v44  ;;  %v2508_v45 = vpop.f32.mrb[50].mxu1 }
 0x22f   : > { %v8458_v46 = vpop.f32.mrb[51].mxu1  ;;  %v2516_v48 = vsel %vm2512_vm3, %v2508_v45, -inf }
 0x232   : > { %2517 = vmax.xlane.f32.xlu0 %v2516_v48 }
 0x234   : > { %v2641_v7 = vpop.f32.mrb[52].mxu1 }
 0x235   : > { %v8471_v12 = vpop.f32.mrb[53].mxu1  ;;  %v2642_v17 = vadd.f32 %v7669_v10, %v2641_v7 }
 0x236   : > { %v2644_v20 = vpop.f32.mrb[54].mxu1 }
 0x237   : > { %v2645_v22 = vadd.f32 %v7669_v10, %v2644_v20  ;;  %v8472_v23 = vpop.f32.mrb[55].mxu1 }
 0x239   : > { %v2648_v25 = vpack.c.bf16 %v2645_v22, %v2642_v17  ;;  %v7675_v17 = vld [vmem:[%s10890_s0 + $0x4] sm:$0xf] }
 0x23a   : > { %v2771_v20 = vsel %vm2769_vm4, %v7675_v17, 0 }
 0x2bb   : > { %v2515_v49 = vpop.xlane.xlu0 %2514 }
 0x2bc   : > { %v2519_v50 = vsub.f32 %v2505_v41, %v2515_v49  ;;  %v2653_v41 = vsel %vm2464_vm2, %v1998_v63, 0 }
 0x2be   : > { %v2521_v51 = vmul.f32 1.442695, %v2519_v50 }
 0x2bf   : > { %v2518_v52 = vpop.xlane.xlu0 %2517 }
 0x2c0   : > { %9091 = vpow2.f32 %v2521_v51  ;;  %v2520_v54 = vsub.f32 %v2508_v45, %v2518_v52 }
 0x2c2   : > { %v2523_v58 = vmul.f32 1.442695, %v2520_v54 }
 0x2c4   : > { %9093 = vpow2.f32 %v2523_v58 }
 0x2ca   : > { %v9092_v62 = vpop.eup %9091 }
 0x2cb   : > { %v2525_v2 = vsel %vm2512_vm3, %v9092_v62, 0.0 }
 0x2cc   : > { %2526 = vadd.xlane.f32.xlu1 %v2525_v2 }
 0x2ce   : > { %v9094_v3 = vpop.eup %9093 }
 0x2cf   : > { %v2528_v6 = vsel %vm2512_vm3, %v9094_v3, 0.0 }
 0x2d0   : > { %2529 = vadd.xlane.f32.xlu1 %v2528_v6 }
 0x359   : > { %v2527_v26 = vpop.xlane.xlu1 %2526 }
 0x35a   : > { %9095 = vrcp.f32 %v2527_v26 }
 0x35d   : > { %v2530_v27 = vpop.xlane.xlu1 %2529 }
 0x35e   : > { %9097 = vrcp.f32 %v2530_v27  ;;  %v2581_v27 = vld [vmem:[%s10890_s0] sm:$0xf] }
 0x364   : > { %v9096_v28 = vpop.eup %9095 }
 0x365   : > { %v2533_v34 = vmul.f32 %v9096_v28, %v9092_v62 }
 0x368   : > { %v9098_v30 = vpop.eup %9097 }
 0x369   : > { %v2534_v35 = vmul.f32 %v9098_v30, %v9094_v3 }
 0x36b   : > { %v2535_v39 = vpack.c.bf16 %v2534_v35, %v2533_v34  ;;  %v2818_v35 = vsel %vm2769_vm4, %v2581_v27, 0 }
 0x36d   : > { %8462 = vmatmul.mubr.msk.bf16.vlgmr.msra.gmra.mrb[52].mxu0 %vm2512_vm3, %v2535_v39  ;;  %v2932_v39 = vsel %vm2464_vm2, %v2065_v59, 0 }
 0x36e   : > { %8474 = vmatpush3.bf16.xpose.msra.mxu0 %v2653_v41  ;;  %8475 = vmatprep.mubr.msk.bf16.mxu0 %vm9254_vm0, %v9253_v1 }
 0x36f   : > { %8485 = vmatprep.subr.bf16.mxu0 %v9253_v1 }
 0x375   : > { %8476 = vmatmul.mubr.msk.bf16.vlgmr.msra.gmra.mrb[56].mxu0 %vm2464_vm2, %v2648_v25 }
 0x376   : > { %8487 = vmatprep.mubr.msk.bf16.mxu0 %vm9254_vm0, %v9253_v1  ;;  %8486 = vmatpush3.bf16.msra.mxu0 %v2771_v20 }
 0x377   : > { %8497 = vmatprep.subr.bf16.mxu0 %v9253_v1 }
 0x440   : > { %v2573_v42 = vpop.f32.mrb[52].mxu0 }
 0x441   : > { %v8463_v44 = vpop.f32.mrb[53].mxu0 }
 0x442   : > { %v2576_v45 = vpop.f32.mrb[54].mxu0 }
 0x443   : > { %v2580_v46 = vpack.c.bf16 %v2576_v45, %v2573_v42  ;;  %v8464_v48 = vpop.f32.mrb[55].mxu0  ;;  %v9035_v45 = vld [vmem:[%s10886_s5 + $0x20] sm:$0xff]  }
 0x448   : > { %v2689_v49 = vpop.f32.mrb[56].mxu0 }
 0x449   : > { %v8477_v53 = vpop.f32.mrb[57].mxu0  ;;  %v2696_v61 = vsel %vm2512_vm3, %v2689_v49, -inf }
 0x44a   : > { %2697 = vmax.xlane.f32.xlu0 %v2696_v61  ;;  %v2692_v63 = vpop.f32.mrb[58].mxu0 }
 0x44b   : > { %v8478_v50 = vpop.f32.mrb[59].mxu0  ;;  %v2699_v51 = vsel %vm2512_vm3, %v2692_v63, -inf }
 0x44c   : > { %2700 = vmax.xlane.f32.xlu1 %v2699_v51 }
 0x4d7   : > { %v2698_v52 = vpop.xlane.xlu0 %2697 }
 0x4d8   : > { %v2702_v54 = vsub.f32 %v2689_v49, %v2698_v52 }
 0x4d9   : > { %v2701_v58 = vpop.xlane.xlu1 %2700 }
 0x4da   : > { %v2704_v62 = vmul.f32 1.442695, %v2702_v54  ;;  %v2703_v2 = vsub.f32 %v2692_v63, %v2701_v58  ;;  %v7683_v58 = vld [vmem:[%s10889_s26 + $0x2] ss:$0 sm:$0xff] }
 0x4dc   : > { %9099 = vpow2.f32 %v2704_v62  ;;  %v2706_v3 = vmul.f32 1.442695, %v2703_v2 }
 0x4de   : > { %9101 = vpow2.f32 %v2706_v3 }
 0x4e6   : > { %v9100_v6 = vpop.eup %9099 }
 0x4e7   : > { %v2708_v7 = vsel %vm2512_vm3, %v9100_v6, 0.0 }
 0x4e8   : > { %v9102_v10 = vpop.eup %9101  ;;  %2709 = vadd.xlane.f32.xlu0 %v2708_v7 }
 0x4e9   : > { %v2711_v12 = vsel %vm2512_vm3, %v9102_v10, 0.0 }
 0x4ea   : > { %2712 = vadd.xlane.f32.xlu1 %v2711_v12 }
 0x575   : > { %v2710_v22 = vpop.xlane.xlu0 %2709 }
 0x576   : > { %9103 = vrcp.f32 %v2710_v22 }
 0x577   : > { %v2713_v23 = vpop.xlane.xlu1 %2712 }
 0x578   : > { %9105 = vrcp.f32 %v2713_v23 }
 0x580   : > { %v9104_v25 = vpop.eup %9103 }
 0x581   : > { %v2716_v28 = vmul.f32 %v9104_v25, %v9100_v6 }
 0x582   : > { %v9106_v26 = vpop.eup %9105 }
 0x583   : > { %v2717_v30 = vmul.f32 %v9106_v26, %v9102_v10 }
 0x585   : > { %v2718_v34 = vpack.c.bf16 %v2717_v30, %v2716_v28 }
 0x587   : > { %8482 = vmatmul.mubr.msk.bf16.vlgmr.msra.gmra.mrb[56].mxu1 %vm2512_vm3, %v2718_v34 }
 0x588   : > { %8492 = vmatpush3.bf16.msra.mxu1 %v2818_v35  ;;  %8493 = vmatprep.mubr.msk.bf16.mxu1 %vm9254_vm0, %v9253_v1 }
 0x589   : > { %8505 = vmatprep.subr.bf16.mxu1 %v9253_v1 }
 0x58f   : > { %8494 = vmatmul.mubr.msk.bf16.vlgmr.msra.gmra.mrb[60].mxu1 %vm2464_vm2, %v2580_v46 }
 0x590   : > { %8507 = vmatprep.mubr.msk.bf16.mxu1 %vm9254_vm0, %v9253_v1 }
 0x591   : > { %8506 = vmatpush3.bf16.xpose.msra.mxu1 %v2932_v39 }
 0x592   : > { %8517 = vmatprep.subr.bf16.mxu1 %v9253_v1 }
 0x65a   : > { %v2756_v41 = vpop.f32.mrb[56].mxu1 }
 0x65b   : > { %v8483_v42 = vpop.f32.mrb[57].mxu1 }
 0x65c   : > { %v2759_v44 = vpop.f32.mrb[58].mxu1  ;;  %v7689_v42 = vld [vmem:[%s10890_s0 + $0x8] sm:$0xf] }
 0x65d   : > { %v2763_v48 = vpack.c.bf16 %v2759_v44, %v2756_v41  ;;  %v8484_v46 = vpop.f32.mrb[59].mxu1  ;;  %v3049_v44 = vsel %vm2769_vm4, %v7689_v42, 0  ;;  %v7702_v42 = vld [vmem:[%s10890_s0 + $0xc] sm:$0xf] }
 0x65f   : > { %8488 = vmatmul.mubr.msk.bf16.vlgmr.msra.gmra.mrb[60].mxu0 %vm2464_vm2, %v2763_v48 }
 0x660   : > { %8498 = vmatpush3.bf16.msra.mxu0 %v9035_v45  ;;  %8501 = vmatprep.mubr.msk.bf16.mxu0 %vm9254_vm0, %v9253_v1 }
 0x661   : > { %8499 = vmatprep.subr.bf16.mxu0 %v9253_v1 }
 0x662   : > { %v2854_v57 = vpop.f32.mrb[60].mxu1 }
 0x663   : > { %v8495_v59 = vpop.f32.mrb[61].mxu1 }
 0x664   : > { %8500 = vmatpush3.bf16.msra.mxu0 %v9036_v55  ;;  %v2857_v49 = vpop.f32.mrb[62].mxu1 }
 0x665   : > { %v8496_v53 = vpop.f32.mrb[63].mxu1  ;;  %8511 = vmatprep.subr.bf16.mxu0 %v9253_v1 }
 0x667   : > { %8502 = vmatmul.mubr.msk.bf16.vlgmr.msra.gmra.mrb[64].mxu0 %vm830_vm1, %v9571_v32 }
 0x668   : > { %8512 = vmatpush3.bf16.msra.mxu0 %v2331_v18  ;;  %8513 = vmatprep.mubr.msk.bf16.mxu0 %vm9254_vm0, %v9253_v1 }
 0x669   : > { %8523 = vmatprep.subr.bf16.mxu0 %v9253_v1 }
 0x732   : > { %v2807_v61 = vpop.f32.mrb[60].mxu0 }
 0x733   : > { %v9889_v63 = vadd.f32 %v2854_v57, %v2807_v61  ;;  %v8489_v50 = vpop.f32.mrb[61].mxu0  ;;  %v9038_v61 = vld [vmem:[%s10886_s5 + $0x38] sm:$0xff]  }
 0x734   : > { %v2810_v51 = vpop.f32.mrb[62].mxu0 }
 0x735   : > { %v9891_v52 = vadd.f32 %v2857_v49, %v2810_v51  ;;  %v8490_v54 = vpop.f32.mrb[63].mxu0  ;;  %v9037_v49 = vld [vmem:[%s10886_s5 + $0x30] sm:$0xff]  }
 0x73a   : > { %v2920_v62 = vpop.f32.mrb[64].mxu0 }
 0x73b   : > { %v8503_v14 = vpop.f32.mrb[65].mxu0  ;;  %v2921_v18 = vadd.f32 %v7683_v58, %v2920_v62 }
 0x73c   : > { %v2923_v15 = vpop.f32.mrb[66].mxu0 }
 0x73d   : > { %v2924_v2 = vadd.f32 %v7683_v58, %v2923_v15  ;;  %v8504_v3 = vpop.f32.mrb[67].mxu0 }
 0x73f   : > { %v2927_v6 = vpack.c.bf16 %v2924_v2, %v2921_v18 }
 0x741   : > { %8508 = vmatmul.mubr.msk.bf16.vlgmr.msra.gmra.mrb[64].mxu1 %vm2464_vm2, %v2927_v6 }
 0x742   : > { %8519 = vmatprep.mubr.msk.bf16.mxu1 %vm9254_vm0, %v9253_v1  ;;  %8518 = vmatpush3.bf16.msra.mxu1 %v3049_v44  ;;  %v3282_v44 = vsel %vm2769_vm4, %v7702_v42, 0 }
 0x743   : > { %8531 = vmatprep.subr.bf16.mxu1 %v9253_v1 }
 0x814   : > { %v2968_v7 = vpop.f32.mrb[64].mxu1 }
 0x815   : > { %v8509_v10 = vpop.f32.mrb[65].mxu1  ;;  %v2975_v12 = vsel %vm2512_vm3, %v2968_v7, -inf }
 0x816   : > { %2976 = vmax.xlane.f32.xlu0 %v2975_v12  ;;  %v2971_v17 = vpop.f32.mrb[66].mxu1 }
 0x817   : > { %v8510_v20 = vpop.f32.mrb[67].mxu1  ;;  %v2978_v22 = vsel %vm2512_vm3, %v2971_v17, -inf }
 0x818   : > { %2979 = vmax.xlane.f32.xlu1 %v2978_v22 }
 0x8a3   : > { %v2977_v23 = vpop.xlane.xlu0 %2976 }
 0x8a4   : > { %v2981_v25 = vsub.f32 %v2968_v7, %v2977_v23 }
 0x8a5   : > { %v2980_v26 = vpop.xlane.xlu1 %2979 }
 0x8a6   : > { %v2983_v27 = vmul.f32 1.442695, %v2981_v25  ;;  %v2982_v28 = vsub.f32 %v2971_v17, %v2980_v26 }
 0x8a8   : > { %9107 = vpow2.f32 %v2983_v27  ;;  %v2985_v30 = vmul.f32 1.442695, %v2982_v28 }
 0x8aa   : > { %9109 = vpow2.f32 %v2985_v30 }
 0x8b2   : > { %v9108_v34 = vpop.eup %9107 }
 0x8b3   : > { %v2987_v35 = vsel %vm2512_vm3, %v9108_v34, 0.0 }
 0x8b4   : > { %v9110_v39 = vpop.eup %9109  ;;  %2988 = vadd.xlane.f32.xlu0 %v2987_v35 }
 0x8b5   : > { %v2990_v41 = vsel %vm2512_vm3, %v9110_v39, 0.0 }
 0x8b6   : > { %2991 = vadd.xlane.f32.xlu1 %v2990_v41 }
 0x941   : > { %v2989_v45 = vpop.xlane.xlu0 %2988 }
 0x942   : > { %9111 = vrcp.f32 %v2989_v45 }
 0x943   : > { %v2992_v48 = vpop.xlane.xlu1 %2991 }
 0x944   : > { %9113 = vrcp.f32 %v2992_v48 }
 0x94c   : > { %v9112_v46 = vpop.eup %9111 }
 0x94d   : > { %v2995_v57 = vmul.f32 %v9112_v46, %v9108_v34 }
 0x94e   : > { %v9114_v55 = vpop.eup %9113 }
 0x94f   : > { %v2996_v59 = vmul.f32 %v9114_v55, %v9110_v39 }
 0x951   : > { %v2997_v53 = vpack.c.bf16 %v2996_v59, %v2995_v57 }
 0x953   : > { %8514 = vmatmul.mubr.msk.bf16.vlgmr.msra.gmra.mrb[68].mxu0 %vm2512_vm3, %v2997_v53  ;;  %v7462_v53 = vld [vmem:[%s10849_s15] ss:$0 sm:$0xff] }
 0x954   : > { %8524 = vmatpush3.bf16.msra.mxu0 %v9037_v49  ;;  %8527 = vmatprep.mubr.msk.bf16.mxu0 %vm9254_vm0, %v9253_v1 }
 0x955   : > { %8525 = vmatprep.subr.bf16.mxu0 %v9253_v1 }
 0x958   : > { %8526 = vmatpush3.bf16.msra.mxu0 %v9038_v61  ;;  %v869_v61 = vadd.f32 %v7462_v53, %v9719_v56  ;;  %v7704_v56 = vld [vmem:[%s10844_s10] ss:$0 sm:$0xff] }
 0x959   : > { %8537 = vmatprep.subr.bf16.mxu0 %v9253_v1 }
 0x95b   : > { %8528 = vmatmul.mubr.msk.bf16.vlgmr.msra.gmra.mrb[72].mxu0 %vm830_vm1, %v9571_v32  ;;  %v3165_v32 = vsel %vm2464_vm2, %v2132_v11, 0 }
 0x95c   : > { %8538 = vmatpush3.bf16.msra.mxu0 %v2398_v40  ;;  %8539 = vmatprep.mubr.msk.bf16.mxu0 %vm9254_vm0, %v9253_v1 }
 0x95d   : > { %8549 = vmatprep.subr.bf16.mxu0 %v9253_v1 }
 0xa26   : > { %v3035_v50 = vpop.f32.mrb[68].mxu0 }
 0xa27   : > { %v8515_v51 = vpop.f32.mrb[69].mxu0 }
 0xa28   : > { %v3038_v54 = vpop.f32.mrb[70].mxu0  ;;  %v874_v51 = vpack.c.bf16 %v869_v61, %v869_v61 }
 0xa29   : > { %v3042_v58 = vpack.c.bf16 %v3038_v54, %v3035_v50  ;;  %v8516_v62 = vpop.f32.mrb[71].mxu0 }
 0xa2b   : > { %8520 = vmatmul.mubr.msk.bf16.vlgmr.msra.gmra.mrb[68].mxu1 %vm2464_vm2, %v3042_v58 }
 0xa2c   : > { %8532 = vmatpush3.bf16.xpose.msra.mxu1 %v3165_v32  ;;  %8533 = vmatprep.mubr.msk.bf16.mxu1 %vm9254_vm0, %v9253_v1 }
 0xa2d   : > { %8543 = vmatprep.subr.bf16.mxu1 %v9253_v1 }
 0xa2e   : > { %v3153_v36 = vpop.f32.mrb[72].mxu0 }
 0xa2f   : > { %v8529_v40 = vpop.f32.mrb[73].mxu0  ;;  %v3154_v15 = vadd.f32 %v7696_v31, %v3153_v36 }
 0xa30   : > { %v3156_v14 = vpop.f32.mrb[74].mxu0 }
 0xa31   : > { %v3157_v18 = vadd.f32 %v7696_v31, %v3156_v14  ;;  %v8530_v2 = vpop.f32.mrb[75].mxu0  ;;  %v3456_v31 = vsel %vm2464_vm2, %v874_v51, 0 }
 0xa33   : > { %v3160_v3 = vpack.c.bf16 %v3157_v18, %v3154_v15 }
 0xa35   : > { %8534 = vmatmul.mubr.msk.bf16.vlgmr.msra.gmra.mrb[72].mxu1 %vm2464_vm2, %v3160_v3 }
 0xa36   : > { %8545 = vmatprep.mubr.msk.bf16.mxu1 %vm9254_vm0, %v9253_v1  ;;  %8544 = vmatpush3.bf16.msra.mxu1 %v3282_v44 }
 0xa37   : > { %8557 = vmatprep.subr.bf16.mxu1 %v9253_v1 }
 0xafe   : > { %v3085_v4 = vpop.f32.mrb[68].mxu1 }
 0xaff   : > { %v3092_v9 = vadd.f32 %v3085_v4, %v9889_v63  ;;  %v8521_v11 = vpop.f32.mrb[69].mxu1 }
 0xb00   : > { %v3088_v6 = vpop.f32.mrb[70].mxu1  ;;  %v9243_v11 = vld [vmem:[%s9555_s9] sm:$0xff] }
 0xb01   : > { %v3093_v7 = vadd.f32 %v3088_v6, %v9891_v52  ;;  %v8522_v10 = vpop.f32.mrb[71].mxu1 }
 0xb08   : > { %v3201_v12 = vpop.f32.mrb[72].mxu1 }
 0xb09   : > { %v8535_v17 = vpop.f32.mrb[73].mxu1  ;;  %v3208_v20 = vsel %vm2512_vm3, %v3201_v12, -inf }
 0xb0a   : > { %3209 = vmax.xlane.f32.xlu0 %v3208_v20  ;;  %v3204_v22 = vpop.f32.mrb[74].mxu1 }
 0xb0b   : > { %v8536_v23 = vpop.f32.mrb[75].mxu1  ;;  %v3211_v25 = vsel %vm2512_vm3, %v3204_v22, -inf }
 0xb0c   : > { %3212 = vmax.xlane.f32.xlu1 %v3211_v25 }
 0xb97   : > { %v3210_v26 = vpop.xlane.xlu0 %3209 }
 0xb98   : > { %v3214_v27 = vsub.f32 %v3201_v12, %v3210_v26  ;;  %v9244_v12 = vld [vmem:[%s9555_s9 + $0x8] sm:$0xff]  ;;  %s7992_s9 = sshll.u32 %s10894_s2, 5 }
 0xb99   : > { %v3213_v28 = vpop.xlane.xlu1 %3212  ;;  %s796_s1 = scalar_lea.vmem %s10891_s6, %s7992_s9 }
 0xb9a   : > { %v3216_v30 = vmul.f32 1.442695, %v3214_v27  ;;  %v3215_v63 = vsub.f32 %v3204_v22, %v3213_v28 }
 0xb9c   : > { %9115 = vpow2.f32 %v3216_v30  ;;  %v3218_v34 = vmul.f32 1.442695, %v3215_v63 }
 0xb9e   : > { %9117 = vpow2.f32 %v3218_v34  ;;  %v9039_v34 = vld [vmem:[%s10845_s11] sm:$0xff]  }
 0xba6   : > { %v9116_v52 = vpop.eup %9115 }
 0xba7   : > { %v3220_v35 = vsel %vm2512_vm3, %v9116_v52, 0.0 }
 0xba8   : > { %v9118_v39 = vpop.eup %9117  ;;  %3221 = vadd.xlane.f32.xlu0 %v3220_v35 }
 0xba9   : > { %v3223_v41 = vsel %vm2512_vm3, %v9118_v39, 0.0 }
 0xbaa   : > { %3224 = vadd.xlane.f32.xlu1 %v3223_v41 }
 0xc35   : > { %v3222_v45 = vpop.xlane.xlu0 %3221 }
 0xc36   : > { %9119 = vrcp.f32 %v3222_v45 }
 0xc37   : > { %v3225_v48 = vpop.xlane.xlu1 %3224 }
 0xc38   : > { %9121 = vrcp.f32 %v3225_v48 }
 0xc40   : > { %v9120_v46 = vpop.eup %9119 }
 0xc41   : > { %v3228_v57 = vmul.f32 %v9120_v46, %v9116_v52  ;;  %v9040_v52 = vld [vmem:[%s10845_s11 + $0x8] sm:$0xff]   ;;  %v7529_v46 = vld [vmem:[%s10850_s16] ss:$0 sm:$0xff] }
 0xc42   : > { %v9122_v55 = vpop.eup %9121 }
 0xc43   : > { %v3229_v59 = vmul.f32 %v9122_v55, %v9118_v39  ;;  %v7705_v55 = vld [vmem:[%s10857_s23] ss:$0 sm:$0xff] }
 0xc45   : > { %v3230_v49 = vpack.c.bf16 %v3229_v59, %v3228_v57 }
 0xc47   : > { %8540 = vmatmul.mubr.msk.bf16.vlgmr.msra.gmra.mrb[76].mxu0 %vm2512_vm3, %v3230_v49  ;;  %v1395_v49 = vadd.f32 %v7529_v46, %v9729_v13  ;;  %v7707_v13 = vld [vmem:[%s10848_s14] ss:$0 sm:$0xff] }
 0xc48   : > { %8553 = vmatprep.mubr.msk.bf16.mxu0 %vm9254_vm0, %v9253_v1  ;;  %8550 = vmatpush3.bf16.msra.mxu0 %v9039_v34 }
 0xc49   : > { %8551 = vmatprep.subr.bf16.mxu0 %v9253_v1 }
 0xc4c   : > { %8552 = vmatpush3.bf16.msra.mxu0 %v9040_v52 }
 0xc4d   : > { %8563 = vmatprep.subr.bf16.mxu0 %v9253_v1 }
 0xd1a   : > { %v3268_v50 = vpop.f32.mrb[76].mxu0 }
 0xd1b   : > { %v8541_v54 = vpop.f32.mrb[77].mxu0 }
 0xd1c   : > { %v3271_v58 = vpop.f32.mrb[78].mxu0  ;;  %v1400_v54 = vpack.c.bf16 %v1395_v49, %v1395_v49  ;;  %v7471_v49 = vld [vmem:[%s10849_s15 + $0x1] ss:$0 sm:$0xff] }
 0xd1d   : > { %v3275_v62 = vpack.c.bf16 %v3271_v58, %v3268_v50  ;;  %v8542_v32 = vpop.f32.mrb[79].mxu0  ;;  %v7706_v50 = vld [vmem:[%s10858_s24] ss:$0 sm:$0xff] }
 0xd1f   : > { %8546 = vmatmul.mubr.msk.bf16.vlgmr.msra.gmra.mrb[76].mxu1 %vm2464_vm2, %v3275_v62 }
 0xd20   : > { %8558 = vmatpush3.bf16.xpose.msra.mxu1 %v3456_v31  ;;  %8559 = vmatprep.mubr.msk.bf16.mxu1 %vm9254_vm0, %v9253_v1  ;;  %v3526_v31 = vsel %vm2769_vm4, %v1400_v54, 0 }
 0xd21   : > { %8569 = vmatprep.subr.bf16.mxu1 %v9253_v1 }
 0xdf2   : > { %v3318_v36 = vpop.f32.mrb[76].mxu1 }
 0xdf3   : > { %v3325_v40 = vadd.f32 %v3318_v36, %v3092_v9  ;;  %v8547_v14 = vpop.f32.mrb[77].mxu1 }
 0xdf4   : > { %v3321_v15 = vpop.f32.mrb[78].mxu1 }
 0xdf5   : > { %v3334_v18 = vadd.f32 %v7704_v56, %v3325_v40  ;;  %v3326_v2 = vadd.f32 %v3321_v15, %v3093_v7  ;;  %v8548_v3 = vpop.f32.mrb[79].mxu1 }
 0xdf6   : > { %v9041_v3 = vld [vmem:[%s10845_s11 + $0x10] sm:$0xff]  }
 0xdf7   : > { %v3335_v4 = vadd.f32 %v7704_v56, %v3326_v2  ;;  %v3336_v6 = vadd.f32 %v9243_v11, %v3334_v18  ;;  %v7538_v2 = vld [vmem:[%s10850_s16 + $0x1] ss:$0 sm:$0xff] }
 0xdf8   : > { %v1461_v11 = vadd.f32 %v7538_v2, %v9770_v19 }
 0xdf9   : > { %v3340_v10 = vsel %vm830_vm1, %v3336_v6, 0.0  ;;  %v3337_v17 = vadd.f32 %v9244_v12, %v3335_v4 }
 0xdfa   : > { %3341 = vadd.xlane.f32.xlu0 %v3340_v10  ;;  %v1466_v10 = vpack.c.bf16 %v1461_v11, %v1461_v11 }
 0xdfb   : > { %v3343_v20 = vsel %vm830_vm1, %v3337_v17, 0.0 }
 0xdfc   : > { %3344 = vadd.xlane.f32.xlu1 %v3343_v20  ;;  %v3712_v12 = vsel %vm2769_vm4, %v1466_v10, 0 }
 0xe87   : > { %v3342_v22 = vpop.xlane.xlu0 %3341 }
 0xe88   : > { %v3347_v23 = vmul.f32 0.03125, %v3342_v22 }
 0xe89   : > { %v3345_v25 = vpop.xlane.xlu1 %3344 }
 0xe8a   : > { %v3349_v9 = vsub.f32 %v3336_v6, %v3347_v23  ;;  %v3348_v26 = vmul.f32 0.03125, %v3345_v25  ;;  %v9042_v6 = vld [vmem:[%s10845_s11 + $0x18] sm:$0xff]  }
 0xe8c   : > { %v3350_v27 = vsub.f32 %v3337_v17, %v3348_v26  ;;  %v3351_v28 = vmul.f32 %v3349_v9, %v3349_v9 }
 0xe8e   : > { %v3353_v7 = vsel %vm830_vm1, %v3351_v28, 0.0  ;;  %v3352_v30 = vmul.f32 %v3350_v27, %v3350_v27 }
 0xe8f   : > { %3354 = vadd.xlane.f32.xlu0 %v3353_v7 }
 0xe90   : > { %v3356_v63 = vsel %vm830_vm1, %v3352_v30, 0.0 }
 0xe91   : > { %3357 = vadd.xlane.f32.xlu1 %v3356_v63 }
 0xf1c   : > { %v3355_v35 = vpop.xlane.xlu0 %3354 }
 0xf1d   : > { %v3359_v39 = vmul.f32 0.03125, %v3355_v35 }
 0xf1e   : > { %v3358_v41 = vpop.xlane.xlu1 %3357 }
 0xf1f   : > { %v3361_v42 = vadd.f32 1e-05, %v3359_v39  ;;  %v3360_v44 = vmul.f32 0.03125, %v3358_v41 }
 0xf21   : > { %9123 = vrsqrt.f32 %v3361_v42  ;;  %v3362_v45 = vadd.f32 1e-05, %v3360_v44 }
 0xf23   : > { %9125 = vrsqrt.f32 %v3362_v45 }
 0xf2b   : > { %v9124_v48 = vpop.eup %9123 }
 0xf2c   : > { %v3365_v57 = vmul.f32 %v9124_v48, %v3349_v9  ;;  %v7718_v9 = vld [vmem:[%s10848_s14 + $0x1] ss:$0 sm:$0xff] }
 0xf2d   : > { %v9126_v59 = vpop.eup %9125 }
 0xf2e   : > { %v3373_v53 = vmul.f32 %v7705_v55, %v3365_v57  ;;  %v3366_v61 = vmul.f32 %v9126_v59, %v3350_v27 }
 0xf30   : > { %v3374_v51 = vmul.f32 %v7705_v55, %v3366_v61  ;;  %v9991_v58 = vadd.f32 %v7706_v50, %v3373_v53  ;;  %v935_v53 = vadd.f32 %v7471_v49, %v9727_v8  ;;  %v9043_v49 = vld [vmem:[%s10845_s11 + $0x20] sm:$0xff]  }
 0xf32   : > { %v9993_v62 = vadd.f32 %v7706_v50, %v3374_v51  ;;  %v940_v51 = vpack.c.bf16 %v935_v53, %v935_v53 }
 0xf34   : > { %v9997_v32 = vpack.c.bf16 %v9993_v62, %v9991_v58 }
 0xf36   : > { %8554 = vmatmul.mubr.msk.bf16.vlgmr.msra.gmra.mrb[80].mxu0 %vm830_vm1, %v9997_v32 }
 0xf37   : > { %8564 = vmatpush3.bf16.msra.mxu0 %v3526_v31  ;;  %8565 = vmatprep.mubr.msk.bf16.mxu0 %vm9254_vm0, %v9253_v1 }
 0xf38   : > { %8577 = vmatprep.subr.bf16.mxu0 %v9253_v1 }
0x1009   : > { %v3444_v36 = vpop.f32.mrb[80].mxu0 }
0x100a   : > { %v8555_v56 = vpop.f32.mrb[81].mxu0  ;;  %v3445_v14 = vadd.f32 %v7707_v13, %v3444_v36  ;;  %v3642_v36 = vsel %vm2464_vm2, %v940_v51, 0  ;;  %v9044_v51 = vld [vmem:[%s10845_s11 + $0x28] sm:$0xff]  }
0x100b   : > { %v3447_v40 = vpop.f32.mrb[82].mxu0 }
0x100c   : > { %v3448_v15 = vadd.f32 %v7707_v13, %v3447_v40  ;;  %v8556_v18 = vpop.f32.mrb[83].mxu0 }
0x100e   : > { %v3451_v4 = vpack.c.bf16 %v3448_v15, %v3445_v14 }
0x1010   : > { %8560 = vmatmul.mubr.msk.bf16.vlgmr.msra.gmra.mrb[80].mxu1 %vm2464_vm2, %v3451_v4 }
0x1011   : > { %8570 = vmatpush3.bf16.msra.mxu1 %v9041_v3  ;;  %8573 = vmatprep.mubr.msk.bf16.mxu1 %vm9254_vm0, %v9253_v1 }
0x1012   : > { %8571 = vmatprep.subr.bf16.mxu1 %v9253_v1 }
0x1015   : > { %8572 = vmatpush3.bf16.msra.mxu1 %v9042_v6 }
0x1016   : > { %8583 = vmatprep.subr.bf16.mxu1 %v9253_v1 }
0x1018   : > { %8574 = vmatmul.mubr.msk.bf16.vlgmr.msra.gmra.mrb[84].mxu1 %vm830_vm1, %v9997_v32 }
0x1019   : > { %8584 = vmatpush3.bf16.msra.mxu1 %v3712_v12  ;;  %8585 = vmatprep.mubr.msk.bf16.mxu1 %vm9254_vm0, %v9253_v1 }
0x101a   : > { %8595 = vmatprep.subr.bf16.mxu1 %v9253_v1 }
0x10e3   : > { %v3492_v19 = vpop.f32.mrb[80].mxu1 }
0x10e4   : > { %v8561_v17 = vpop.f32.mrb[81].mxu1  ;;  %v3499_v20 = vsel %vm2464_vm2, %v3492_v19, -inf }
0x10e5   : > { %3500 = vmax.xlane.f32.xlu0 %v3499_v20  ;;  %v3495_v22 = vpop.f32.mrb[82].mxu1 }
0x10e6   : > { %v8562_v23 = vpop.f32.mrb[83].mxu1  ;;  %v3502_v25 = vsel %vm2464_vm2, %v3495_v22, -inf }
0x10e7   : > { %3503 = vmax.xlane.f32.xlu1 %v3502_v25 }
0x10eb   : > { %v3630_v26 = vpop.f32.mrb[84].mxu1 }
0x10ec   : > { %v8575_v27 = vpop.f32.mrb[85].mxu1  ;;  %v3631_v7 = vadd.f32 %v7718_v9, %v3630_v26 }
0x10ed   : > { %v3633_v28 = vpop.f32.mrb[86].mxu1  ;;  %v7724_v27 = vld [vmem:[%s10851_s17 + $0x4] sm:$0xf] }
0x10ee   : > { %v3634_v30 = vadd.f32 %v7718_v9, %v3633_v28  ;;  %v8576_v63 = vpop.f32.mrb[87].mxu1  ;;  %v3762_v28 = vsel %vm2769_vm4, %v7724_v27, 0 }
0x10f0   : > { %v3637_v34 = vpack.c.bf16 %v3634_v30, %v3631_v7 }
0x1172   : > { %v3501_v52 = vpop.xlane.xlu0 %3500 }
0x1173   : > { %v3505_v35 = vsub.f32 %v3492_v19, %v3501_v52  ;;  %v3570_v52 = vld [vmem:[%s10851_s17] sm:$0xf] }
0x1174   : > { %v3504_v39 = vpop.xlane.xlu1 %3503 }
0x1175   : > { %v3507_v41 = vmul.f32 1.442695, %v3505_v35  ;;  %v3506_v42 = vsub.f32 %v3495_v22, %v3504_v39 }
0x1177   : > { %9127 = vpow2.f32 %v3507_v41  ;;  %v3509_v44 = vmul.f32 1.442695, %v3506_v42  ;;  %v7480_v41 = vld [vmem:[%s10849_s15 + $0x2] ss:$0 sm:$0xff] }
0x1179   : > { %9129 = vpow2.f32 %v3509_v44  ;;  %v3809_v44 = vsel %vm2769_vm4, %v3570_v52, 0 }
0x1181   : > { %v9128_v45 = vpop.eup %9127 }
0x1182   : > { %v3511_v48 = vsel %vm2464_vm2, %v9128_v45, 0.0 }
0x1183   : > { %v9130_v46 = vpop.eup %9129  ;;  %3512 = vadd.xlane.f32.xlu0 %v3511_v48 }
0x1184   : > { %v3514_v55 = vsel %vm2464_vm2, %v9130_v46, 0.0 }
0x1185   : > { %3515 = vadd.xlane.f32.xlu1 %v3514_v55 }
0x1210   : > { %v3513_v57 = vpop.xlane.xlu0 %3512 }
0x1211   : > { %9131 = vrcp.f32 %v3513_v57 }
0x1212   : > { %v3516_v59 = vpop.xlane.xlu1 %3515 }
0x1213   : > { %9133 = vrcp.f32 %v3516_v59 }
0x121b   : > { %v9132_v61 = vpop.eup %9131 }
0x121c   : > { %v3519_v54 = vmul.f32 %v9132_v61, %v9128_v45  ;;  %v1001_v45 = vadd.f32 %v7480_v41, %v9721_v60  ;;  %v7547_v60 = vld [vmem:[%s10850_s16 + $0x2] ss:$0 sm:$0xff] }
0x121d   : > { %v9134_v50 = vpop.eup %9133 }
0x121e   : > { %v3520_v31 = vmul.f32 %v9134_v50, %v9130_v46  ;;  %v1006_v48 = vpack.c.bf16 %v1001_v45, %v1001_v45  ;;  %v1527_v50 = vadd.f32 %v7547_v60, %v9733_v21 }
0x1220   : > { %v3521_v13 = vpack.c.bf16 %v3520_v31, %v3519_v54  ;;  %v3923_v46 = vsel %vm2464_vm2, %v1006_v48, 0  ;;  %v1532_v31 = vpack.c.bf16 %v1527_v50, %v1527_v50  ;;  %v9046_v50 = vld [vmem:[%s10845_s11 + $0x38] sm:$0xff]  }
0x1222   : > { %8566 = vmatmul.mubr.msk.bf16.vlgmr.msra.gmra.mrb[84].mxu0 %vm2464_vm2, %v3521_v13  ;;  %v3993_v21 = vsel %vm2769_vm4, %v1532_v31, 0 }
0x1223   : > { %8578 = vmatpush3.bf16.xpose.msra.mxu0 %v3642_v36  ;;  %8579 = vmatprep.mubr.msk.bf16.mxu0 %vm9254_vm0, %v9253_v1 }
0x1224   : > { %8589 = vmatprep.subr.bf16.mxu0 %v9253_v1 }
0x122a   : > { %8580 = vmatmul.mubr.msk.bf16.vlgmr.msra.gmra.mrb[88].mxu0 %vm2464_vm2, %v3637_v34 }
0x122b   : > { %8591 = vmatprep.mubr.msk.bf16.mxu0 %vm9254_vm0, %v9253_v1  ;;  %8590 = vmatpush3.bf16.msra.mxu0 %v3762_v28 }
0x122c   : > { %8601 = vmatprep.subr.bf16.mxu0 %v9253_v1 }
0x12f5   : > { %v3562_v8 = vpop.f32.mrb[84].mxu0 }
0x12f6   : > { %v8567_v56 = vpop.f32.mrb[85].mxu0 }
0x12f7   : > { %v3565_v40 = vpop.f32.mrb[86].mxu0 }
0x12f8   : > { %v3569_v14 = vpack.c.bf16 %v3565_v40, %v3562_v8  ;;  %v8568_v15 = vpop.f32.mrb[87].mxu0 }
0x12fd   : > { %v3678_v18 = vpop.f32.mrb[88].mxu0 }
0x12fe   : > { %v8581_v2 = vpop.f32.mrb[89].mxu0  ;;  %v3685_v3 = vsel %vm2464_vm2, %v3678_v18, -inf }
0x12ff   : > { %3686 = vmax.xlane.f32.xlu0 %v3685_v3  ;;  %v3681_v4 = vpop.f32.mrb[90].mxu0  ;;  %v7732_v3 = vld [vmem:[%s10848_s14 + $0x2] ss:$0 sm:$0xff] }
0x1300   : > { %v8582_v11 = vpop.f32.mrb[91].mxu0  ;;  %v3688_v6 = vsel %vm2464_vm2, %v3681_v4, -inf }
0x1301   : > { %3689 = vmax.xlane.f32.xlu1 %v3688_v6 }
0x138c   : > { %v3687_v10 = vpop.xlane.xlu0 %3686 }
0x138d   : > { %v3691_v12 = vsub.f32 %v3678_v18, %v3687_v10 }
0x138e   : > { %v3690_v19 = vpop.xlane.xlu1 %3689 }
0x138f   : > { %v3693_v17 = vmul.f32 1.442695, %v3691_v12  ;;  %v3692_v20 = vsub.f32 %v3681_v4, %v3690_v19 }
0x1391   : > { %9135 = vpow2.f32 %v3693_v17  ;;  %v3695_v22 = vmul.f32 1.442695, %v3692_v20 }
0x1393   : > { %9137 = vpow2.f32 %v3695_v22 }
0x139b   : > { %v9136_v23 = vpop.eup %9135 }
0x139c   : > { %v3697_v25 = vsel %vm2464_vm2, %v9136_v23, 0.0 }
0x139d   : > { %v9138_v9 = vpop.eup %9137  ;;  %3698 = vadd.xlane.f32.xlu0 %v3697_v25 }
0x139e   : > { %v3700_v26 = vsel %vm2464_vm2, %v9138_v9, 0.0 }
0x139f   : > { %3701 = vadd.xlane.f32.xlu1 %v3700_v26 }
0x142a   : > { %v3699_v7 = vpop.xlane.xlu0 %3698 }
0x142b   : > { %9139 = vrcp.f32 %v3699_v7 }
0x142c   : > { %v3702_v30 = vpop.xlane.xlu1 %3701 }
0x142d   : > { %9141 = vrcp.f32 %v3702_v30 }
0x1435   : > { %v9140_v63 = vpop.eup %9139 }
0x1436   : > { %v3705_v35 = vmul.f32 %v9140_v63, %v9136_v23 }
0x1437   : > { %v9142_v34 = vpop.eup %9141 }
0x1438   : > { %v3706_v39 = vmul.f32 %v9142_v34, %v9138_v9 }
0x143a   : > { %v3707_v42 = vpack.c.bf16 %v3706_v39, %v3705_v35 }
0x143c   : > { %8586 = vmatmul.mubr.msk.bf16.vlgmr.msra.gmra.mrb[88].mxu1 %vm2464_vm2, %v3707_v42  ;;  %v7738_v42 = vld [vmem:[%s10851_s17 + $0x8] sm:$0xf] }
0x143d   : > { %8596 = vmatpush3.bf16.msra.mxu1 %v3809_v44  ;;  %8597 = vmatprep.mubr.msk.bf16.mxu1 %vm9254_vm0, %v9253_v1  ;;  %v4043_v44 = vsel %vm2769_vm4, %v7738_v42, 0 }
0x143e   : > { %8609 = vmatprep.subr.bf16.mxu1 %v9253_v1 }
0x1444   : > { %8598 = vmatmul.mubr.msk.bf16.vlgmr.msra.gmra.mrb[92].mxu1 %vm2464_vm2, %v3569_v14 }
0x1445   : > { %8611 = vmatprep.mubr.msk.bf16.mxu1 %vm9254_vm0, %v9253_v1 }
0x1446   : > { %8610 = vmatpush3.bf16.xpose.msra.mxu1 %v3923_v46 }
0x1447   : > { %8621 = vmatprep.subr.bf16.mxu1 %v9253_v1 }
0x150f   : > { %v3748_v55 = vpop.f32.mrb[88].mxu1 }
0x1510   : > { %v8587_v57 = vpop.f32.mrb[89].mxu1 }
0x1511   : > { %v3751_v59 = vpop.f32.mrb[90].mxu1 }
0x1512   : > { %v3755_v53 = vpack.c.bf16 %v3751_v59, %v3748_v55  ;;  %v8588_v61 = vpop.f32.mrb[91].mxu1  ;;  %v7556_v59 = vld [vmem:[%s10850_s16 + $0x3] ss:$0 sm:$0xff] }
0x1513   : > { %v1593_v61 = vadd.f32 %v7556_v59, %v9778_v37  ;;  %v7489_v37 = vld [vmem:[%s10849_s15 + $0x3] ss:$0 sm:$0xff] }
0x1514   : > { %8592 = vmatmul.mubr.msk.bf16.vlgmr.msra.gmra.mrb[92].mxu0 %vm2464_vm2, %v3755_v53  ;;  %v1067_v31 = vadd.f32 %v7489_v37, %v9731_v16  ;;  %v7745_v16 = vld [vmem:[%s10848_s14 + $0x3] ss:$0 sm:$0xff] }
0x1515   : > { %8602 = vmatpush3.bf16.msra.mxu0 %v9043_v49  ;;  %8605 = vmatprep.mubr.msk.bf16.mxu0 %vm9254_vm0, %v9253_v1  ;;  %v9045_v49 = vld [vmem:[%s10845_s11 + $0x30] sm:$0xff]  }
0x1516   : > { %8603 = vmatprep.subr.bf16.mxu0 %v9253_v1 }
0x1517   : > { %v3845_v54 = vpop.f32.mrb[92].mxu1 }
0x1518   : > { %v8599_v13 = vpop.f32.mrb[93].mxu1 }
0x1519   : > { %8604 = vmatpush3.bf16.msra.mxu0 %v9044_v51  ;;  %v3848_v36 = vpop.f32.mrb[94].mxu1  ;;  %v1598_v51 = vpack.c.bf16 %v1593_v61, %v1593_v61 }
0x151a   : > { %v8600_v8 = vpop.f32.mrb[95].mxu1  ;;  %8615 = vmatprep.subr.bf16.mxu0 %v9253_v1 }
0x151c   : > { %8606 = vmatmul.mubr.msk.bf16.vlgmr.msra.gmra.mrb[96].mxu0 %vm830_vm1, %v9997_v32 }
0x151d   : > { %8616 = vmatpush3.bf16.msra.mxu0 %v3993_v21  ;;  %8617 = vmatprep.mubr.msk.bf16.mxu0 %vm9254_vm0, %v9253_v1 }
0x151e   : > { %8627 = vmatprep.subr.bf16.mxu0 %v9253_v1 }
0x15e7   : > { %v3798_v56 = vpop.f32.mrb[92].mxu0 }
0x15e8   : > { %v10095_v40 = vadd.f32 %v3845_v54, %v3798_v56  ;;  %v8593_v14 = vpop.f32.mrb[93].mxu0  ;;  %v4229_v54 = vsel %vm2769_vm4, %v1598_v51, 0 }
0x15e9   : > { %v3801_v15 = vpop.f32.mrb[94].mxu0 }
0x15ea   : > { %v10097_v18 = vadd.f32 %v3848_v36, %v3801_v15  ;;  %v8594_v2 = vpop.f32.mrb[95].mxu0  ;;  %v1072_v36 = vpack.c.bf16 %v1067_v31, %v1067_v31  ;;  %v7753_v31 = vld [vmem:[%s10852_s18] ss:$0 sm:$0xff] }
0x15ef   : > { %v3911_v4 = vpop.f32.mrb[96].mxu0 }
0x15f0   : > { %v8607_v11 = vpop.f32.mrb[97].mxu0  ;;  %v3912_v10 = vadd.f32 %v7732_v3, %v3911_v4 }
0x15f1   : > { %v3914_v6 = vpop.f32.mrb[98].mxu0 }
0x15f2   : > { %v3915_v12 = vadd.f32 %v7732_v3, %v3914_v6  ;;  %v8608_v19 = vpop.f32.mrb[99].mxu0 }
0x15f4   : > { %v3918_v17 = vpack.c.bf16 %v3915_v12, %v3912_v10 }
0x15f6   : > { %8612 = vmatmul.mubr.msk.bf16.vlgmr.msra.gmra.mrb[96].mxu1 %vm2464_vm2, %v3918_v17 }
0x15f7   : > { %8623 = vmatprep.mubr.msk.bf16.mxu1 %vm9254_vm0, %v9253_v1  ;;  %8622 = vmatpush3.bf16.msra.mxu1 %v4043_v44  ;;  %v7751_v44 = vld [vmem:[%s10851_s17 + $0xc] sm:$0xf] }
0x15f8   : > { %8635 = vmatprep.subr.bf16.mxu1 %v9253_v1 }
0x16c9   : > { %v3959_v20 = vpop.f32.mrb[96].mxu1 }
0x16ca   : > { %v8613_v22 = vpop.f32.mrb[97].mxu1  ;;  %v3966_v23 = vsel %vm2464_vm2, %v3959_v20, -inf }
0x16cb   : > { %3967 = vmax.xlane.f32.xlu0 %v3966_v23  ;;  %v3962_v25 = vpop.f32.mrb[98].mxu1 }
0x16cc   : > { %v8614_v9 = vpop.f32.mrb[99].mxu1  ;;  %v3969_v26 = vsel %vm2464_vm2, %v3962_v25, -inf }
0x16cd   : > { %3970 = vmax.xlane.f32.xlu1 %v3969_v26 }
0x1758   : > { %v3968_v27 = vpop.xlane.xlu0 %3967 }
0x1759   : > { %v3972_v28 = vsub.f32 %v3959_v20, %v3968_v27 }
0x175a   : > { %v3971_v7 = vpop.xlane.xlu1 %3970 }
0x175b   : > { %v3974_v30 = vmul.f32 1.442695, %v3972_v28  ;;  %v3973_v63 = vsub.f32 %v3962_v25, %v3971_v7 }
0x175d   : > { %9143 = vpow2.f32 %v3974_v30  ;;  %v3976_v34 = vmul.f32 1.442695, %v3973_v63 }
0x175f   : > { %9145 = vpow2.f32 %v3976_v34 }
0x1767   : > { %v9144_v52 = vpop.eup %9143 }
0x1768   : > { %v3978_v35 = vsel %vm2464_vm2, %v9144_v52, 0.0 }
0x1769   : > { %v9146_v39 = vpop.eup %9145  ;;  %3979 = vadd.xlane.f32.xlu0 %v3978_v35 }
0x176a   : > { %v3981_v41 = vsel %vm2464_vm2, %v9146_v39, 0.0 }
0x176b   : > { %3982 = vadd.xlane.f32.xlu1 %v3981_v41 }
0x17f6   : > { %v3980_v45 = vpop.xlane.xlu0 %3979 }
0x17f7   : > { %9147 = vrcp.f32 %v3980_v45  ;;  %v4279_v45 = vsel %vm2769_vm4, %v7751_v44, 0 }
0x17f8   : > { %v3983_v48 = vpop.xlane.xlu1 %3982 }
0x17f9   : > { %9149 = vrcp.f32 %v3983_v48 }
0x1801   : > { %v9148_v46 = vpop.eup %9147 }
0x1802   : > { %v3986_v57 = vmul.f32 %v9148_v46, %v9144_v52 }
0x1803   : > { %v9150_v55 = vpop.eup %9149 }
0x1804   : > { %v3987_v60 = vmul.f32 %v9150_v55, %v9146_v39 }
0x1806   : > { %v3988_v53 = vpack.c.bf16 %v3987_v60, %v3986_v57 }
0x1808   : > { %8618 = vmatmul.mubr.msk.bf16.vlgmr.msra.gmra.mrb[100].mxu0 %vm2464_vm2, %v3988_v53 }
0x1809   : > { %8628 = vmatpush3.bf16.msra.mxu0 %v9045_v49  ;;  %8631 = vmatprep.mubr.msk.bf16.mxu0 %vm9254_vm0, %v9253_v1 }
0x180a   : > { %8629 = vmatprep.subr.bf16.mxu0 %v9253_v1 }
0x180d   : > { %8630 = vmatpush3.bf16.msra.mxu0 %v9046_v50 }
0x180e   : > { %8641 = vmatprep.subr.bf16.mxu0 %v9253_v1 }
0x1810   : > { %8632 = vmatmul.mubr.msk.bf16.vlgmr.msra.gmra.mrb[104].mxu0 %vm830_vm1, %v9997_v32  ;;  %v4159_v32 = vsel %vm2464_vm2, %v1072_v36, 0 }
0x1811   : > { %8642 = vmatpush3.bf16.msra.mxu0 %v4229_v54  ;;  %8643 = vmatprep.mubr.msk.bf16.mxu0 %vm9254_vm0, %v9253_v1 }
0x1812   : > { %8653 = vmatprep.subr.bf16.mxu0 %v9253_v1 }
0x18db   : > { %v4029_v13 = vpop.f32.mrb[100].mxu0 }
0x18dc   : > { %v8619_v8 = vpop.f32.mrb[101].mxu0 }
0x18dd   : > { %v4032_v21 = vpop.f32.mrb[102].mxu0 }
0x18de   : > { %v4036_v56 = vpack.c.bf16 %v4032_v21, %v4029_v13  ;;  %v8620_v14 = vpop.f32.mrb[103].mxu0 }
0x18e0   : > { %8624 = vmatmul.mubr.msk.bf16.vlgmr.msra.gmra.mrb[100].mxu1 %vm2464_vm2, %v4036_v56 }
0x18e1   : > { %8636 = vmatpush3.bf16.xpose.msra.mxu1 %v4159_v32  ;;  %8637 = vmatprep.mubr.msk.bf16.mxu1 %vm9254_vm0, %v9253_v1 }
0x18e2   : > { %8647 = vmatprep.subr.bf16.mxu1 %v9253_v1 }
0x18e3   : > { %v4147_v15 = vpop.f32.mrb[104].mxu0 }
0x18e4   : > { %v8633_v2 = vpop.f32.mrb[105].mxu0  ;;  %v4148_v4 = vadd.f32 %v7745_v16, %v4147_v15 }
0x18e5   : > { %v4150_v3 = vpop.f32.mrb[106].mxu0 }
0x18e6   : > { %v4151_v11 = vadd.f32 %v7745_v16, %v4150_v3  ;;  %v8634_v6 = vpop.f32.mrb[107].mxu0 }
0x18e8   : > { %v4154_v10 = vpack.c.bf16 %v4151_v11, %v4148_v4 }
0x18ea   : > { %8638 = vmatmul.mubr.msk.bf16.vlgmr.msra.gmra.mrb[104].mxu1 %vm2464_vm2, %v4154_v10 }
0x18eb   : > { %8649 = vmatprep.mubr.msk.bf16.mxu1 %vm9254_vm0, %v9253_v1  ;;  %8648 = vmatpush3.bf16.msra.mxu1 %v4279_v45 }
0x18ec   : > { %8661 = vmatprep.subr.bf16.mxu1 %v9253_v1 }
0x19b3   : > { %v4079_v12 = vpop.f32.mrb[100].mxu1 }
0x19b4   : > { %v4086_v19 = vadd.f32 %v4079_v12, %v10095_v40  ;;  %v8625_v17 = vpop.f32.mrb[101].mxu1 }
0x19b5   : > { %v4082_v20 = vpop.f32.mrb[102].mxu1 }
0x19b6   : > { %v4087_v22 = vadd.f32 %v4082_v20, %v10097_v18  ;;  %v8626_v23 = vpop.f32.mrb[103].mxu1 }
0x19b7   : > { %v9048_v23 = vld [vmem:[%s10853_s19 + $0x8] sm:$0xff]  }
0x19bd   : > { %v4195_v25 = vpop.f32.mrb[104].mxu1 }
0x19be   : > { %v8639_v9 = vpop.f32.mrb[105].mxu1  ;;  %v4202_v26 = vsel %vm2464_vm2, %v4195_v25, -inf }
0x19bf   : > { %4203 = vmax.xlane.f32.xlu0 %v4202_v26  ;;  %v4198_v27 = vpop.f32.mrb[106].mxu1  ;;  %v9050_v9 = vld [vmem:[%s10855_s21 + $0x8] sm:$0xff]  }
0x19c0   : > { %v8640_v28 = vpop.f32.mrb[107].mxu1  ;;  %v4205_v7 = vsel %vm2464_vm2, %v4198_v27, -inf }
0x19c1   : > { %4206 = vmax.xlane.f32.xlu1 %v4205_v7 }
0x1a4c   : > { %v4204_v30 = vpop.xlane.xlu0 %4203 }
0x1a4d   : > { %v4208_v63 = vsub.f32 %v4195_v25, %v4204_v30  ;;  %v9049_v25 = vld [vmem:[%s10855_s21] sm:$0xff]  }
0x1a4e   : > { %v4207_v34 = vpop.xlane.xlu1 %4206 }
0x1a4f   : > { %v4210_v52 = vmul.f32 1.442695, %v4208_v63  ;;  %v4209_v40 = vsub.f32 %v4198_v27, %v4207_v34 }
0x1a51   : > { %9151 = vpow2.f32 %v4210_v52  ;;  %v4212_v35 = vmul.f32 1.442695, %v4209_v40  ;;  %v7756_v52 = vld [vmem:[%s10857_s23 + $0x1] ss:$0 sm:$0xff] }
0x1a53   : > { %9153 = vpow2.f32 %v4212_v35 }
0x1a5b   : > { %v9152_v18 = vpop.eup %9151 }
0x1a5c   : > { %v4214_v39 = vsel %vm2464_vm2, %v9152_v18, 0.0 }
0x1a5d   : > { %v9154_v41 = vpop.eup %9153  ;;  %4215 = vadd.xlane.f32.xlu0 %v4214_v39 }
0x1a5e   : > { %v4217_v42 = vsel %vm2464_vm2, %v9154_v41, 0.0 }
0x1a5f   : > { %4218 = vadd.xlane.f32.xlu1 %v4217_v42 }
0x1aea   : > { %v4216_v48 = vpop.xlane.xlu0 %4215 }
0x1aeb   : > { %9155 = vrcp.f32 %v4216_v48 }
0x1aec   : > { %v4219_v46 = vpop.xlane.xlu1 %4218 }
0x1aed   : > { %9157 = vrcp.f32 %v4219_v46  ;;  %v9051_v46 = vld [vmem:[%s10855_s21 + $0x10] sm:$0xff]  }
0x1af5   : > { %v9156_v55 = vpop.eup %9155 }
0x1af6   : > { %v4222_v60 = vmul.f32 %v9156_v55, %v9152_v18  ;;  %v9052_v55 = vld [vmem:[%s10855_s21 + $0x18] sm:$0xff]  }
0x1af7   : > { %v9158_v57 = vpop.eup %9157 }
0x1af8   : > { %v4223_v59 = vmul.f32 %v9158_v57, %v9154_v41  ;;  %v7757_v41 = vld [vmem:[%s10858_s24 + $0x1] ss:$0 sm:$0xff]  ;;  %v7758_v57 = vld [vmem:[%s10854_s20] ss:$0 sm:$0xff] }
0x1afa   : > { %v4224_v49 = vpack.c.bf16 %v4223_v59, %v4222_v60 }
0x1afc   : > { %8644 = vmatmul.mubr.msk.bf16.vlgmr.msra.gmra.mrb[108].mxu0 %vm2464_vm2, %v4224_v49 }
0x1afd   : > { %8657 = vmatprep.mubr.msk.bf16.mxu0 %vm9254_vm0, %v9253_v1 }
0x1bcf   : > { %v4265_v53 = vpop.f32.mrb[108].mxu0 }
0x1bd0   : > { %v8645_v61 = vpop.f32.mrb[109].mxu0 }
0x1bd1   : > { %v4268_v50 = vpop.f32.mrb[110].mxu0 }
0x1bd2   : > { %v4272_v51 = vpack.c.bf16 %v4268_v50, %v4265_v53  ;;  %v8646_v54 = vpop.f32.mrb[111].mxu0 }
0x1bd4   : > { %8650 = vmatmul.mubr.msk.bf16.vlgmr.msra.gmra.mrb[108].mxu1 %vm2464_vm2, %v4272_v51 }
0x1bd5   : > { %8669 = vmatprep.mubr.msk.bf16.mxu1 %vm9254_vm0, %v9253_v1  ;;  %8662 = vmatpush3.bf16.msra.mxu1 %v9049_v25  ;;  %v9056_v25 = vld [vmem:[%s10883_s8 + $0x68] sm:$0xff]  }
0x1bd6   : > { %8663 = vmatprep.subr.bf16.mxu1 %v9253_v1 }
0x1bd9   : > { %8664 = vmatpush3.bf16.msra.mxu1 %v9050_v9 }
0x1bda   : > { %8665 = vmatprep.subr.bf16.mxu1 %v9253_v1 }
0x1bdd   : > { %8666 = vmatpush3.bf16.msra.mxu1 %v9051_v46 }
0x1bde   : > { %8667 = vmatprep.subr.bf16.mxu1 %v9253_v1 }
0x1be1   : > { %8668 = vmatpush3.bf16.msra.mxu1 %v9052_v55  ;;  %v9059_v55 = vld [vmem:[%s10883_s8 + $0x58] sm:$0xff]  }
0x1be2   : > { %8689 = vmatprep.subr.bf16.mxu1 %v9253_v1 }
0x1ca7   : > { %v4315_v37 = vpop.f32.mrb[108].mxu1 }
0x1ca8   : > { %v4322_v13 = vadd.f32 %v4315_v37, %v4086_v19  ;;  %v8651_v36 = vpop.f32.mrb[109].mxu1 }
0x1ca9   : > { %v4318_v8 = vpop.f32.mrb[110].mxu1 }
0x1caa   : > { %v4331_v21 = vadd.f32 %v7753_v31, %v4322_v13  ;;  %v4323_v56 = vadd.f32 %v4318_v8, %v4087_v22  ;;  %v8652_v14 = vpop.f32.mrb[111].mxu1 }
0x1cac   : > { %v4332_v32 = vadd.f32 %v7753_v31, %v4323_v56  ;;  %v4333_v16 = vadd.f32 %v4331_v21, %v9991_v58  ;;  %v7762_v31 = vld [vmem:[%s10856_s22] ss:$0 sm:$0xff] }
0x1cae   : > { %v4339_v15 = vsel %vm830_vm1, %v4333_v16, 0.0  ;;  %v4334_v2 = vadd.f32 %v4332_v32, %v9993_v62  ;;  %v9047_v62 = vld [vmem:[%s10853_s19] sm:$0xff]  }
0x1caf   : > { %4340 = vadd.xlane.f32.xlu0 %v4339_v15  ;;  %8654 = vmatpush3.bf16.msra.mxu0 %v9047_v62  ;;  %v9054_v62 = vld [vmem:[%s10883_s8 + $0x60] sm:$0xff]  }
0x1cb0   : > { %v4342_v3 = vsel %vm830_vm1, %v4334_v2, 0.0  ;;  %8655 = vmatprep.subr.bf16.mxu0 %v9253_v1 }
0x1cb1   : > { %4343 = vadd.xlane.f32.xlu1 %v4342_v3 }
0x1cb3   : > { %8656 = vmatpush3.bf16.msra.mxu0 %v9048_v23  ;;  %v9055_v23 = vld [vmem:[%s10883_s8 + $0x48] sm:$0xff]  }
0x1cb4   : > { %8673 = vmatprep.subr.bf16.mxu0 %v9253_v1 }
0x1d3c   : > { %v4341_v4 = vpop.xlane.xlu0 %4340 }
0x1d3d   : > { %v4345_v11 = vmul.f32 0.03125, %v4341_v4 }
0x1d3e   : > { %v4344_v6 = vpop.xlane.xlu1 %4343 }
0x1d3f   : > { %v4347_v10 = vsub.f32 %v4333_v16, %v4345_v11  ;;  %v4346_v12 = vmul.f32 0.03125, %v4344_v6 }
0x1d41   : > { %v4348_v19 = vsub.f32 %v4334_v2, %v4346_v12  ;;  %v4349_v17 = vmul.f32 %v4347_v10, %v4347_v10 }
0x1d43   : > { %v4351_v20 = vsel %vm830_vm1, %v4349_v17, 0.0  ;;  %v4350_v22 = vmul.f32 %v4348_v19, %v4348_v19 }
0x1d44   : > { %4352 = vadd.xlane.f32.xlu0 %v4351_v20 }
0x1d45   : > { %v4354_v58 = vsel %vm830_vm1, %v4350_v22, 0.0 }
0x1d46   : > { %4355 = vadd.xlane.f32.xlu1 %v4354_v58  ;;  %v9053_v58 = vld [vmem:[%s10883_s8 + $0x40] sm:$0xff]  }
0x1dd1   : > { %v4353_v26 = vpop.xlane.xlu0 %4352 }
0x1dd2   : > { %v4357_v27 = vmul.f32 0.03125, %v4353_v26 }
0x1dd3   : > { %v4356_v28 = vpop.xlane.xlu1 %4355 }
0x1dd4   : > { %v4359_v7 = vadd.f32 1e-05, %v4357_v27  ;;  %v4358_v30 = vmul.f32 0.03125, %v4356_v28 }
0x1dd6   : > { %9159 = vrsqrt.f32 %v4359_v7  ;;  %v4360_v63 = vadd.f32 1e-05, %v4358_v30 }
0x1dd8   : > { %9161 = vrsqrt.f32 %v4360_v63 }
0x1de0   : > { %v9160_v34 = vpop.eup %9159 }
0x1de1   : > { %v4363_v40 = vmul.f32 %v9160_v34, %v4347_v10  ;;  %v7770_v34 = vld [vmem:[%s10857_s23 + $0x2] ss:$0 sm:$0xff] }
0x1de2   : > { %v9162_v35 = vpop.eup %9161 }
0x1de3   : > { %v4371_v18 = vmul.f32 %v7756_v52, %v4363_v40  ;;  %v4364_v39 = vmul.f32 %v9162_v35, %v4348_v19 }
0x1de5   : > { %v4372_v42 = vmul.f32 %v7756_v52, %v4364_v39  ;;  %v4379_v44 = vadd.f32 %v7757_v41, %v4371_v18  ;;  %v7771_v39 = vld [vmem:[%s10858_s24 + $0x2] ss:$0 sm:$0xff] }
0x1de7   : > { %v4380_v45 = vadd.f32 %v7757_v41, %v4372_v42 }
0x1de9   : > { %v4381_v48 = vpack.c.bf16 %v4380_v45, %v4379_v44 }
0x1deb   : > { %8658 = vmatmul.mubr.msk.bf16.vlgmr.msra.gmra.mrb[112].mxu0 %vm830_vm1, %v4381_v48  ;;  %v9058_v48 = vld [vmem:[%s10885_s4 + $0x40] sm:$0xff]  }
0x1dec   : > { %8677 = vmatprep.mubr.msk.bf16.mxu0 %vm9254_vm0, %v9253_v1  ;;  %8674 = vmatpush3.bf16.msra.mxu0 %v9053_v58 }
0x1ded   : > { %8675 = vmatprep.subr.bf16.mxu0 %v9253_v1 }
0x1df0   : > { %8676 = vmatpush3.bf16.msra.mxu0 %v9055_v23 }
0x1df1   : > { %8681 = vmatprep.subr.bf16.mxu0 %v9253_v1 }
0x1ebe   : > { %v4442_v60 = vpop.f32.mrb[112].mxu0 }
0x1ebf   : > { %v4443_v59 = vadd.f32 %v7758_v57, %v4442_v60  ;;  %v8659_v49 = vpop.f32.mrb[113].mxu0  ;;  %v9061_v60 = vld [vmem:[%s10883_s8 + $0x70] sm:$0xff]  }
0x1ec0   : > { %v4445_v53 = vpop.f32.mrb[114].mxu0  ;;  %v9063_v49 = vld [vmem:[%s10883_s8 + $0x78] sm:$0xff]  }
0x1ec1   : > { %v4446_v61 = vadd.f32 %v7758_v57, %v4445_v53  ;;  %v8660_v50 = vpop.f32.mrb[115].mxu0  ;;  %v4449_v51 = vmax.f32 %v4443_v59, 0.0  ;;  %v9060_v57 = vld [vmem:[%s10885_s4 + $0x48] sm:$0xff]   ;;  %v9062_v59 = vld [vmem:[%s10885_s4 + $0x60] sm:$0xff]  }
0x1ec2   : > { %v9064_v53 = vld [vmem:[%s10885_s4 + $0x68] sm:$0xff]   ;;  %v9066_v50 = vld [vmem:[%s10886_s5 + $0x40] sm:$0xff]  }
0x1ec3   : > { %v4450_v54 = vmax.f32 %v4446_v61, 0.0  ;;  %v9065_v61 = vld [vmem:[%s10885_s4 + $0x50] sm:$0xff]  }
0x1ec5   : > { %v4451_v37 = vpack.c.bf16 %v4450_v54, %v4449_v51  ;;  %v9067_v51 = vld [vmem:[%s10885_s4 + $0x58] sm:$0xff]   ;;  %v9068_v54 = vld [vmem:[%s10886_s5 + $0x48] sm:$0xff]  }
0x1ec7   : > { %8670 = vmatmul.mubr.msk.bf16.vlgmr.msra.gmra.mrb[112].mxu1 %vm4491_vm5, %v4451_v37  ;;  %v9069_v37 = vld [vmem:[%s10885_s4 + $0x70] sm:$0xff]  }
0x1ec8   : > { %8693 = vmatprep.mubr.msk.bf16.mxu1 %vm9254_vm0, %v9253_v1  ;;  %8690 = vmatpush3.bf16.msra.mxu1 %v9054_v62 }
0x1ec9   : > { %8691 = vmatprep.subr.bf16.mxu1 %v9253_v1 }
0x1ecc   : > { %8692 = vmatpush3.bf16.msra.mxu1 %v9056_v25 }
0x1ecd   : > { %8705 = vmatprep.subr.bf16.mxu1 %v9253_v1 }
0x1f9a   : > { %v4529_v13 = vpop.f32.mrb[112].mxu1 }
0x1f9b   : > { %v4530_v36 = vadd.f32 %v7762_v31, %v4529_v13  ;;  %v8671_v8 = vpop.f32.mrb[113].mxu1  ;;  %v7777_v13 = vld [vmem:[%s10887_s30 + $0x4] ss:$0 sm:$0xff] }
0x1f9c   : > { %v4532_v21 = vpop.f32.mrb[114].mxu1  ;;  %v7795_v8 = vld [vmem:[%s10887_s30 + $0x6] ss:$0 sm:$0xff] }
0x1f9d   : > { %v4533_v56 = vadd.f32 %v7762_v31, %v4532_v21  ;;  %v8672_v14 = vpop.f32.mrb[115].mxu1  ;;  %v4536_v32 = vadd.f32 %v4530_v36, %v4379_v44  ;;  %v9070_v31 = vld [vmem:[%s10885_s4 + $0x78] sm:$0xff]  }
0x1f9f   : > { %v4542_v16 = vsel %vm830_vm1, %v4536_v32, 0.0  ;;  %v4537_v15 = vadd.f32 %v4533_v56, %v4380_v45  ;;  %v9057_v45 = vld [vmem:[%s10883_s8 + $0x50] sm:$0xff]  }
0x1fa0   : > { %4543 = vadd.xlane.f32.xlu0 %v4542_v16 }
0x1fa1   : > { %v4545_v2 = vsel %vm830_vm1, %v4537_v15, 0.0 }
0x1fa2   : > { %4546 = vadd.xlane.f32.xlu1 %v4545_v2 }
0x202d   : > { %v4544_v3 = vpop.xlane.xlu0 %4543 }
0x202e   : > { %v4548_v4 = vmul.f32 0.03125, %v4544_v3 }
0x202f   : > { %v4547_v11 = vpop.xlane.xlu1 %4546 }
0x2030   : > { %v4550_v6 = vsub.f32 %v4536_v32, %v4548_v4  ;;  %v4549_v10 = vmul.f32 0.03125, %v4547_v11 }
0x2032   : > { %v4551_v12 = vsub.f32 %v4537_v15, %v4549_v10  ;;  %v4552_v19 = vmul.f32 %v4550_v6, %v4550_v6 }
0x2034   : > { %v4554_v17 = vsel %vm830_vm1, %v4552_v19, 0.0  ;;  %v4553_v20 = vmul.f32 %v4551_v12, %v4551_v12 }
0x2035   : > { %4555 = vadd.xlane.f32.xlu0 %v4554_v17  ;;  %v7786_v17 = vld [vmem:[%s10887_s30 + $0x5] ss:$0 sm:$0xff] }
0x2036   : > { %v4557_v22 = vsel %vm830_vm1, %v4553_v20, 0.0 }
0x2037   : > { %4558 = vadd.xlane.f32.xlu1 %v4557_v22  ;;  %v7813_v22 = vld [vmem:[%s10888_s28 + $0x4] ss:$0 sm:$0xff] }
0x20c2   : > { %v4556_v9 = vpop.xlane.xlu0 %4555 }
0x20c3   : > { %v4560_v26 = vmul.f32 0.03125, %v4556_v9 }
0x20c4   : > { %v4559_v27 = vpop.xlane.xlu1 %4558 }
0x20c5   : > { %v4562_v28 = vadd.f32 1e-05, %v4560_v26  ;;  %v4561_v7 = vmul.f32 0.03125, %v4559_v27 }
0x20c7   : > { %9163 = vrsqrt.f32 %v4562_v28  ;;  %v4563_v30 = vadd.f32 1e-05, %v4561_v7 }
0x20c9   : > { %9165 = vrsqrt.f32 %v4563_v30 }
0x20d1   : > { %v9164_v63 = vpop.eup %9163 }
0x20d2   : > { %v4566_v52 = vmul.f32 %v9164_v63, %v4550_v6 }
0x20d3   : > { %v9166_v40 = vpop.eup %9165 }
0x20d4   : > { %v4574_v35 = vmul.f32 %v7770_v34, %v4566_v52  ;;  %v4567_v18 = vmul.f32 %v9166_v40, %v4551_v12  ;;  %v7804_v40 = vld [vmem:[%s10887_s30 + $0x7] ss:$0 sm:$0xff] }
0x20d6   : > { %v4575_v41 = vmul.f32 %v7770_v34, %v4567_v18  ;;  %v10244_v42 = vadd.f32 %v7771_v39, %v4574_v35  ;;  %v7831_v18 = vld [vmem:[%s10888_s28 + $0x6] ss:$0 sm:$0xff] }
0x20d8   : > { %v10246_v44 = vadd.f32 %v7771_v39, %v4575_v41 }
0x20da   : > { %v10256_v46 = vpack.c.bf16 %v10246_v44, %v10244_v42 }
0x20dc   : > { %8678 = vmatmul.mubr.msk.bf16.vlgmr.msra.gmra.mrb[116].mxu0 %vm830_vm1, %v10256_v46  ;;  %8694 = vmatmul.mubr.msk.bf16.vlgmr.msra.gmra.mrb[116].mxu1 %vm830_vm1, %v10256_v46 }
0x20dd   : > { %8682 = vmatpush3.bf16.msra.mxu0 %v9057_v45  ;;  %8706 = vmatpush3.bf16.msra.mxu1 %v9058_v48 }
0x20de   : > { %8683 = vmatprep.subr.bf16.mxu0 %v9253_v1  ;;  %8707 = vmatprep.subr.bf16.mxu1 %v9253_v1 }
0x20df   : > { %8685 = vmatprep.mubr.msk.bf16.mxu0 %vm9254_vm0, %v9253_v1  ;;  %8709 = vmatprep.mubr.msk.bf16.mxu1 %vm9254_vm0, %v9253_v1 }
0x20e1   : > { %8684 = vmatpush3.bf16.msra.mxu0 %v9059_v55  ;;  %8708 = vmatpush3.bf16.msra.mxu1 %v9060_v57 }
0x20e2   : > { %8697 = vmatprep.subr.bf16.mxu0 %v9253_v1  ;;  %8721 = vmatprep.subr.bf16.mxu1 %v9253_v1 }
0x20e4   : > { %8686 = vmatmul.mubr.msk.bf16.vlgmr.msra.gmra.mrb[120].mxu0 %vm830_vm1, %v10256_v46  ;;  %8710 = vmatmul.mubr.msk.bf16.vlgmr.msra.gmra.mrb[120].mxu1 %vm830_vm1, %v10256_v46 }
0x20e5   : > { %8698 = vmatpush3.bf16.msra.mxu0 %v9061_v60  ;;  %8722 = vmatpush3.bf16.msra.mxu1 %v9062_v59 }
0x20e6   : > { %8699 = vmatprep.subr.bf16.mxu0 %v9253_v1  ;;  %8723 = vmatprep.subr.bf16.mxu1 %v9253_v1 }
0x20e7   : > { %8701 = vmatprep.mubr.msk.bf16.mxu0 %vm9254_vm0, %v9253_v1  ;;  %8725 = vmatprep.mubr.msk.bf16.mxu1 %vm9254_vm0, %v9253_v1 }
0x20e9   : > { %8700 = vmatpush3.bf16.msra.mxu0 %v9063_v49  ;;  %8724 = vmatpush3.bf16.msra.mxu1 %v9064_v53 }
0x20ea   : > { %8713 = vmatprep.subr.bf16.mxu0 %v9253_v1  ;;  %8737 = vmatprep.subr.bf16.mxu1 %v9253_v1 }
0x20ec   : > { %8702 = vmatmul.mubr.msk.bf16.vlgmr.msra.gmra.mrb[124].mxu0 %vm830_vm1, %v10256_v46  ;;  %8726 = vmatmul.mubr.msk.bf16.vlgmr.msra.gmra.mrb[124].mxu1 %vm830_vm1, %v10256_v46 }
0x20ed   : > { %8714 = vmatpush3.bf16.msra.mxu0 %v9065_v61  ;;  %8738 = vmatpush3.bf16.msra.mxu1 %v9066_v50 }
0x20ee   : > { %8715 = vmatprep.subr.bf16.mxu0 %v9253_v1  ;;  %8739 = vmatprep.subr.bf16.mxu1 %v9253_v1 }
0x20ef   : > { %8717 = vmatprep.mubr.msk.bf16.mxu0 %vm9254_vm0, %v9253_v1  ;;  %8741 = vmatprep.mubr.msk.bf16.mxu1 %vm9254_vm0, %v9253_v1 }
0x20f1   : > { %8716 = vmatpush3.bf16.msra.mxu0 %v9067_v51  ;;  %8740 = vmatpush3.bf16.msra.mxu1 %v9068_v54  ;;  %v7822_v54 = vld [vmem:[%s10888_s28 + $0x5] ss:$0 sm:$0xff] }
0x20f2   : > { %8729 = vmatprep.subr.bf16.mxu0 %v9253_v1  ;;  %8751 = vmatprep.subr.bf16.mxu1 %v9253_v1 }
0x20f4   : > { %8718 = vmatmul.mubr.msk.bf16.vlgmr.msra.gmra.mrb[128].mxu0 %vm830_vm1, %v10256_v46  ;;  %8742 = vmatmul.mubr.msk.bf16.vlgmr.msra.gmra.mrb[128].mxu1 %vm830_vm1, %v10256_v46 }
0x20f5   : > { %8730 = vmatpush3.bf16.msra.mxu0 %v9069_v37  ;;  %8733 = vmatprep.mubr.msk.bf16.mxu0 %vm9254_vm0, %v9253_v1 }
0x20f6   : > { %8731 = vmatprep.subr.bf16.mxu0 %v9253_v1  ;;  %8753 = vmatprep.mubr.msk.bf16.mxu1 %vm9254_vm0, %v9253_v1 }
0x20f9   : > { %8732 = vmatpush3.bf16.msra.mxu0 %v9070_v31  ;;  %v7849_v31 = vld [vmem:[%s10889_s26 + $0x4] ss:$0 sm:$0xff] }
0x20fa   : > { %8745 = vmatprep.subr.bf16.mxu0 %v9253_v1 }
0x20fc   : > { %8734 = vmatmul.mubr.msk.bf16.vlgmr.msra.gmra.mrb[132].mxu0 %vm830_vm1, %v10256_v46 }
0x20fd   : > { %8747 = vmatprep.mubr.msk.bf16.mxu0 %vm9254_vm0, %v9253_v1 }
0x21af   : > { %v4647_v36 = vpop.f32.mrb[116].mxu0  ;;  %v4781_v21 = vpop.f32.mrb[116].mxu1 }
0x21b0   : > { %v8679_v56 = vpop.f32.mrb[117].mxu0  ;;  %v8695_v14 = vpop.f32.mrb[117].mxu1  ;;  %v4648_v15 = vadd.f32 %v7777_v13, %v4647_v36  ;;  %v10350_v2 = vadd.f32 %v7795_v8, %v4781_v21 }
0x21b1   : > { %v4650_v32 = vpop.f32.mrb[118].mxu0  ;;  %v4784_v16 = vpop.f32.mrb[118].mxu1 }
0x21b2   : > { %v4651_v3 = vadd.f32 %v7777_v13, %v4650_v32  ;;  %v10352_v4 = vadd.f32 %v7795_v8, %v4784_v16  ;;  %v8680_v11 = vpop.f32.mrb[119].mxu0  ;;  %v8696_v6 = vpop.f32.mrb[119].mxu1 }
0x21b3   : > { %v9071_v6 = vld [vmem:[%s10886_s5 + $0x50] sm:$0xff]  }
0x21b4   : > { %v4654_v10 = vpack.c.bf16 %v4651_v3, %v4648_v15  ;;  %v4788_v12 = vpack.c.bf16 %v10352_v4, %v10350_v2  ;;  %v9074_v2 = vld [vmem:[%s10886_s5 + $0x68] sm:$0xff]  }
0x21b6   : > { %v5195_v19 = vsel %vm2464_vm2, %v4654_v10, 0 }
0x21b7   : > { %v4714_v20 = vpop.f32.mrb[120].mxu0  ;;  %v4915_v58 = vpop.f32.mrb[120].mxu1  ;;  %8746 = vmatpush3.bf16.xpose.msra.mxu0 %v5195_v19 }
0x21b8   : > { %v8687_v62 = vpop.f32.mrb[121].mxu0  ;;  %v8711_v23 = vpop.f32.mrb[121].mxu1  ;;  %8757 = vmatprep.subr.bf16.mxu0 %v9253_v1  ;;  %v10364_v26 = vadd.f32 %v7786_v17, %v4714_v20  ;;  %v4916_v27 = vadd.f32 %v7813_v22, %v4915_v58 }
0x21b9   : > { %v4717_v25 = vpop.f32.mrb[122].mxu0  ;;  %v4918_v9 = vpop.f32.mrb[122].mxu1 }
0x21ba   : > { %v10366_v28 = vadd.f32 %v7786_v17, %v4717_v25  ;;  %v4919_v7 = vadd.f32 %v7813_v22, %v4918_v9  ;;  %v8688_v30 = vpop.f32.mrb[123].mxu0  ;;  %v8712_v63 = vpop.f32.mrb[123].mxu1  ;;  %v7840_v17 = vld [vmem:[%s10888_s28 + $0x7] ss:$0 sm:$0xff]  ;;  %v9072_v22 = vld [vmem:[%s10886_s5 + $0x58] sm:$0xff]  }
0x21bc   : > { %v4721_v34 = vpack.c.bf16 %v10366_v28, %v10364_v26  ;;  %v4922_v52 = vpack.c.bf16 %v4919_v7, %v4916_v27 }
0x21be   : > { %8752 = vmatpush3.bf16.msra.mxu1 %v4922_v52 }
0x21bf   : > { %v4848_v35 = vpop.f32.mrb[124].mxu0  ;;  %v5049_v39 = vpop.f32.mrb[124].mxu1  ;;  %8765 = vmatprep.subr.bf16.mxu1 %v9253_v1 }
0x21c0   : > { %v8703_v41 = vpop.f32.mrb[125].mxu0  ;;  %v8727_v45 = vpop.f32.mrb[125].mxu1  ;;  %v10377_v57 = vadd.f32 %v7804_v40, %v4848_v35  ;;  %v10379_v60 = vadd.f32 %v7831_v18, %v5049_v39 }
0x21c1   : > { %v4851_v48 = vpop.f32.mrb[126].mxu0  ;;  %v5052_v55 = vpop.f32.mrb[126].mxu1 }
0x21c2   : > { %v10381_v59 = vadd.f32 %v7804_v40, %v4851_v48  ;;  %v10383_v49 = vadd.f32 %v7831_v18, %v5052_v55  ;;  %v8704_v53 = vpop.f32.mrb[127].mxu0  ;;  %v8728_v61 = vpop.f32.mrb[127].mxu1  ;;  %v7861_v18 = vld [vmem:[%s10889_s26 + $0x5] ss:$0 sm:$0xff] }
0x21c4   : > { %v4855_v50 = vpack.c.bf16 %v10381_v59, %v10377_v57  ;;  %v5056_v51 = vpack.c.bf16 %v10383_v49, %v10379_v60 }
0x21c7   : > { %v4982_v37 = vpop.f32.mrb[128].mxu0  ;;  %v5183_v13 = vpop.f32.mrb[128].mxu1 }
0x21c8   : > { %v8719_v36 = vpop.f32.mrb[129].mxu0  ;;  %v8743_v8 = vpop.f32.mrb[129].mxu1  ;;  %v4983_v14 = vadd.f32 %v7822_v54, %v4982_v37  ;;  %v5184_v32 = vadd.f32 %v7849_v31, %v5183_v13 }
0x21c9   : > { %v4985_v21 = vpop.f32.mrb[130].mxu0  ;;  %v5186_v56 = vpop.f32.mrb[130].mxu1 }
0x21ca   : > { %v4986_v16 = vadd.f32 %v7822_v54, %v4985_v21  ;;  %v5187_v15 = vadd.f32 %v7849_v31, %v5186_v56  ;;  %v8720_v3 = vpop.f32.mrb[131].mxu0  ;;  %v8744_v11 = vpop.f32.mrb[131].mxu1 }
0x21cc   : > { %v4989_v10 = vpack.c.bf16 %v4986_v16, %v4983_v14  ;;  %v5190_v19 = vpack.c.bf16 %v5187_v15, %v5184_v32 }
0x21ce   : > { %8748 = vmatmul.mubr.msk.bf16.vlgmr.msra.gmra.mrb[136].mxu0 %vm2464_vm2, %v5190_v19 }
0x21cf   : > { %8758 = vmatpush3.bf16.msra.mxu0 %v9071_v6  ;;  %v5116_v20 = vpop.f32.mrb[132].mxu0  ;;  %8761 = vmatprep.mubr.msk.bf16.mxu0 %vm9254_vm0, %v9253_v1 }
0x21d0   : > { %v8735_v58 = vpop.f32.mrb[133].mxu0  ;;  %8759 = vmatprep.subr.bf16.mxu0 %v9253_v1  ;;  %v10408_v23 = vadd.f32 %v7840_v17, %v5116_v20 }
0x21d1   : > { %v5119_v62 = vpop.f32.mrb[134].mxu0 }
0x21d2   : > { %v10410_v25 = vadd.f32 %v7840_v17, %v5119_v62  ;;  %v8736_v9 = vpop.f32.mrb[135].mxu0  ;;  %v5379_v17 = vsel %vm2464_vm2, %v4721_v34, 0 }
0x21d3   : > { %8760 = vmatpush3.bf16.msra.mxu0 %v9072_v22 }
0x21d4   : > { %v5123_v27 = vpack.c.bf16 %v10410_v25, %v10408_v23  ;;  %8771 = vmatprep.subr.bf16.mxu0 %v9253_v1  ;;  %v7888_v23 = vld [vmem:[%s10889_s26 + $0x7] ss:$0 sm:$0xff] }
0x21d6   : > { %8762 = vmatmul.mubr.msk.bf16.vlgmr.msra.gmra.mrb[140].mxu0 %vm830_vm1, %v10256_v46 }
0x21d7   : > { %8772 = vmatpush3.bf16.msra.mxu0 %v4989_v10  ;;  %8773 = vmatprep.mubr.msk.bf16.mxu0 %vm9254_vm0, %v9253_v1 }
0x21d8   : > { %8783 = vmatprep.subr.bf16.mxu0 %v9253_v1 }
0x22a1   : > { %v5231_v7 = vpop.f32.mrb[136].mxu0 }
0x22a2   : > { %v8749_v30 = vpop.f32.mrb[137].mxu0  ;;  %v5238_v63 = vsel %vm2512_vm3, %v5231_v7, -inf }
0x22a3   : > { %5239 = vmax.xlane.f32.xlu0 %v5238_v63  ;;  %v5234_v52 = vpop.f32.mrb[138].mxu0 }
0x22a4   : > { %v8750_v40 = vpop.f32.mrb[139].mxu0  ;;  %v5241_v35 = vsel %vm2512_vm3, %v5234_v52, -inf }
0x22a5   : > { %5242 = vmax.xlane.f32.xlu1 %v5241_v35 }
0x22a9   : > { %v5367_v39 = vpop.f32.mrb[140].mxu0 }
0x22aa   : > { %v8763_v41 = vpop.f32.mrb[141].mxu0  ;;  %v5368_v48 = vadd.f32 %v7861_v18, %v5367_v39 }
0x22ab   : > { %v5370_v45 = vpop.f32.mrb[142].mxu0 }
0x22ac   : > { %v5371_v55 = vadd.f32 %v7861_v18, %v5370_v45  ;;  %v8764_v53 = vpop.f32.mrb[143].mxu0 }
0x22ae   : > { %v5374_v61 = vpack.c.bf16 %v5371_v55, %v5368_v48 }
0x2330   : > { %v5240_v54 = vpop.xlane.xlu0 %5239 }
0x2331   : > { %v5244_v37 = vsub.f32 %v5231_v7, %v5240_v54 }
0x2332   : > { %v5243_v31 = vpop.xlane.xlu1 %5242 }
0x2333   : > { %v5246_v13 = vmul.f32 1.442695, %v5244_v37  ;;  %v5245_v36 = vsub.f32 %v5234_v52, %v5243_v31 }
0x2335   : > { %9167 = vpow2.f32 %v5246_v13  ;;  %v5248_v8 = vmul.f32 1.442695, %v5245_v36 }
0x2337   : > { %9169 = vpow2.f32 %v5248_v8  ;;  %v7855_v8 = vld [vmem:[%s10890_s0 + $0x10] sm:$0xf] }
0x233f   : > { %v9168_v21 = vpop.eup %9167 }
0x2340   : > { %v5250_v56 = vsel %vm2512_vm3, %v9168_v21, 0.0 }
0x2341   : > { %v9170_v14 = vpop.eup %9169  ;;  %5251 = vadd.xlane.f32.xlu0 %v5250_v56 }
0x2342   : > { %v5253_v32 = vsel %vm2512_vm3, %v9170_v14, 0.0 }
0x2343   : > { %5254 = vadd.xlane.f32.xlu1 %v5253_v32  ;;  %v5543_v32 = vsel %vm2769_vm4, %v7855_v8, 0 }
0x23ce   : > { %v5252_v16 = vpop.xlane.xlu0 %5251 }
0x23cf   : > { %9171 = vrcp.f32 %v5252_v16  ;;  %v5657_v16 = vsel %vm2464_vm2, %v4788_v12, 0 }
0x23d0   : > { %v5255_v15 = vpop.xlane.xlu1 %5254 }
0x23d1   : > { %9173 = vrcp.f32 %v5255_v15 }
0x23d9   : > { %v9172_v3 = vpop.eup %9171 }
0x23da   : > { %v5258_v6 = vmul.f32 %v9172_v3, %v9168_v21 }
0x23db   : > { %v9174_v11 = vpop.eup %9173 }
0x23dc   : > { %v5259_v10 = vmul.f32 %v9174_v11, %v9170_v14 }
0x23de   : > { %v5260_v19 = vpack.c.bf16 %v5259_v10, %v5258_v6  ;;  %v9073_v6 = vld [vmem:[%s10886_s5 + $0x60] sm:$0xff]  }
0x23e0   : > { %8754 = vmatmul.mubr.msk.bf16.vlgmr.msra.gmra.mrb[132].mxu1 %vm2512_vm3, %v5260_v19 }
0x23e1   : > { %8766 = vmatpush3.bf16.xpose.msra.mxu1 %v5379_v17  ;;  %8767 = vmatprep.mubr.msk.bf16.mxu1 %vm9254_vm0, %v9253_v1 }
0x23e2   : > { %8777 = vmatprep.subr.bf16.mxu1 %v9253_v1 }
0x23e8   : > { %8768 = vmatmul.mubr.msk.bf16.vlgmr.msra.gmra.mrb[136].mxu1 %vm2464_vm2, %v5374_v61  ;;  %v7867_v61 = vld [vmem:[%s10890_s0 + $0x14] sm:$0xf] }
0x23e9   : > { %8779 = vmatprep.mubr.msk.bf16.mxu1 %vm9254_vm0, %v9253_v1  ;;  %v5496_v54 = vsel %vm2769_vm4, %v7867_v61, 0 }
0x23ea   : > { %8778 = vmatpush3.bf16.msra.mxu1 %v5496_v54 }
0x23eb   : > { %8789 = vmatprep.subr.bf16.mxu1 %v9253_v1 }
0x24b3   : > { %v5298_v20 = vpop.f32.mrb[132].mxu1 }
0x24b4   : > { %v8755_v22 = vpop.f32.mrb[133].mxu1 }
0x24b5   : > { %v5301_v58 = vpop.f32.mrb[134].mxu1 }
0x24b6   : > { %v5305_v62 = vpack.c.bf16 %v5301_v58, %v5298_v20  ;;  %v8756_v9 = vpop.f32.mrb[135].mxu1 }
0x24bb   : > { %v5415_v7 = vpop.f32.mrb[136].mxu1 }
0x24bc   : > { %v8769_v26 = vpop.f32.mrb[137].mxu1  ;;  %v5422_v28 = vsel %vm2512_vm3, %v5415_v7, -inf }
0x24bd   : > { %5423 = vmax.xlane.f32.xlu0 %v5422_v28  ;;  %v5418_v34 = vpop.f32.mrb[138].mxu1  ;;  %v7875_v28 = vld [vmem:[%s10889_s26 + $0x6] ss:$0 sm:$0xff] }
0x24be   : > { %v8770_v30 = vpop.f32.mrb[139].mxu1  ;;  %v5425_v63 = vsel %vm2512_vm3, %v5418_v34, -inf }
0x24bf   : > { %5426 = vmax.xlane.f32.xlu1 %v5425_v63 }
0x254a   : > { %v5424_v52 = vpop.xlane.xlu0 %5423 }
0x254b   : > { %v5428_v40 = vsub.f32 %v5415_v7, %v5424_v52 }
0x254c   : > { %v5427_v35 = vpop.xlane.xlu1 %5426 }
0x254d   : > { %v5430_v18 = vmul.f32 1.442695, %v5428_v40  ;;  %v5429_v39 = vsub.f32 %v5418_v34, %v5427_v35 }
0x254f   : > { %9175 = vpow2.f32 %v5430_v18  ;;  %v5432_v41 = vmul.f32 1.442695, %v5429_v39 }
0x2551   : > { %9177 = vpow2.f32 %v5432_v41 }
0x2559   : > { %v9176_v45 = vpop.eup %9175 }
0x255a   : > { %v5434_v48 = vsel %vm2512_vm3, %v9176_v45, 0.0 }
0x255b   : > { %v9178_v55 = vpop.eup %9177  ;;  %5435 = vadd.xlane.f32.xlu0 %v5434_v48 }
0x255c   : > { %v5437_v53 = vsel %vm2512_vm3, %v9178_v55, 0.0 }
0x255d   : > { %5438 = vadd.xlane.f32.xlu1 %v5437_v53 }
0x25e8   : > { %v5436_v37 = vpop.xlane.xlu0 %5435 }
0x25e9   : > { %9179 = vrcp.f32 %v5436_v37 }
0x25ea   : > { %v5439_v31 = vpop.xlane.xlu1 %5438 }
0x25eb   : > { %9181 = vrcp.f32 %v5439_v31 }
0x25f3   : > { %v9180_v13 = vpop.eup %9179 }
0x25f4   : > { %v5442_v21 = vmul.f32 %v9180_v13, %v9176_v45 }
0x25f5   : > { %v9182_v36 = vpop.eup %9181 }
0x25f6   : > { %v5443_v56 = vmul.f32 %v9182_v36, %v9178_v55 }
0x25f8   : > { %v5444_v14 = vpack.c.bf16 %v5443_v56, %v5442_v21  ;;  %v7881_v21 = vld [vmem:[%s10890_s0 + $0x18] sm:$0xf] }
0x25f9   : > { %v5774_v56 = vsel %vm2769_vm4, %v7881_v21, 0 }
0x25fa   : > { %8774 = vmatmul.mubr.msk.bf16.vlgmr.msra.gmra.mrb[144].mxu0 %vm2512_vm3, %v5444_v14 }
0x25fb   : > { %8784 = vmatpush3.bf16.msra.mxu0 %v5543_v32  ;;  %8785 = vmatprep.mubr.msk.bf16.mxu0 %vm9254_vm0, %v9253_v1 }
0x25fc   : > { %8797 = vmatprep.subr.bf16.mxu0 %v9253_v1 }
0x2602   : > { %8786 = vmatmul.mubr.msk.bf16.vlgmr.msra.gmra.mrb[148].mxu0 %vm2464_vm2, %v5305_v62 }
0x2603   : > { %8799 = vmatprep.mubr.msk.bf16.mxu0 %vm9254_vm0, %v9253_v1 }
0x2604   : > { %8798 = vmatpush3.bf16.xpose.msra.mxu0 %v5657_v16 }
0x2605   : > { %8809 = vmatprep.subr.bf16.mxu0 %v9253_v1 }
0x26cd   : > { %v5482_v15 = vpop.f32.mrb[144].mxu0 }
0x26ce   : > { %v8775_v3 = vpop.f32.mrb[145].mxu0 }
0x26cf   : > { %v5485_v11 = vpop.f32.mrb[146].mxu0 }
0x26d0   : > { %v5489_v10 = vpack.c.bf16 %v5485_v11, %v5482_v15  ;;  %v8776_v19 = vpop.f32.mrb[147].mxu0 }
0x26d1   : > { %v9076_v19 = vld [vmem:[%s10886_s5 + $0x78] sm:$0xff]  }
0x26d2   : > { %8780 = vmatmul.mubr.msk.bf16.vlgmr.msra.gmra.mrb[140].mxu1 %vm2464_vm2, %v5489_v10 }
0x26d3   : > { %8790 = vmatpush3.bf16.msra.mxu1 %v9073_v6  ;;  %8793 = vmatprep.mubr.msk.bf16.mxu1 %vm9254_vm0, %v9253_v1  ;;  %v9075_v6 = vld [vmem:[%s10886_s5 + $0x70] sm:$0xff]  }
0x26d4   : > { %8791 = vmatprep.subr.bf16.mxu1 %v9253_v1 }
0x26d5   : > { %v5579_v4 = vpop.f32.mrb[148].mxu0 }
0x26d6   : > { %v8787_v12 = vpop.f32.mrb[149].mxu0 }
0x26d7   : > { %8792 = vmatpush3.bf16.msra.mxu1 %v9074_v2  ;;  %v5582_v17 = vpop.f32.mrb[150].mxu0 }
0x26d8   : > { %v8788_v20 = vpop.f32.mrb[151].mxu0  ;;  %8803 = vmatprep.subr.bf16.mxu1 %v9253_v1 }
0x26da   : > { %8794 = vmatmul.mubr.msk.bf16.vlgmr.msra.gmra.mrb[144].mxu1 %vm830_vm1, %v10256_v46 }
0x26db   : > { %8804 = vmatpush3.bf16.msra.mxu1 %v5056_v51  ;;  %8805 = vmatprep.mubr.msk.bf16.mxu1 %vm9254_vm0, %v9253_v1 }
0x26dc   : > { %8815 = vmatprep.subr.bf16.mxu1 %v9253_v1 }
0x27a5   : > { %v5532_v22 = vpop.f32.mrb[140].mxu1 }
0x27a6   : > { %v10482_v58 = vadd.f32 %v5579_v4, %v5532_v22  ;;  %v8781_v62 = vpop.f32.mrb[141].mxu1 }
0x27a7   : > { %v5535_v9 = vpop.f32.mrb[142].mxu1 }
0x27a8   : > { %v10484_v7 = vadd.f32 %v5582_v17, %v5535_v9  ;;  %v8782_v26 = vpop.f32.mrb[143].mxu1 }
0x27ad   : > { %v5645_v34 = vpop.f32.mrb[144].mxu1 }
0x27ae   : > { %v8795_v60 = vpop.f32.mrb[145].mxu1  ;;  %v5646_v51 = vadd.f32 %v7875_v28, %v5645_v34 }
0x27af   : > { %v5648_v49 = vpop.f32.mrb[146].mxu1 }
0x27b0   : > { %v5649_v30 = vadd.f32 %v7875_v28, %v5648_v49  ;;  %v8796_v63 = vpop.f32.mrb[147].mxu1 }
0x27b2   : > { %v5652_v52 = vpack.c.bf16 %v5649_v30, %v5646_v51 }
0x27b4   : > { %8800 = vmatmul.mubr.msk.bf16.vlgmr.msra.gmra.mrb[152].mxu0 %vm2464_vm2, %v5652_v52 }
0x27b5   : > { %8811 = vmatprep.mubr.msk.bf16.mxu0 %vm9254_vm0, %v9253_v1  ;;  %8810 = vmatpush3.bf16.msra.mxu0 %v5774_v56 }
0x27b6   : > { %8823 = vmatprep.subr.bf16.mxu0 %v9253_v1 }
0x2887   : > { %v5693_v40 = vpop.f32.mrb[152].mxu0 }
0x2888   : > { %v8801_v35 = vpop.f32.mrb[153].mxu0  ;;  %v5700_v18 = vsel %vm2512_vm3, %v5693_v40, -inf }
0x2889   : > { %5701 = vmax.xlane.f32.xlu0 %v5700_v18  ;;  %v5696_v39 = vpop.f32.mrb[154].mxu0 }
0x288a   : > { %v8802_v41 = vpop.f32.mrb[155].mxu0  ;;  %v5703_v45 = vsel %vm2512_vm3, %v5696_v39, -inf }
0x288b   : > { %5704 = vmax.xlane.f32.xlu1 %v5703_v45 }
0x2916   : > { %v5702_v48 = vpop.xlane.xlu0 %5701 }
0x2917   : > { %v5706_v55 = vsub.f32 %v5693_v40, %v5702_v48 }
0x2918   : > { %v5705_v53 = vpop.xlane.xlu1 %5704 }
0x2919   : > { %v5708_v61 = vmul.f32 1.442695, %v5706_v55  ;;  %v5707_v54 = vsub.f32 %v5696_v39, %v5705_v53 }
0x291b   : > { %9183 = vpow2.f32 %v5708_v61  ;;  %v5710_v37 = vmul.f32 1.442695, %v5707_v54  ;;  %v7894_v54 = vld [vmem:[%s10890_s0 + $0x1c] sm:$0xf] }
0x291d   : > { %9185 = vpow2.f32 %v5710_v37  ;;  %v6007_v37 = vsel %vm2769_vm4, %v7894_v54, 0 }
0x2925   : > { %v9184_v31 = vpop.eup %9183 }
0x2926   : > { %v5712_v13 = vsel %vm2512_vm3, %v9184_v31, 0.0 }
0x2927   : > { %v9186_v36 = vpop.eup %9185  ;;  %5713 = vadd.xlane.f32.xlu0 %v5712_v13 }
0x2928   : > { %v5715_v8 = vsel %vm2512_vm3, %v9186_v36, 0.0 }
0x2929   : > { %5716 = vadd.xlane.f32.xlu1 %v5715_v8 }
0x29b4   : > { %v5714_v14 = vpop.xlane.xlu0 %5713 }
0x29b5   : > { %9187 = vrcp.f32 %v5714_v14 }
0x29b6   : > { %v5717_v32 = vpop.xlane.xlu1 %5716 }
0x29b7   : > { %9189 = vrcp.f32 %v5717_v32  ;;  %v7498_v32 = vld [vmem:[%s10849_s15 + $0x4] ss:$0 sm:$0xff] }
0x29bf   : > { %v9188_v16 = vpop.eup %9187 }
0x29c0   : > { %v5720_v3 = vmul.f32 %v9188_v16, %v9184_v31  ;;  %v1133_v16 = vadd.f32 %v7498_v32, %v9723_v0  ;;  %v7897_v0 = vld [vmem:[%s10844_s10 + $0x1] ss:$0 sm:$0xff] }
0x29c1   : > { %v9190_v15 = vpop.eup %9189 }
0x29c2   : > { %v5721_v11 = vmul.f32 %v9190_v15, %v9186_v36 }
0x29c4   : > { %v5722_v10 = vpack.c.bf16 %v5721_v11, %v5720_v3  ;;  %v1138_v3 = vpack.c.bf16 %v1133_v16, %v1133_v16 }
0x29c6   : > { %8806 = vmatmul.mubr.msk.bf16.vlgmr.msra.gmra.mrb[148].mxu1 %vm2512_vm3, %v5722_v10 }
0x29c7   : > { %8816 = vmatpush3.bf16.msra.mxu1 %v9075_v6  ;;  %8819 = vmatprep.mubr.msk.bf16.mxu1 %vm9254_vm0, %v9253_v1 }
0x29c8   : > { %8817 = vmatprep.subr.bf16.mxu1 %v9253_v1 }
0x29cb   : > { %8818 = vmatpush3.bf16.msra.mxu1 %v9076_v19 }
0x29cc   : > { %8829 = vmatprep.subr.bf16.mxu1 %v9253_v1 }
0x29ce   : > { %8820 = vmatmul.mubr.msk.bf16.vlgmr.msra.gmra.mrb[152].mxu1 %vm830_vm1, %v10256_v46  ;;  %v5890_v46 = vsel %vm2464_vm2, %v4855_v50, 0 }
0x29cf   : > { %8830 = vmatpush3.bf16.msra.mxu1 %v5123_v27  ;;  %8831 = vmatprep.mubr.msk.bf16.mxu1 %vm9254_vm0, %v9253_v1 }
0x29d0   : > { %8841 = vmatprep.subr.bf16.mxu1 %v9253_v1 }
0x2a99   : > { %v5760_v2 = vpop.f32.mrb[148].mxu1 }
0x2a9a   : > { %v8807_v4 = vpop.f32.mrb[149].mxu1 }
0x2a9b   : > { %v5763_v12 = vpop.f32.mrb[150].mxu1 }
0x2a9c   : > { %v5767_v17 = vpack.c.bf16 %v5763_v12, %v5760_v2  ;;  %v8808_v20 = vpop.f32.mrb[151].mxu1  ;;  %v6185_v2 = vsel %vm2464_vm2, %v1138_v3, 0 }
0x2a9e   : > { %8812 = vmatmul.mubr.msk.bf16.vlgmr.msra.gmra.mrb[156].mxu0 %vm2464_vm2, %v5767_v17 }
0x2a9f   : > { %8824 = vmatpush3.bf16.xpose.msra.mxu0 %v5890_v46  ;;  %8825 = vmatprep.mubr.msk.bf16.mxu0 %vm9254_vm0, %v9253_v1 }
0x2aa0   : > { %8835 = vmatprep.subr.bf16.mxu0 %v9253_v1 }
0x2aa1   : > { %v5878_v25 = vpop.f32.mrb[152].mxu1 }
0x2aa2   : > { %v8821_v27 = vpop.f32.mrb[153].mxu1  ;;  %v5879_v62 = vadd.f32 %v7888_v23, %v5878_v25 }
0x2aa3   : > { %v5881_v22 = vpop.f32.mrb[154].mxu1 }
0x2aa4   : > { %v5882_v9 = vadd.f32 %v7888_v23, %v5881_v22  ;;  %v8822_v26 = vpop.f32.mrb[155].mxu1 }
0x2aa6   : > { %v5885_v28 = vpack.c.bf16 %v5882_v9, %v5879_v62 }
0x2aa8   : > { %8826 = vmatmul.mubr.msk.bf16.vlgmr.msra.gmra.mrb[160].mxu0 %vm2464_vm2, %v5885_v28 }
0x2aa9   : > { %8837 = vmatprep.mubr.msk.bf16.mxu0 %vm9254_vm0, %v9253_v1  ;;  %8836 = vmatpush3.bf16.msra.mxu0 %v6007_v37  ;;  %v7901_v37 = vld [vmem:[%s10858_s24 + $0x3] ss:$0 sm:$0xff] }
0x2aaa   : > { %8849 = vmatprep.subr.bf16.mxu0 %v9253_v1 }
0x2b71   : > { %v5810_v57 = vpop.f32.mrb[156].mxu0 }
0x2b72   : > { %v5817_v59 = vadd.f32 %v5810_v57, %v10482_v58  ;;  %v8813_v50 = vpop.f32.mrb[157].mxu0 }
0x2b73   : > { %v5813_v34 = vpop.f32.mrb[158].mxu0 }
0x2b74   : > { %v5818_v60 = vadd.f32 %v5813_v34, %v10484_v7  ;;  %v8814_v49 = vpop.f32.mrb[159].mxu0 }
0x2b7b   : > { %v5926_v51 = vpop.f32.mrb[160].mxu0 }
0x2b7c   : > { %v8827_v30 = vpop.f32.mrb[161].mxu0  ;;  %v5933_v63 = vsel %vm2512_vm3, %v5926_v51, -inf }
0x2b7d   : > { %5934 = vmax.xlane.f32.xlu0 %v5933_v63  ;;  %v5929_v52 = vpop.f32.mrb[162].mxu0  ;;  %v9078_v63 = vld [vmem:[%s10845_s11 + $0x48] sm:$0xff]  }
0x2b7e   : > { %v8828_v40 = vpop.f32.mrb[163].mxu0  ;;  %v5936_v35 = vsel %vm2512_vm3, %v5929_v52, -inf }
0x2b7f   : > { %5937 = vmax.xlane.f32.xlu1 %v5936_v35 }
0x2c0a   : > { %v5935_v18 = vpop.xlane.xlu0 %5934 }
0x2c0b   : > { %v5939_v39 = vsub.f32 %v5926_v51, %v5935_v18 }
0x2c0c   : > { %v5938_v41 = vpop.xlane.xlu1 %5937 }
0x2c0d   : > { %v5941_v45 = vmul.f32 1.442695, %v5939_v39  ;;  %v5940_v58 = vsub.f32 %v5929_v52, %v5938_v41 }
0x2c0f   : > { %9191 = vpow2.f32 %v5941_v45  ;;  %v5943_v48 = vmul.f32 1.442695, %v5940_v58  ;;  %v7565_v58 = vld [vmem:[%s10850_s16 + $0x4] ss:$0 sm:$0xff] }
0x2c11   : > { %9193 = vpow2.f32 %v5943_v48  ;;  %v7900_v48 = vld [vmem:[%s10857_s23 + $0x3] ss:$0 sm:$0xff] }
0x2c19   : > { %v9192_v7 = vpop.eup %9191 }
0x2c1a   : > { %v5945_v55 = vsel %vm2512_vm3, %v9192_v7, 0.0 }
0x2c1b   : > { %v9194_v53 = vpop.eup %9193  ;;  %5946 = vadd.xlane.f32.xlu0 %v5945_v55 }
0x2c1c   : > { %v5948_v61 = vsel %vm2512_vm3, %v9194_v53, 0.0 }
0x2c1d   : > { %5949 = vadd.xlane.f32.xlu1 %v5948_v61 }
0x2ca8   : > { %v5947_v31 = vpop.xlane.xlu0 %5946 }
0x2ca9   : > { %9195 = vrcp.f32 %v5947_v31 }
0x2caa   : > { %v5950_v13 = vpop.xlane.xlu1 %5949 }
0x2cab   : > { %9197 = vrcp.f32 %v5950_v13 }
0x2cb3   : > { %v9196_v36 = vpop.eup %9195 }
0x2cb4   : > { %v5953_v21 = vmul.f32 %v9196_v36, %v9192_v7 }
0x2cb5   : > { %v9198_v8 = vpop.eup %9197 }
0x2cb6   : > { %v5954_v56 = vmul.f32 %v9198_v8, %v9194_v53  ;;  %v1659_v53 = vadd.f32 %v7565_v58, %v9737_v29  ;;  %v7907_v29 = vld [vmem:[%s10848_s14 + $0x4] ss:$0 sm:$0xff] }
0x2cb8   : > { %v5955_v14 = vpack.c.bf16 %v5954_v56, %v5953_v21  ;;  %v1664_v13 = vpack.c.bf16 %v1659_v53, %v1659_v53 }
0x2cba   : > { %8832 = vmatmul.mubr.msk.bf16.vlgmr.msra.gmra.mrb[156].mxu1 %vm2512_vm3, %v5955_v14  ;;  %v6255_v56 = vsel %vm2769_vm4, %v1664_v13, 0 }
0x2cbb   : > { %8845 = vmatprep.mubr.msk.bf16.mxu1 %vm9254_vm0, %v9253_v1 }
0x2d8d   : > { %v5993_v15 = vpop.f32.mrb[156].mxu1 }
0x2d8e   : > { %v8833_v11 = vpop.f32.mrb[157].mxu1 }
0x2d8f   : > { %v5996_v6 = vpop.f32.mrb[158].mxu1 }
0x2d90   : > { %v6000_v10 = vpack.c.bf16 %v5996_v6, %v5993_v15  ;;  %v8834_v19 = vpop.f32.mrb[159].mxu1  ;;  %v7574_v6 = vld [vmem:[%s10850_s16 + $0x5] ss:$0 sm:$0xff] }
0x2d92   : > { %8838 = vmatmul.mubr.msk.bf16.vlgmr.msra.gmra.mrb[164].mxu0 %vm2464_vm2, %v6000_v10  ;;  %v9079_v10 = vld [vmem:[%s10845_s11 + $0x50] sm:$0xff]  }
0x2d93   : > { %8850 = vmatpush3.bf16.xpose.msra.mxu0 %v6185_v2  ;;  %8851 = vmatprep.mubr.msk.bf16.mxu0 %vm9254_vm0, %v9253_v1  ;;  %v1725_v2 = vadd.f32 %v7574_v6, %v9787_v43 }
0x2d94   : > { %8861 = vmatprep.subr.bf16.mxu0 %v9253_v1 }
0x2e65   : > { %v6043_v4 = vpop.f32.mrb[164].mxu0 }
0x2e66   : > { %v6050_v12 = vadd.f32 %v6043_v4, %v5817_v59  ;;  %v8839_v17 = vpop.f32.mrb[165].mxu0  ;;  %v9080_v4 = vld [vmem:[%s10845_s11 + $0x58] sm:$0xff]  }
0x2e67   : > { %v6046_v20 = vpop.f32.mrb[166].mxu0 }
0x2e68   : > { %v6060_v46 = vadd.f32 %v7897_v0, %v6050_v12  ;;  %v6051_v23 = vadd.f32 %v6046_v20, %v5818_v60  ;;  %v8840_v25 = vpop.f32.mrb[167].mxu0 }
0x2e6a   : > { %v6061_v27 = vadd.f32 %v7897_v0, %v6051_v23  ;;  %v6062_v22 = vadd.f32 %v6060_v46, %v10244_v42  ;;  %v1730_v0 = vpack.c.bf16 %v1725_v2, %v1725_v2 }
0x2e6c   : > { %v6068_v62 = vsel %vm830_vm1, %v6062_v22, 0.0  ;;  %v6063_v9 = vadd.f32 %v6061_v27, %v10246_v44  ;;  %v9077_v44 = vld [vmem:[%s10845_s11 + $0x40] sm:$0xff]   ;;  %v6442_v12 = vsel %vm2769_vm4, %v1730_v0, 0 }
0x2e6d   : > { %6069 = vadd.xlane.f32.xlu0 %v6068_v62  ;;  %8842 = vmatpush3.bf16.msra.mxu1 %v9077_v44  ;;  %v7919_v27 = vld [vmem:[%s10848_s14 + $0x5] ss:$0 sm:$0xff] }
0x2e6e   : > { %v6071_v26 = vsel %vm830_vm1, %v6063_v9, 0.0  ;;  %8843 = vmatprep.subr.bf16.mxu1 %v9253_v1 }
0x2e6f   : > { %6072 = vadd.xlane.f32.xlu1 %v6071_v26 }
0x2e71   : > { %8844 = vmatpush3.bf16.msra.mxu1 %v9078_v63 }
0x2e72   : > { %8855 = vmatprep.subr.bf16.mxu1 %v9253_v1 }
0x2efa   : > { %v6070_v28 = vpop.xlane.xlu0 %6069 }
0x2efb   : > { %v6074_v57 = vmul.f32 0.03125, %v6070_v28 }
0x2efc   : > { %v6073_v50 = vpop.xlane.xlu1 %6072 }
0x2efd   : > { %v6076_v59 = vsub.f32 %v6062_v22, %v6074_v57  ;;  %v6075_v34 = vmul.f32 0.03125, %v6073_v50 }
0x2eff   : > { %v6077_v49 = vsub.f32 %v6063_v9, %v6075_v34  ;;  %v6078_v51 = vmul.f32 %v6076_v59, %v6076_v59 }
0x2f01   : > { %v6080_v60 = vsel %vm830_vm1, %v6078_v51, 0.0  ;;  %v6079_v30 = vmul.f32 %v6077_v49, %v6077_v49 }
0x2f02   : > { %6081 = vadd.xlane.f32.xlu0 %v6080_v60 }
0x2f03   : > { %v6083_v42 = vsel %vm830_vm1, %v6079_v30, 0.0 }
0x2f04   : > { %6084 = vadd.xlane.f32.xlu1 %v6083_v42 }
0x2f8f   : > { %v6082_v52 = vpop.xlane.xlu0 %6081 }
0x2f90   : > { %v6086_v40 = vmul.f32 0.03125, %v6082_v52 }
0x2f91   : > { %v6085_v35 = vpop.xlane.xlu1 %6084 }
0x2f92   : > { %v6088_v18 = vadd.f32 1e-05, %v6086_v40  ;;  %v6087_v39 = vmul.f32 0.03125, %v6085_v35 }
0x2f94   : > { %9199 = vrsqrt.f32 %v6088_v18  ;;  %v6089_v41 = vadd.f32 1e-05, %v6087_v39  ;;  %v7507_v18 = vld [vmem:[%s10849_s15 + $0x5] ss:$0 sm:$0xff] }
0x2f95   : > { %v1199_v39 = vadd.f32 %v7507_v18, %v9735_v24 }
0x2f96   : > { %9201 = vrsqrt.f32 %v6089_v41 }
0x2f97   : > { %v1204_v58 = vpack.c.bf16 %v1199_v39, %v1199_v39 }
0x2f99   : > { %v6372_v53 = vsel %vm2464_vm2, %v1204_v58, 0 }
0x2f9e   : > { %v9200_v45 = vpop.eup %9199 }
0x2f9f   : > { %v6092_v7 = vmul.f32 %v9200_v45, %v6076_v59 }
0x2fa0   : > { %v9202_v55 = vpop.eup %9201 }
0x2fa1   : > { %v6100_v61 = vmul.f32 %v7900_v48, %v6092_v7  ;;  %v6093_v54 = vmul.f32 %v9202_v55, %v6077_v49 }
0x2fa3   : > { %v6101_v31 = vmul.f32 %v7900_v48, %v6093_v54  ;;  %v10584_v36 = vadd.f32 %v7901_v37, %v6100_v61 }
0x2fa5   : > { %v10586_v8 = vadd.f32 %v7901_v37, %v6101_v31 }
0x2fa7   : > { %v10590_v21 = vpack.c.bf16 %v10586_v8, %v10584_v36 }
0x2fa9   : > { %8846 = vmatmul.mubr.msk.bf16.vlgmr.msra.gmra.mrb[160].mxu1 %vm830_vm1, %v10590_v21 }
0x2faa   : > { %8856 = vmatpush3.bf16.msra.mxu1 %v6255_v56  ;;  %8857 = vmatprep.mubr.msk.bf16.mxu1 %vm9254_vm0, %v9253_v1 }
0x2fab   : > { %8869 = vmatprep.subr.bf16.mxu1 %v9253_v1 }
0x307c   : > { %v6173_v14 = vpop.f32.mrb[160].mxu1 }
0x307d   : > { %v8847_v32 = vpop.f32.mrb[161].mxu1  ;;  %v6174_v15 = vadd.f32 %v7907_v29, %v6173_v14 }
0x307e   : > { %v6176_v16 = vpop.f32.mrb[162].mxu1 }
0x307f   : > { %v6177_v3 = vadd.f32 %v7907_v29, %v6176_v16  ;;  %v8848_v11 = vpop.f32.mrb[163].mxu1 }
0x3081   : > { %v6180_v19 = vpack.c.bf16 %v6177_v3, %v6174_v15 }
0x3083   : > { %8852 = vmatmul.mubr.msk.bf16.vlgmr.msra.gmra.mrb[168].mxu0 %vm2464_vm2, %v6180_v19 }
0x3084   : > { %8862 = vmatpush3.bf16.msra.mxu0 %v9079_v10  ;;  %8865 = vmatprep.mubr.msk.bf16.mxu0 %vm9254_vm0, %v9253_v1 }
0x3085   : > { %8863 = vmatprep.subr.bf16.mxu0 %v9253_v1 }
0x3088   : > { %8864 = vmatpush3.bf16.msra.mxu0 %v9080_v4 }
0x3089   : > { %8875 = vmatprep.subr.bf16.mxu0 %v9253_v1 }
0x308b   : > { %8866 = vmatmul.mubr.msk.bf16.vlgmr.msra.gmra.mrb[172].mxu0 %vm830_vm1, %v10590_v21 }
0x308c   : > { %8876 = vmatpush3.bf16.msra.mxu0 %v6442_v12  ;;  %8877 = vmatprep.mubr.msk.bf16.mxu0 %vm9254_vm0, %v9253_v1 }
0x308d   : > { %8887 = vmatprep.subr.bf16.mxu0 %v9253_v1 }
0x3156   : > { %v6221_v43 = vpop.f32.mrb[168].mxu0 }
0x3157   : > { %v8853_v17 = vpop.f32.mrb[169].mxu0  ;;  %v6228_v20 = vsel %vm2464_vm2, %v6221_v43, -inf }
0x3158   : > { %6229 = vmax.xlane.f32.xlu0 %v6228_v20  ;;  %v6224_v46 = vpop.f32.mrb[170].mxu0 }
0x3159   : > { %v8854_v23 = vpop.f32.mrb[171].mxu0  ;;  %v6231_v25 = vsel %vm2464_vm2, %v6224_v46, -inf }
0x315a   : > { %6232 = vmax.xlane.f32.xlu1 %v6231_v25 }
0x315e   : > { %v6360_v22 = vpop.f32.mrb[172].mxu0 }
0x315f   : > { %v8867_v62 = vpop.f32.mrb[173].mxu0  ;;  %v6361_v26 = vadd.f32 %v7919_v27, %v6360_v22 }
0x3160   : > { %v6363_v9 = vpop.f32.mrb[174].mxu0 }
0x3161   : > { %v6364_v28 = vadd.f32 %v7919_v27, %v6363_v9  ;;  %v8868_v57 = vpop.f32.mrb[175].mxu0  ;;  %v7913_v27 = vld [vmem:[%s10851_s17 + $0x10] sm:$0xf]  ;;  %v7516_v9 = vld [vmem:[%s10849_s15 + $0x6] ss:$0 sm:$0xff] }
0x3162   : > { %v1265_v57 = vadd.f32 %v7516_v9, %v9725_v5  ;;  %v7583_v5 = vld [vmem:[%s10850_s16 + $0x6] ss:$0 sm:$0xff] }
0x3163   : > { %v6367_v50 = vpack.c.bf16 %v6364_v28, %v6361_v26  ;;  %v6539_v28 = vsel %vm2769_vm4, %v7913_v27, 0 }
0x31e5   : > { %v6230_v59 = vpop.xlane.xlu0 %6229 }
0x31e6   : > { %v6234_v34 = vsub.f32 %v6221_v43, %v6230_v59  ;;  %v7925_v43 = vld [vmem:[%s10851_s17 + $0x14] sm:$0xf] }
0x31e7   : > { %v6233_v49 = vpop.xlane.xlu1 %6232  ;;  %v6492_v17 = vsel %vm2769_vm4, %v7925_v43, 0 }
0x31e8   : > { %v6236_v51 = vmul.f32 1.442695, %v6234_v34  ;;  %v6235_v60 = vsub.f32 %v6224_v46, %v6233_v49 }
0x31ea   : > { %9203 = vpow2.f32 %v6236_v51  ;;  %v6238_v30 = vmul.f32 1.442695, %v6235_v60  ;;  %v9081_v60 = vld [vmem:[%s10845_s11 + $0x60] sm:$0xff]  }
0x31ec   : > { %9205 = vpow2.f32 %v6238_v30 }
0x31f4   : > { %v9204_v42 = vpop.eup %9203 }
0x31f5   : > { %v6240_v44 = vsel %vm2464_vm2, %v9204_v42, 0.0 }
0x31f6   : > { %v9206_v63 = vpop.eup %9205  ;;  %6241 = vadd.xlane.f32.xlu0 %v6240_v44  ;;  %v1791_v44 = vadd.f32 %v7583_v5, %v9741_v38 }
0x31f7   : > { %v6243_v52 = vsel %vm2464_vm2, %v9206_v63, 0.0 }
0x31f8   : > { %6244 = vadd.xlane.f32.xlu1 %v6243_v52 }
0x3283   : > { %v6242_v40 = vpop.xlane.xlu0 %6241 }
0x3284   : > { %9207 = vrcp.f32 %v6242_v40  ;;  %v1796_v40 = vpack.c.bf16 %v1791_v44, %v1791_v44 }
0x3285   : > { %v6245_v35 = vpop.xlane.xlu1 %6244 }
0x3286   : > { %9209 = vrcp.f32 %v6245_v35  ;;  %v6723_v38 = vsel %vm2769_vm4, %v1796_v40, 0 }
0x328e   : > { %v9208_v41 = vpop.eup %9207 }
0x328f   : > { %v6248_v48 = vmul.f32 %v9208_v41, %v9204_v42 }
0x3290   : > { %v9210_v45 = vpop.eup %9209 }
0x3291   : > { %v6249_v7 = vmul.f32 %v9210_v45, %v9206_v63  ;;  %v9082_v63 = vld [vmem:[%s10845_s11 + $0x68] sm:$0xff]  }
0x3293   : > { %v6250_v55 = vpack.c.bf16 %v6249_v7, %v6248_v48 }
0x3295   : > { %8858 = vmatmul.mubr.msk.bf16.vlgmr.msra.gmra.mrb[164].mxu1 %vm2464_vm2, %v6250_v55 }
0x3296   : > { %8870 = vmatpush3.bf16.xpose.msra.mxu1 %v6372_v53  ;;  %8871 = vmatprep.mubr.msk.bf16.mxu1 %vm9254_vm0, %v9253_v1  ;;  %v7933_v53 = vld [vmem:[%s10848_s14 + $0x6] ss:$0 sm:$0xff] }
0x3297   : > { %8881 = vmatprep.subr.bf16.mxu1 %v9253_v1 }
0x329d   : > { %8872 = vmatmul.mubr.msk.bf16.vlgmr.msra.gmra.mrb[168].mxu1 %vm2464_vm2, %v6367_v50  ;;  %v1270_v50 = vpack.c.bf16 %v1265_v57, %v1265_v57 }
0x329e   : > { %8883 = vmatprep.mubr.msk.bf16.mxu1 %vm9254_vm0, %v9253_v1  ;;  %8882 = vmatpush3.bf16.msra.mxu1 %v6492_v17 }
0x329f   : > { %8893 = vmatprep.subr.bf16.mxu1 %v9253_v1  ;;  %v6653_v59 = vsel %vm2464_vm2, %v1270_v50, 0 }
0x3368   : > { %v6291_v24 = vpop.f32.mrb[164].mxu1 }
0x3369   : > { %v8859_v61 = vpop.f32.mrb[165].mxu1 }
0x336a   : > { %v6294_v54 = vpop.f32.mrb[166].mxu1 }
0x336b   : > { %v6298_v37 = vpack.c.bf16 %v6294_v54, %v6291_v24  ;;  %v8860_v31 = vpop.f32.mrb[167].mxu1 }
0x3370   : > { %v6408_v13 = vpop.f32.mrb[168].mxu1 }
0x3371   : > { %v8873_v56 = vpop.f32.mrb[169].mxu1  ;;  %v6415_v29 = vsel %vm2464_vm2, %v6408_v13, -inf }
0x3372   : > { %6416 = vmax.xlane.f32.xlu0 %v6415_v29  ;;  %v6411_v14 = vpop.f32.mrb[170].mxu1 }
0x3373   : > { %v8874_v32 = vpop.f32.mrb[171].mxu1  ;;  %v6418_v16 = vsel %vm2464_vm2, %v6411_v14, -inf }
0x3374   : > { %6419 = vmax.xlane.f32.xlu1 %v6418_v16 }
0x33ff   : > { %v6417_v15 = vpop.xlane.xlu0 %6416 }
0x3400   : > { %v6421_v3 = vsub.f32 %v6408_v13, %v6417_v15 }
0x3401   : > { %v6420_v11 = vpop.xlane.xlu1 %6419 }
0x3402   : > { %v6423_v6 = vmul.f32 1.442695, %v6421_v3  ;;  %v6422_v10 = vsub.f32 %v6411_v14, %v6420_v11 }
0x3404   : > { %9211 = vpow2.f32 %v6423_v6  ;;  %v6425_v19 = vmul.f32 1.442695, %v6422_v10 }
0x3406   : > { %9213 = vpow2.f32 %v6425_v19 }
0x340e   : > { %v9212_v2 = vpop.eup %9211 }
0x340f   : > { %v6427_v4 = vsel %vm2464_vm2, %v9212_v2, 0.0 }
0x3410   : > { %v9214_v0 = vpop.eup %9213  ;;  %6428 = vadd.xlane.f32.xlu0 %v6427_v4 }
0x3411   : > { %v6430_v12 = vsel %vm2464_vm2, %v9214_v0, 0.0 }
0x3412   : > { %6431 = vadd.xlane.f32.xlu1 %v6430_v12 }
0x349d   : > { %v6429_v20 = vpop.xlane.xlu0 %6428 }
0x349e   : > { %9215 = vrcp.f32 %v6429_v20  ;;  %v7939_v20 = vld [vmem:[%s10851_s17 + $0x18] sm:$0xf] }
0x349f   : > { %v6432_v46 = vpop.xlane.xlu1 %6431 }
0x34a0   : > { %9217 = vrcp.f32 %v6432_v46  ;;  %v6773_v46 = vsel %vm2769_vm4, %v7939_v20, 0 }
0x34a8   : > { %v9216_v23 = vpop.eup %9215 }
0x34a9   : > { %v6435_v22 = vmul.f32 %v9216_v23, %v9212_v2 }
0x34aa   : > { %v9218_v25 = vpop.eup %9217 }
0x34ab   : > { %v6436_v62 = vmul.f32 %v9218_v25, %v9214_v0 }
0x34ad   : > { %v6437_v26 = vpack.c.bf16 %v6436_v62, %v6435_v22 }
0x34af   : > { %8878 = vmatmul.mubr.msk.bf16.vlgmr.msra.gmra.mrb[176].mxu0 %vm2464_vm2, %v6437_v26  ;;  %v7592_v26 = vld [vmem:[%s10850_s16 + $0x7] ss:$0 sm:$0xff] }
0x34b0   : > { %8888 = vmatpush3.bf16.msra.mxu0 %v6539_v28  ;;  %8889 = vmatprep.mubr.msk.bf16.mxu0 %vm9254_vm0, %v9253_v1  ;;  %v9083_v28 = vld [vmem:[%s10845_s11 + $0x70] sm:$0xff]   ;;  %v1857_v50 = vadd.f32 %v7592_v26, %v9794_v47  ;;  %v7525_v47 = vld [vmem:[%s10849_s15 + $0x7] ss:$0 sm:$0xff]  ;;  %v7955_v26 = vld [vmem:[%s10852_s18 + $0x1] ss:$0 sm:$0xff] }
0x34b1   : > { %8901 = vmatprep.subr.bf16.mxu0 %v9253_v1  ;;  %v1331_v5 = vadd.f32 %v7525_v47, %v9739_v33  ;;  %v7946_v33 = vld [vmem:[%s10848_s14 + $0x7] ss:$0 sm:$0xff] }
0x34b7   : > { %8890 = vmatmul.mubr.msk.bf16.vlgmr.msra.gmra.mrb[180].mxu0 %vm2464_vm2, %v6298_v37 }
0x34b8   : > { %8903 = vmatprep.mubr.msk.bf16.mxu0 %vm9254_vm0, %v9253_v1 }
0x34b9   : > { %8902 = vmatpush3.bf16.xpose.msra.mxu0 %v6653_v59  ;;  %v9084_v59 = vld [vmem:[%s10845_s11 + $0x78] sm:$0xff]  }
0x34ba   : > { %8913 = vmatprep.subr.bf16.mxu0 %v9253_v1 }
0x3582   : > { %v6478_v34 = vpop.f32.mrb[176].mxu0 }
0x3583   : > { %v8879_v49 = vpop.f32.mrb[177].mxu0 }
0x3584   : > { %v6481_v51 = vpop.f32.mrb[178].mxu0 }
0x3585   : > { %v6485_v30 = vpack.c.bf16 %v6481_v51, %v6478_v34  ;;  %v8880_v42 = vpop.f32.mrb[179].mxu0  ;;  %v1862_v34 = vpack.c.bf16 %v1857_v50, %v1857_v50 }
0x3587   : > { %8884 = vmatmul.mubr.msk.bf16.vlgmr.msra.gmra.mrb[172].mxu1 %vm2464_vm2, %v6485_v30  ;;  %v6959_v49 = vsel %vm2769_vm4, %v1862_v34, 0 }
0x3588   : > { %8894 = vmatpush3.bf16.msra.mxu1 %v9081_v60  ;;  %8897 = vmatprep.mubr.msk.bf16.mxu1 %vm9254_vm0, %v9253_v1  ;;  %v1336_v60 = vpack.c.bf16 %v1331_v5, %v1331_v5 }
0x3589   : > { %8895 = vmatprep.subr.bf16.mxu1 %v9253_v1 }
0x358a   : > { %v6575_v52 = vpop.f32.mrb[180].mxu0 }
0x358b   : > { %v8891_v35 = vpop.f32.mrb[181].mxu0 }
0x358c   : > { %8896 = vmatpush3.bf16.msra.mxu1 %v9082_v63  ;;  %v6578_v18 = vpop.f32.mrb[182].mxu0 }
0x358d   : > { %v8892_v39 = vpop.f32.mrb[183].mxu0  ;;  %8907 = vmatprep.subr.bf16.mxu1 %v9253_v1 }
0x358f   : > { %8898 = vmatmul.mubr.msk.bf16.vlgmr.msra.gmra.mrb[176].mxu1 %vm830_vm1, %v10590_v21 }
0x3590   : > { %8908 = vmatpush3.bf16.msra.mxu1 %v6723_v38  ;;  %8909 = vmatprep.mubr.msk.bf16.mxu1 %vm9254_vm0, %v9253_v1 }
0x3591   : > { %8919 = vmatprep.subr.bf16.mxu1 %v9253_v1 }
0x365a   : > { %v6528_v41 = vpop.f32.mrb[172].mxu1 }
0x365b   : > { %v10688_v45 = vadd.f32 %v6575_v52, %v6528_v41  ;;  %v8885_v58 = vpop.f32.mrb[173].mxu1 }
0x365c   : > { %v6531_v48 = vpop.f32.mrb[174].mxu1 }
0x365d   : > { %v10690_v7 = vadd.f32 %v6578_v18, %v6531_v48  ;;  %v8886_v55 = vpop.f32.mrb[175].mxu1 }
0x3662   : > { %v6641_v24 = vpop.f32.mrb[176].mxu1 }
0x3663   : > { %v8899_v61 = vpop.f32.mrb[177].mxu1  ;;  %v6642_v37 = vadd.f32 %v7933_v53, %v6641_v24 }
0x3664   : > { %v6644_v54 = vpop.f32.mrb[178].mxu1 }
0x3665   : > { %v6645_v31 = vadd.f32 %v7933_v53, %v6644_v54  ;;  %v8900_v13 = vpop.f32.mrb[179].mxu1 }
0x3667   : > { %v6648_v56 = vpack.c.bf16 %v6645_v31, %v6642_v37 }
0x3669   : > { %8904 = vmatmul.mubr.msk.bf16.vlgmr.msra.gmra.mrb[184].mxu0 %vm2464_vm2, %v6648_v56 }
0x366a   : > { %8915 = vmatprep.mubr.msk.bf16.mxu0 %vm9254_vm0, %v9253_v1  ;;  %8914 = vmatpush3.bf16.msra.mxu0 %v6773_v46 }
0x366b   : > { %8927 = vmatprep.subr.bf16.mxu0 %v9253_v1 }
0x373c   : > { %v6689_v29 = vpop.f32.mrb[184].mxu0 }
0x373d   : > { %v8905_v14 = vpop.f32.mrb[185].mxu0  ;;  %v6696_v32 = vsel %vm2464_vm2, %v6689_v29, -inf }
0x373e   : > { %6697 = vmax.xlane.f32.xlu0 %v6696_v32  ;;  %v6692_v16 = vpop.f32.mrb[186].mxu0 }
0x373f   : > { %v8906_v15 = vpop.f32.mrb[187].mxu0  ;;  %v6699_v3 = vsel %vm2464_vm2, %v6692_v16, -inf }
0x3740   : > { %6700 = vmax.xlane.f32.xlu1 %v6699_v3 }
0x37cb   : > { %v6698_v11 = vpop.xlane.xlu0 %6697 }
0x37cc   : > { %v6702_v6 = vsub.f32 %v6689_v29, %v6698_v11 }
0x37cd   : > { %v6701_v10 = vpop.xlane.xlu1 %6700 }
0x37ce   : > { %v6704_v19 = vmul.f32 1.442695, %v6702_v6  ;;  %v6703_v2 = vsub.f32 %v6692_v16, %v6701_v10 }
0x37d0   : > { %9219 = vpow2.f32 %v6704_v19  ;;  %v6706_v4 = vmul.f32 1.442695, %v6703_v2  ;;  %v7952_v19 = vld [vmem:[%s10851_s17 + $0x1c] sm:$0xf] }
0x37d1   : > { %v7009_v2 = vsel %vm2769_vm4, %v7952_v19, 0 }
0x37d2   : > { %9221 = vpow2.f32 %v6706_v4 }
0x37da   : > { %v9220_v0 = vpop.eup %9219 }
0x37db   : > { %v6708_v12 = vsel %vm2464_vm2, %v9220_v0, 0.0 }
0x37dc   : > { %v9222_v43 = vpop.eup %9221  ;;  %6709 = vadd.xlane.f32.xlu0 %v6708_v12 }
0x37dd   : > { %v6711_v17 = vsel %vm2464_vm2, %v9222_v43, 0.0 }
0x37de   : > { %6712 = vadd.xlane.f32.xlu1 %v6711_v17 }
0x3869   : > { %v6710_v23 = vpop.xlane.xlu0 %6709 }
0x386a   : > { %9223 = vrcp.f32 %v6710_v23 }
0x386b   : > { %v6713_v25 = vpop.xlane.xlu1 %6712 }
0x386c   : > { %9225 = vrcp.f32 %v6713_v25 }
0x3874   : > { %v9224_v27 = vpop.eup %9223 }
0x3875   : > { %v6716_v62 = vmul.f32 %v9224_v27, %v9220_v0 }
0x3876   : > { %v9226_v22 = vpop.eup %9225 }
0x3877   : > { %v6717_v9 = vmul.f32 %v9226_v22, %v9222_v43 }
0x3879   : > { %v6718_v57 = vpack.c.bf16 %v6717_v9, %v6716_v62 }
0x387b   : > { %8910 = vmatmul.mubr.msk.bf16.vlgmr.msra.gmra.mrb[180].mxu1 %vm2464_vm2, %v6718_v57 }
0x387c   : > { %8920 = vmatpush3.bf16.msra.mxu1 %v9083_v28  ;;  %8923 = vmatprep.mubr.msk.bf16.mxu1 %vm9254_vm0, %v9253_v1 }
0x387d   : > { %8921 = vmatprep.subr.bf16.mxu1 %v9253_v1 }
0x3880   : > { %8922 = vmatpush3.bf16.msra.mxu1 %v9084_v59 }
0x3881   : > { %8933 = vmatprep.subr.bf16.mxu1 %v9253_v1 }
0x3883   : > { %8924 = vmatmul.mubr.msk.bf16.vlgmr.msra.gmra.mrb[184].mxu1 %vm830_vm1, %v10590_v21  ;;  %v6889_v21 = vsel %vm2464_vm2, %v1336_v60, 0 }
0x3884   : > { %8934 = vmatpush3.bf16.msra.mxu1 %v6959_v49  ;;  %8935 = vmatprep.mubr.msk.bf16.mxu1 %vm9254_vm0, %v9253_v1 }
0x3885   : > { %8945 = vmatprep.subr.bf16.mxu1 %v9253_v1 }
0x394e   : > { %v6759_v51 = vpop.f32.mrb[180].mxu1 }
0x394f   : > { %v8911_v30 = vpop.f32.mrb[181].mxu1 }
0x3950   : > { %v6762_v42 = vpop.f32.mrb[182].mxu1 }
0x3951   : > { %v6766_v44 = vpack.c.bf16 %v6762_v42, %v6759_v51  ;;  %v8912_v63 = vpop.f32.mrb[183].mxu1 }
0x3953   : > { %8916 = vmatmul.mubr.msk.bf16.vlgmr.msra.gmra.mrb[188].mxu0 %vm2464_vm2, %v6766_v44 }
0x3954   : > { %8928 = vmatpush3.bf16.xpose.msra.mxu0 %v6889_v21  ;;  %8929 = vmatprep.mubr.msk.bf16.mxu0 %vm9254_vm0, %v9253_v1 }
0x3955   : > { %8939 = vmatprep.subr.bf16.mxu0 %v9253_v1 }
0x3956   : > { %v6877_v52 = vpop.f32.mrb[184].mxu1 }
0x3957   : > { %v8925_v40 = vpop.f32.mrb[185].mxu1  ;;  %v6878_v18 = vadd.f32 %v7946_v33, %v6877_v52 }
0x3958   : > { %v6880_v35 = vpop.f32.mrb[186].mxu1 }
0x3959   : > { %v6881_v39 = vadd.f32 %v7946_v33, %v6880_v35  ;;  %v8926_v38 = vpop.f32.mrb[187].mxu1 }
0x395a   : > { %v9087_v38 = vld [vmem:[%s10855_s21 + $0x20] sm:$0xff]  }
0x395b   : > { %v6884_v41 = vpack.c.bf16 %v6881_v39, %v6878_v18  ;;  %v9086_v39 = vld [vmem:[%s10853_s19 + $0x18] sm:$0xff]  }
0x395d   : > { %8930 = vmatmul.mubr.msk.bf16.vlgmr.msra.gmra.mrb[192].mxu0 %vm2464_vm2, %v6884_v41  ;;  %v9088_v41 = vld [vmem:[%s10855_s21 + $0x28] sm:$0xff]  }
0x395e   : > { %8941 = vmatprep.mubr.msk.bf16.mxu0 %vm9254_vm0, %v9253_v1  ;;  %8940 = vmatpush3.bf16.msra.mxu0 %v7009_v2 }
0x395f   : > { %8953 = vmatprep.subr.bf16.mxu0 %v9253_v1 }
0x3a26   : > { %v6809_v58 = vpop.f32.mrb[188].mxu0 }
0x3a27   : > { %v6816_v48 = vadd.f32 %v6809_v58, %v10688_v45  ;;  %v8917_v55 = vpop.f32.mrb[189].mxu0 }
0x3a28   : > { %v6812_v53 = vpop.f32.mrb[190].mxu0 }
0x3a29   : > { %v6817_v24 = vadd.f32 %v6812_v53, %v10690_v7  ;;  %v8918_v61 = vpop.f32.mrb[191].mxu0 }
0x3a30   : > { %v6925_v54 = vpop.f32.mrb[192].mxu0 }
0x3a31   : > { %v8931_v37 = vpop.f32.mrb[193].mxu0  ;;  %v6932_v31 = vsel %vm2464_vm2, %v6925_v54, -inf }
0x3a32   : > { %6933 = vmax.xlane.f32.xlu0 %v6932_v31  ;;  %v6928_v13 = vpop.f32.mrb[194].mxu0  ;;  %v7958_v37 = vld [vmem:[%s10857_s23 + $0x4] ss:$0 sm:$0xff] }
0x3a33   : > { %v8932_v56 = vpop.f32.mrb[195].mxu0  ;;  %v6935_v29 = vsel %vm2464_vm2, %v6928_v13, -inf }
0x3a34   : > { %6936 = vmax.xlane.f32.xlu1 %v6935_v29 }
0x3abf   : > { %v6934_v14 = vpop.xlane.xlu0 %6933 }
0x3ac0   : > { %v6938_v32 = vsub.f32 %v6925_v54, %v6934_v14  ;;  %v7959_v14 = vld [vmem:[%s10858_s24 + $0x4] ss:$0 sm:$0xff] }
0x3ac1   : > { %v6937_v16 = vpop.xlane.xlu1 %6936 }
0x3ac2   : > { %v6940_v15 = vmul.f32 1.442695, %v6938_v32  ;;  %v6939_v45 = vsub.f32 %v6928_v13, %v6937_v16 }
0x3ac4   : > { %9227 = vpow2.f32 %v6940_v15  ;;  %v6942_v3 = vmul.f32 1.442695, %v6939_v45 }
0x3ac6   : > { %9229 = vpow2.f32 %v6942_v3  ;;  %v9089_v3 = vld [vmem:[%s10855_s21 + $0x30] sm:$0xff]  }
0x3ace   : > { %v9228_v7 = vpop.eup %9227 }
0x3acf   : > { %v6944_v11 = vsel %vm2464_vm2, %v9228_v7, 0.0 }
0x3ad0   : > { %v9230_v6 = vpop.eup %9229  ;;  %6945 = vadd.xlane.f32.xlu0 %v6944_v11  ;;  %v7965_v11 = vld [vmem:[%s10854_s20 + $0x1] ss:$0 sm:$0xff] }
0x3ad1   : > { %v6947_v10 = vsel %vm2464_vm2, %v9230_v6, 0.0 }
0x3ad2   : > { %6948 = vadd.xlane.f32.xlu1 %v6947_v10 }
0x3b5d   : > { %v6946_v4 = vpop.xlane.xlu0 %6945 }
0x3b5e   : > { %9231 = vrcp.f32 %v6946_v4 }
0x3b5f   : > { %v6949_v0 = vpop.xlane.xlu1 %6948 }
0x3b60   : > { %9233 = vrcp.f32 %v6949_v0 }
0x3b68   : > { %v9232_v12 = vpop.eup %9231 }
0x3b69   : > { %v6952_v17 = vmul.f32 %v9232_v12, %v9228_v7  ;;  %v9090_v7 = vld [vmem:[%s10855_s21 + $0x38] sm:$0xff]  }
0x3b6a   : > { %v9234_v43 = vpop.eup %9233 }
0x3b6b   : > { %v6953_v20 = vmul.f32 %v9234_v43, %v9230_v6 }
0x3b6d   : > { %v6954_v46 = vpack.c.bf16 %v6953_v20, %v6952_v17  ;;  %v7978_v20 = vld [vmem:[%s10856_s22 + $0x1] ss:$0 sm:$0xff] }
0x3b6f   : > { %8936 = vmatmul.mubr.msk.bf16.vlgmr.msra.gmra.mrb[188].mxu1 %vm2464_vm2, %v6954_v46 }
0x3b70   : > { %8949 = vmatprep.mubr.msk.bf16.mxu1 %vm9254_vm0, %v9253_v1 }
0x3c42   : > { %v6995_v23 = vpop.f32.mrb[188].mxu1 }
0x3c43   : > { %v8937_v25 = vpop.f32.mrb[189].mxu1 }
0x3c44   : > { %v6998_v27 = vpop.f32.mrb[190].mxu1 }
0x3c45   : > { %v7002_v22 = vpack.c.bf16 %v6998_v27, %v6995_v23  ;;  %v8938_v62 = vpop.f32.mrb[191].mxu1 }
0x3c47   : > { %8942 = vmatmul.mubr.msk.bf16.vlgmr.msra.gmra.mrb[196].mxu0 %vm2464_vm2, %v7002_v22 }
0x3c48   : > { %8961 = vmatprep.mubr.msk.bf16.mxu0 %vm9254_vm0, %v9253_v1  ;;  %8954 = vmatpush3.bf16.msra.mxu0 %v9087_v38 }
0x3c49   : > { %8955 = vmatprep.subr.bf16.mxu0 %v9253_v1 }
0x3c4c   : > { %8956 = vmatpush3.bf16.msra.mxu0 %v9088_v41 }
0x3c4d   : > { %8957 = vmatprep.subr.bf16.mxu0 %v9253_v1 }
0x3c50   : > { %8958 = vmatpush3.bf16.msra.mxu0 %v9089_v3 }
0x3c51   : > { %8959 = vmatprep.subr.bf16.mxu0 %v9253_v1 }
0x3c54   : > { %8960 = vmatpush3.bf16.msra.mxu0 %v9090_v7 }
0x3d1a   : > { %v7045_v9 = vpop.f32.mrb[196].mxu0 }
0x3d1b   : > { %v7052_v28 = vadd.f32 %v7045_v9, %v6816_v48  ;;  %v8943_v57 = vpop.f32.mrb[197].mxu0 }
0x3d1c   : > { %v7048_v50 = vpop.f32.mrb[198].mxu0 }
0x3d1d   : > { %v7062_v59 = vadd.f32 %v7955_v26, %v7052_v28  ;;  %v7053_v34 = vadd.f32 %v7048_v50, %v6817_v24  ;;  %v8944_v49 = vpop.f32.mrb[199].mxu0 }
0x3d1f   : > { %v7063_v47 = vadd.f32 %v7955_v26, %v7053_v34  ;;  %v7064_v5 = vadd.f32 %v7062_v59, %v10584_v36 }
0x3d21   : > { %v7070_v51 = vsel %vm830_vm1, %v7064_v5, 0.0  ;;  %v7065_v60 = vadd.f32 %v7063_v47, %v10586_v8  ;;  %v9085_v8 = vld [vmem:[%s10853_s19 + $0x10] sm:$0xff]  }
0x3d22   : > { %7071 = vadd.xlane.f32.xlu0 %v7070_v51  ;;  %8946 = vmatpush3.bf16.msra.mxu1 %v9085_v8 }
0x3d23   : > { %v7073_v30 = vsel %vm830_vm1, %v7065_v60, 0.0  ;;  %8947 = vmatprep.subr.bf16.mxu1 %v9253_v1 }
0x3d24   : > { %7074 = vadd.xlane.f32.xlu1 %v7073_v30 }
0x3d26   : > { %8948 = vmatpush3.bf16.msra.mxu1 %v9086_v39 }
0x3d27   : > { %8965 = vmatprep.subr.bf16.mxu1 %v9253_v1 }
0x3daf   : > { %v7072_v42 = vpop.xlane.xlu0 %7071 }
0x3db0   : > { %v7076_v44 = vmul.f32 0.03125, %v7072_v42 }
0x3db1   : > { %v7075_v63 = vpop.xlane.xlu1 %7074 }
0x3db2   : > { %v7078_v21 = vsub.f32 %v7064_v5, %v7076_v44  ;;  %v7077_v33 = vmul.f32 0.03125, %v7075_v63  ;;  %v7319_v44 = vld [vmem:[%s796_s1] sm:$0xff]  ;;  %v7320_v63 = vld [vmem:[%s796_s1 + $0x8] sm:$0xff] }
0x3db4   : > { %v7079_v52 = vsub.f32 %v7065_v60, %v7077_v33  ;;  %v7080_v40 = vmul.f32 %v7078_v21, %v7078_v21  ;;  %v7321_v33 = vld [vmem:[%s796_s1 + $0x10] sm:$0xff] }
0x3db6   : > { %v7082_v35 = vsel %vm830_vm1, %v7080_v40, 0.0  ;;  %v7081_v18 = vmul.f32 %v7079_v52, %v7079_v52 }
0x3db7   : > { %7083 = vadd.xlane.f32.xlu0 %v7082_v35 }
0x3db8   : > { %v7085_v36 = vsel %vm830_vm1, %v7081_v18, 0.0 }
0x3db9   : > { %7086 = vadd.xlane.f32.xlu1 %v7085_v36 }
0x3e44   : > { %v7084_v58 = vpop.xlane.xlu0 %7083 }
0x3e45   : > { %v7088_v48 = vmul.f32 0.03125, %v7084_v58  ;;  %v7986_v58 = vld [vmem:[%s10857_s23 + $0x5] ss:$0 sm:$0xff] }
0x3e46   : > { %v7087_v55 = vpop.xlane.xlu1 %7086 }
0x3e47   : > { %v7090_v53 = vadd.f32 1e-05, %v7088_v48  ;;  %v7089_v24 = vmul.f32 0.03125, %v7087_v55 }
0x3e49   : > { %9235 = vrsqrt.f32 %v7090_v53  ;;  %v7091_v61 = vadd.f32 1e-05, %v7089_v24  ;;  %v7987_v24 = vld [vmem:[%s10858_s24 + $0x5] ss:$0 sm:$0xff] }
0x3e4b   : > { %9237 = vrsqrt.f32 %v7091_v61 }
0x3e53   : > { %v9236_v54 = vpop.eup %9235 }
0x3e54   : > { %v7094_v31 = vmul.f32 %v9236_v54, %v7078_v21  ;;  %v7323_v21 = vpack.c.bf16 %v7320_v63, %v7319_v44 }
0x3e55   : > { %v9238_v13 = vpop.eup %9237 }
0x3e56   : > { %v7102_v56 = vmul.f32 %v7958_v37, %v7094_v31  ;;  %v7095_v29 = vmul.f32 %v9238_v13, %v7079_v52  ;;  %v7322_v52 = vld [vmem:[%s796_s1 + $0x18] sm:$0xff]  ;;  %s801_s1 = scalar_lea.vmem %s10859_s25, %s10892_s3 }
0x3e57   : > { %v7324_v40 = vpack.c.bf16 %v7322_v52, %v7321_v33 }
0x3e58   : > { %v7103_v32 = vmul.f32 %v7958_v37, %v7095_v29  ;;  %v7110_v16 = vadd.f32 %v7959_v14, %v7102_v56 }
0x3e5a   : > { %v7111_v15 = vadd.f32 %v7959_v14, %v7103_v32 }
0x3e5c   : > { %v7112_v45 = vpack.c.bf16 %v7111_v15, %v7110_v16 }
0x3e5e   : > { %8950 = vmatmul.mubr.msk.bf16.vlgmr.msra.gmra.mrb[192].mxu1 %vm830_vm1, %v7112_v45 }
0x3e5f   : > { %8969 = vmatprep.mubr.msk.bf16.mxu1 %vm9254_vm0, %v9253_v1  ;;  %8966 = vmatpush3.bf16.msra.mxu1 %v7323_v21 }
0x3e60   : > { %8967 = vmatprep.subr.bf16.mxu1 %v9253_v1 }
0x3e63   : > { %8968 = vmatpush3.bf16.msra.mxu1 %v7324_v40 }
0x3f31   : > { %v7175_v6 = vpop.f32.mrb[192].mxu1 }
0x3f32   : > { %v7176_v10 = vadd.f32 %v7965_v11, %v7175_v6  ;;  %v8951_v19 = vpop.f32.mrb[193].mxu1 }
0x3f33   : > { %v7178_v2 = vpop.f32.mrb[194].mxu1 }
0x3f34   : > { %v7179_v4 = vadd.f32 %v7965_v11, %v7178_v2  ;;  %v8952_v0 = vpop.f32.mrb[195].mxu1  ;;  %v7182_v12 = vmax.f32 %v7176_v10, 0.0 }
0x3f36   : > { %v7183_v43 = vmax.f32 %v7179_v4, 0.0 }
0x3f38   : > { %v7184_v17 = vpack.c.bf16 %v7183_v43, %v7182_v12 }
0x3f3a   : > { %8962 = vmatmul.mubr.msk.bf16.vlgmr.msra.gmra.mrb[200].mxu0 %vm4491_vm5, %v7184_v17 }
0x400d   : > { %v7263_v46 = vpop.f32.mrb[200].mxu0 }
0x400e   : > { %v7264_v23 = vadd.f32 %v7978_v20, %v7263_v46  ;;  %v8963_v25 = vpop.f32.mrb[201].mxu0 }
0x400f   : > { %v7266_v27 = vpop.f32.mrb[202].mxu0 }
0x4010   : > { %v7267_v22 = vadd.f32 %v7978_v20, %v7266_v27  ;;  %v8964_v62 = vpop.f32.mrb[203].mxu0  ;;  %v7270_v9 = vadd.f32 %v7264_v23, %v7110_v16 }
0x4012   : > { %v7276_v26 = vsel %vm830_vm1, %v7270_v9, 0.0  ;;  %v7271_v28 = vadd.f32 %v7267_v22, %v7111_v15 }
0x4013   : > { %7277 = vadd.xlane.f32.xlu0 %v7276_v26 }
0x4014   : > { %v7279_v57 = vsel %vm830_vm1, %v7271_v28, 0.0 }
0x4015   : > { %7280 = vadd.xlane.f32.xlu1 %v7279_v57 }
0x40a0   : > { %v7278_v50 = vpop.xlane.xlu0 %7277 }
0x40a1   : > { %v7282_v59 = vmul.f32 0.03125, %v7278_v50 }
0x40a2   : > { %v7281_v34 = vpop.xlane.xlu1 %7280 }
0x40a3   : > { %v7284_v49 = vsub.f32 %v7270_v9, %v7282_v59  ;;  %v7283_v47 = vmul.f32 0.03125, %v7281_v34 }
0x40a5   : > { %v7285_v5 = vsub.f32 %v7271_v28, %v7283_v47  ;;  %v7286_v51 = vmul.f32 %v7284_v49, %v7284_v49 }
0x40a7   : > { %v7288_v60 = vsel %vm830_vm1, %v7286_v51, 0.0  ;;  %v7287_v30 = vmul.f32 %v7285_v5, %v7285_v5 }
0x40a8   : > { %7289 = vadd.xlane.f32.xlu0 %v7288_v60 }
0x40a9   : > { %v7291_v42 = vsel %vm830_vm1, %v7287_v30, 0.0 }
0x40aa   : > { %7292 = vadd.xlane.f32.xlu1 %v7291_v42 }
0x4135   : > { %v7290_v35 = vpop.xlane.xlu0 %7289 }
0x4136   : > { %v7294_v18 = vmul.f32 0.03125, %v7290_v35 }
0x4137   : > { %v7293_v36 = vpop.xlane.xlu1 %7292 }
0x4138   : > { %v7296_v8 = vadd.f32 1e-05, %v7294_v18  ;;  %v7295_v39 = vmul.f32 0.03125, %v7293_v36 }
0x413a   : > { %9239 = vrsqrt.f32 %v7296_v8  ;;  %v7297_v38 = vadd.f32 1e-05, %v7295_v39 }
0x413c   : > { %9241 = vrsqrt.f32 %v7297_v38 }
0x4144   : > { %v9240_v41 = vpop.eup %9239 }
0x4145   : > { %v7300_v48 = vmul.f32 %v9240_v41, %v7284_v49 }
0x4146   : > { %v9242_v55 = vpop.eup %9241 }
0x4147   : > { %v7308_v53 = vmul.f32 %v7986_v58, %v7300_v48  ;;  %v7301_v1 = vmul.f32 %v9242_v55, %v7285_v5 }
0x4149   : > { %v7309_v61 = vmul.f32 %v7986_v58, %v7301_v1  ;;  %v7316_v54 = vadd.f32 %v7987_v24, %v7308_v53 }
0x414b   : > { %v7317_v37 = vadd.f32 %v7987_v24, %v7309_v61 }
0x414d   : > { %v7318_v31 = vpack.c.bf16 %v7317_v37, %v7316_v54 }
0x414f   : > { %8970 = vmatmul.mubr.msk.bf16.vlgmr.msra.gmra.mrb[196].mxu1 %vm830_vm1, %v7318_v31 }
0x4222   : > { %v7362_v13 = vpop.f32.mrb[196].mxu1 }
0x4223   : > { %7369 = vst.msk [vmem:[%s801_s1] sm:$0xff] %vm2464_vm2, %v7362_v13  ;;  %v8971_v56 = vpop.f32.mrb[197].mxu1 }
0x4224   : > { %v7365_v29 = vpop.f32.mrb[198].mxu1 }
0x4225   : > { %7370 = vst.msk [vmem:[%s801_s1 + $0x8] sm:$0xff] %vm2464_vm2, %v7365_v29  ;;  %v8972_v14 = vpop.f32.mrb[199].mxu1 }
0x4226 PF: > { %s35_s29 = sadd.s32 1, %s9251_s29  }
0x4227   : > { %p32_p4 = scmp.ge.s32.totalorder %s35_s29, 4  }
0x4229   :  { %34 = sbr.rel (!%p32_p4) target bundleno = 13 (0xd), region = 270 }

</bundles_post_ra>
